<compile_context>
chip_gen: v5e
topology: v5e:2x2
jax: 0.10.0
libtpu: 0.0.40
codegen_flags: <defaults>
</compile_context>

<pallas_src>
import functools

import jax
import jax.numpy as jnp
from jax.experimental import pallas as pl
from jax.experimental.pallas import tpu as pltpu


IN_FEATURES = 12660   # 2 * 30 * 211 (flattened NCHW input)
HIDDEN = 64
OUT_FEATURES = 2
OUT_PAD = 128         # output 2 -> 128 lanes (lane-dense, unmasked stores)


def _round_up(n, m):
    return ((n + m - 1) // m) * m


def mlp_kernel(x_ref, w1_ref, b1_ref, w2_ref, b2_ref, o_ref):
    # fc1: cast the streamed f32 x tile to bf16 in-kernel (deliberate precision
    # tradeoff over the 12660-term contraction), accumulate in f32 on the MXU.
    x_bf = x_ref[...].astype(jnp.bfloat16)
    h = jnp.dot(x_bf, w1_ref[...], preferred_element_type=jnp.float32)
    h = jnp.maximum(h + b1_ref[...], 0.0)
    # fc2 (tiny; f32 x f32 for accuracy): [TB, 64] @ [64, OUT_PAD] + b2.
    out = jnp.dot(h, w2_ref[...], preferred_element_type=jnp.float32)
    o_ref[...] = (out + b2_ref[...]).astype(o_ref.dtype)


def prep_params(w1, b1, w2, b2):
    """One-time parameter prep.

    w1: (IN_FEATURES, HIDDEN)  f32 -> bf16, natural shape (dominant one-time DMA)
    b1: (1, HIDDEN)            f32 (unchanged)
    w2: (HIDDEN, OUT_FEATURES) f32 -> (HIDDEN, OUT_PAD)  zero-padded columns
    b2: (1, OUT_FEATURES)      f32 -> (1, OUT_PAD)       zero-padded columns
    """
    w1p = w1.astype(jnp.bfloat16)
    b1p = b1.astype(jnp.float32)
    w2p = jnp.zeros((HIDDEN, OUT_PAD), jnp.float32).at[:, :OUT_FEATURES].set(w2)
    b2p = jnp.zeros((1, OUT_PAD), jnp.float32).at[:, :OUT_FEATURES].set(b2)
    return w1p, b1p, w2p, b2p


@functools.partial(jax.jit, static_argnames=("block_b", "vmem_limit_mb"))
def audio_classifier_forward(x_nchw, w1p, b1p, w2p, b2p, block_b=256,
                             vmem_limit_mb=48):
    """x_nchw: (B, 2, 30, 211) float32; params from prep_params.

    Returns (B, 2) float32 logits == flatten -> fc1 -> relu -> fc2.
    """
    B = x_nchw.shape[0]
    # Reshape is a metadata-only view of the contiguous NCHW input; x stays f32
    # and is NOT padded along K (full-K BlockSpec below handles 12660 directly).
    x_flat = x_nchw.reshape(B, IN_FEATURES)

    # Batch tile: multiple of 8 (f32 sublane). Only pad the batch axis, and only
    # when B is not already a multiple of the tile.
    tb = min(block_b, _round_up(B, 8))
    b_pad = _round_up(B, tb)
    if b_pad != B:
        x_flat = jnp.pad(x_flat, ((0, b_pad - B), (0, 0)))

    cost = pl.CostEstimate(
        flops=2 * b_pad * IN_FEATURES * HIDDEN + 2 * b_pad * HIDDEN * OUT_PAD,
        transcendentals=0,
        bytes_accessed=(b_pad * IN_FEATURES * 4          # x (f32 read)
                        + IN_FEATURES * HIDDEN * 2       # w1 (bf16, once)
                        + HIDDEN * OUT_PAD * 4           # w2
                        + b_pad * OUT_PAD * 4),          # out
    )

    out = pl.pallas_call(
        mlp_kernel,
        out_shape=jax.ShapeDtypeStruct((b_pad, OUT_PAD), jnp.float32),
        grid_spec=pltpu.PrefetchScalarGridSpec(
            num_scalar_prefetch=0,
            grid=(b_pad // tb,),
            in_specs=[
                # x: streamed per batch tile; full-K block (== array dim 12660).
                pl.BlockSpec((tb, IN_FEATURES), lambda i: (i, 0)),
                # w1/b1/w2/b2: constant index_map -> DMA'd once, VMEM-resident.
                pl.BlockSpec((IN_FEATURES, HIDDEN), lambda i: (0, 0)),
                pl.BlockSpec((1, HIDDEN), lambda i: (0, 0)),
                pl.BlockSpec((HIDDEN, OUT_PAD), lambda i: (0, 0)),
                pl.BlockSpec((1, OUT_PAD), lambda i: (0, 0)),
            ],
            out_specs=pl.BlockSpec((tb, OUT_PAD), lambda i: (i, 0)),
        ),
        compiler_params=pltpu.CompilerParams(
            # Independent batch tiles -> megacore-shard across v7x's 2 TCs.
            dimension_semantics=("parallel",),
            # ~30 MiB actually needed at tb=256 f32 x; 48 MiB leaves headroom on
            # v7x (64 MiB physical). Raise to 72-96 MiB with block_b=512..1024
            # on v5e/v6e (128 MiB physical) for throughput batches.
            vmem_limit_bytes=vmem_limit_mb << 20,
        ),
        cost_estimate=cost,
    )(x_flat, w1p, b1p, w2p, b2p)
    # NOTE: rows [B:b_pad] of the padded output hold garbage (ReLU(b1)-derived);
    # only the sliced view below is valid.
    return out[:B, :OUT_FEATURES]


def init_params():
    """Deterministic synthetic parameters matching nn.Linear shapes.

    PyTorch stores Linear weights as [out, in]; we keep them transposed
    ([in, out]) so the kernel does x @ W directly.
    """
    key = jax.random.PRNGKey(0)
    k1, k2, k3, k4 = jax.random.split(key, 4)
    bound1 = 1.0 / (IN_FEATURES ** 0.5)
    bound2 = 1.0 / (HIDDEN ** 0.5)
    w1 = jax.random.uniform(k1, (IN_FEATURES, HIDDEN), jnp.float32, -bound1, bound1)
    b1 = jax.random.uniform(k2, (1, HIDDEN), jnp.float32, -bound1, bound1)
    w2 = jax.random.uniform(k3, (HIDDEN, OUT_FEATURES), jnp.float32, -bound2, bound2)
    b2 = jax.random.uniform(k4, (1, OUT_FEATURES), jnp.float32, -bound2, bound2)
    return w1, b1, w2, b2


if __name__ == "__main__":
    # TODO(synk): conv1/pool/conv2 are defined in __init__ but unused by forward,
    # so they are intentionally not implemented.
    key = jax.random.PRNGKey(0)
    B = 2
    # NCHW input consistent with fc1's 12660 input features: 2 * 30 * 211 = 12660.
    x = jax.random.normal(key, (B, 2, 30, 211), dtype=jnp.float32)

    w1, b1, w2, b2 = init_params()
    w1p, b1p, w2p, b2p = prep_params(w1, b1, w2, b2)

    out = audio_classifier_forward(x, w1p, b1p, w2p, b2p)
    out = jax.block_until_ready(out)

    # Reference in plain JAX using the same bf16 rounding of x and w1 that the
    # kernel applies (products accumulate in f32 either way).
    x_flat = x.reshape(B, -1)
    x_bf = x_flat.astype(jnp.bfloat16).astype(jnp.float32)
    w1_bf = w1.astype(jnp.bfloat16).astype(jnp.float32)
    ref = jnp.maximum(x_bf @ w1_bf + b1, 0.0) @ w2 + b2

    assert out.shape == (B, OUT_FEATURES)
    assert jnp.allclose(out, ref, atol=5e-3, rtol=5e-3)

    # Sanity: bf16 compression stays close to the full-f32 reference too.
    ref_f32 = jnp.maximum(x_flat @ w1 + b1, 0.0) @ w2 + b2
    assert jnp.allclose(out, ref_f32, atol=5e-2, rtol=5e-2)

    print("KERNEL_OK")
</pallas_src>

<mosaic_0001>
module attributes {stable_mosaic.version = 11 : i64} {
  func.func @mlp_kernel(%arg0: i32, %arg1: memref<8x12660xf32, #tpu.memory_space<vmem>>, %arg2: memref<12660x64xbf16, #tpu.memory_space<vmem>>, %arg3: memref<1x64xf32, #tpu.memory_space<vmem>>, %arg4: memref<64x128xf32, #tpu.memory_space<vmem>>, %arg5: memref<1x128xf32, #tpu.memory_space<vmem>>, %arg6: memref<8x128xf32, #tpu.memory_space<vmem>>) attributes {dimension_semantics = [#tpu.dimension_semantics<parallel>], iteration_bounds = array<i64: 1>, scalar_prefetch = 0 : i64, scratch_operands = 0 : i64, tpu.core_type = #tpu.core_type<tc>, window_params = [{transform_indices = @transform_0, window_bounds = array<i64: 8, 12660>}, {pipeline_mode = #tpu.pipeline_mode<synchronous>, transform_indices = @transform_1, window_bounds = array<i64: 12660, 64>}, {pipeline_mode = #tpu.pipeline_mode<synchronous>, transform_indices = @transform_2, window_bounds = array<i64: 1, 64>}, {pipeline_mode = #tpu.pipeline_mode<synchronous>, transform_indices = @transform_3, window_bounds = array<i64: 64, 128>}, {pipeline_mode = #tpu.pipeline_mode<synchronous>, transform_indices = @transform_4, window_bounds = array<i64: 1, 128>}, {transform_indices = @transform_5, window_bounds = array<i64: 8, 128>}]} {
    %c0 = arith.constant 0 : index
    %c0_0 = arith.constant 0 : index
    %0 = vector.load %arg1[%c0, %c0_0] : memref<8x12660xf32, #tpu.memory_space<vmem>>, vector<8x12660xf32>
    %1 = arith.truncf %0 : vector<8x12660xf32> to vector<8x12660xbf16>
    %c0_1 = arith.constant 0 : index
    %c0_2 = arith.constant 0 : index
    %2 = vector.load %arg2[%c0_1, %c0_2] : memref<12660x64xbf16, #tpu.memory_space<vmem>>, vector<12660x64xbf16>
    %cst = arith.constant dense<0.000000e+00> : vector<8x64xf32>
    %3 = tpu.matmul %1, %2, %cst {dimension_numbers = #tpu.dot_dimension_numbers<[1], [0], [0], [1], [0, 0, 1, 1], [], []>} : vector<8x12660xbf16>, vector<12660x64xbf16>, vector<8x64xf32> -> vector<8x64xf32>
    %c0_3 = arith.constant 0 : index
    %c0_4 = arith.constant 0 : index
    %4 = vector.load %arg3[%c0_3, %c0_4] : memref<1x64xf32, #tpu.memory_space<vmem>>, vector<1x64xf32>
    %5 = vector.broadcast %4 : vector<1x64xf32> to vector<8x64xf32>
    %6 = arith.addf %3, %5 : vector<8x64xf32>
    %cst_5 = arith.constant 0.000000e+00 : f32
    %7 = vector.broadcast %cst_5 : f32 to vector<8x64xf32>
    %8 = arith.maximumf %6, %7 : vector<8x64xf32>
    %c0_6 = arith.constant 0 : index
    %c0_7 = arith.constant 0 : index
    %9 = vector.load %arg4[%c0_6, %c0_7] : memref<64x128xf32, #tpu.memory_space<vmem>>, vector<64x128xf32>
    %cst_8 = arith.constant dense<0.000000e+00> : vector<8x128xf32>
    %10 = tpu.matmul %8, %9, %cst_8 {dimension_numbers = #tpu.dot_dimension_numbers<[1], [0], [0], [1], [0, 0, 1, 1], [], []>} : vector<8x64xf32>, vector<64x128xf32>, vector<8x128xf32> -> vector<8x128xf32>
    %c0_9 = arith.constant 0 : index
    %c0_10 = arith.constant 0 : index
    %11 = vector.load %arg5[%c0_9, %c0_10] : memref<1x128xf32, #tpu.memory_space<vmem>>, vector<1x128xf32>
    %12 = vector.broadcast %11 : vector<1x128xf32> to vector<8x128xf32>
    %13 = arith.addf %10, %12 : vector<8x128xf32>
    %c0_11 = arith.constant 0 : index
    %c0_12 = arith.constant 0 : index
    %14 = vector.load %arg6[%c0_11, %c0_12] : memref<8x128xf32, #tpu.memory_space<vmem>>, vector<8x128xf32>
    tpu.vector_store %arg6[%c0_11, %c0_12], %13 {strides = array<i32>} : memref<8x128xf32, #tpu.memory_space<vmem>>, vector<8x128xf32>,
    return
  }
  func.func @transform_0(%arg0: i32) -> (i32, i32) {
    %c0_i32 = arith.constant 0 : i32
    %c0_i32_0 = arith.constant 0 : i32
    return %arg0, %c0_i32 : i32, i32
  }
  func.func @transform_1(%arg0: i32) -> (i32, i32) {
    %c0_i32 = arith.constant 0 : i32
    %c0_i32_0 = arith.constant 0 : i32
    %c0_i32_1 = arith.constant 0 : i32
    return %c0_i32, %c0_i32_0 : i32, i32
  }
  func.func @transform_2(%arg0: i32) -> (i32, i32) {
    %c0_i32 = arith.constant 0 : i32
    %c0_i32_0 = arith.constant 0 : i32
    %c0_i32_1 = arith.constant 0 : i32
    return %c0_i32, %c0_i32_0 : i32, i32
  }
  func.func @transform_3(%arg0: i32) -> (i32, i32) {
    %c0_i32 = arith.constant 0 : i32
    %c0_i32_0 = arith.constant 0 : i32
    %c0_i32_1 = arith.constant 0 : i32
    return %c0_i32, %c0_i32_0 : i32, i32
  }
  func.func @transform_4(%arg0: i32) -> (i32, i32) {
    %c0_i32 = arith.constant 0 : i32
    %c0_i32_0 = arith.constant 0 : i32
    %c0_i32_1 = arith.constant 0 : i32
    return %c0_i32, %c0_i32_0 : i32, i32
  }
  func.func @transform_5(%arg0: i32) -> (i32, i32) {
    %c0_i32 = arith.constant 0 : i32
    %c0_i32_0 = arith.constant 0 : i32
    return %arg0, %c0_i32 : i32, i32
  }
}

</mosaic_0001>

<bundles_post_ra>
// kernel: audio_classifier_forward.1
= control target key start
LH: loop header
LB: loop body
LE: loop exit
PB: predicated region body
PF: predicated region fallthrough
CT: control target
= control target key end

     0   :  { %vm6558_vm0 = vcmask 1041408   ;;  %vm6554_vm1 = vcmask 949248   ;;  %vm7862_vm2 = vcmask 523264   ;;  %s14637_s1 = inlined_call_operand.vmem [shape: bf16[12660,64], index: 1, kind: input, shape index: {}]   ;;  %s14638_s0 = inlined_call_operand.vmem [shape: f32[8,12660], index: 0, kind: input, shape index: {}]   ;;  %s14639_s2 = inlined_call_operand.vmem [shape: f32[1,64], index: 2, kind: input, shape index: {}]   ;;  %s14640_s4 = inlined_call_operand.vmem [shape: f32[1,128], index: 4, kind: input, shape index: {}]   ;;  %s14641_s3 = inlined_call_operand.vmem [shape: f32[64,128], index: 3, kind: input, shape index: {}]   ;;  %s14642_s5 = inlined_call_operand.vmem [shape: f32[8,128], index: 5, kind: output, shape index: {}]  }
   0x1   :  { %v11064_v0 = vld [vmem:[%s14637_s1 + $0x38] sm:$0xff]  ;;  %v11063_v4 = vld [vmem:[%s14637_s1 + $0x30] sm:$0xff]  ;;  %v11062_v8 = vld [vmem:[%s14637_s1 + $0x28] sm:$0xff] }
   0x2   :  { %v11072_v1 = vld [vmem:[%s14637_s1 + $0x78] sm:$0xff]  ;;  %6562 = vmatpush.bf16.msra.mxu0 %v11064_v0  ;;  %v11071_v5 = vld [vmem:[%s14637_s1 + $0x70] sm:$0xff]  ;;  %v11070_v9 = vld [vmem:[%s14637_s1 + $0x68] sm:$0xff] }
   0x3   :  { %v11080_v2 = vld [vmem:[%s14637_s1 + $0xb8] sm:$0xff]  ;;  %6575 = vmatpush.bf16.msra.mxu1 %v11072_v1  ;;  %v11079_v6 = vld [vmem:[%s14637_s1 + $0xb0] sm:$0xff]  ;;  %v11078_v10 = vld [vmem:[%s14637_s1 + $0xa8] sm:$0xff] }
   0x4   :  { %v11088_v3 = vld [vmem:[%s14637_s1 + $0xf8] sm:$0xff]  ;;  %6588 = vmatpush.bf16.msra.mxu2 %v11080_v2  ;;  %v11087_v7 = vld [vmem:[%s14637_s1 + $0xf0] sm:$0xff]  ;;  %v11086_v11 = vld [vmem:[%s14637_s1 + $0xe8] sm:$0xff] }
   0x5   :  { %6601 = vmatpush.bf16.msra.mxu3 %v11088_v3  ;;  %v11061_v12 = vld [vmem:[%s14637_s1 + $0x20] sm:$0xff]  ;;  %v11060_v16 = vld [vmem:[%s14637_s1 + $0x18] sm:$0xff]  ;;  %v11059_v20 = vld [vmem:[%s14637_s1 + $0x10] sm:$0xff] }
   0x6   :  { %6563 = vmatpush.bf16.msra.mxu0 %v11063_v4  ;;  %v11069_v13 = vld [vmem:[%s14637_s1 + $0x60] sm:$0xff]  ;;  %v11068_v17 = vld [vmem:[%s14637_s1 + $0x58] sm:$0xff]  ;;  %v11067_v21 = vld [vmem:[%s14637_s1 + $0x50] sm:$0xff] }
   0x7   :  { %6576 = vmatpush.bf16.msra.mxu1 %v11071_v5  ;;  %v11077_v14 = vld [vmem:[%s14637_s1 + $0xa0] sm:$0xff]  ;;  %v11076_v18 = vld [vmem:[%s14637_s1 + $0x98] sm:$0xff]  ;;  %v11075_v22 = vld [vmem:[%s14637_s1 + $0x90] sm:$0xff] }
   0x8   :  { %6589 = vmatpush.bf16.msra.mxu2 %v11079_v6  ;;  %v11085_v15 = vld [vmem:[%s14637_s1 + $0xe0] sm:$0xff]  ;;  %v11084_v19 = vld [vmem:[%s14637_s1 + $0xd8] sm:$0xff]  ;;  %v11083_v23 = vld [vmem:[%s14637_s1 + $0xd0] sm:$0xff] }
   0x9   :  { %6602 = vmatpush.bf16.msra.mxu3 %v11087_v7  ;;  %v11058_v24 = vld [vmem:[%s14637_s1 + $0x8] sm:$0xff]  ;;  %v11057_v28 = vld [vmem:[%s14637_s1] sm:$0xff]  ;;  %v11096_v32 = vld [vmem:[%s14637_s1 + $0x138] sm:$0xff] }
   0xa   :  { %6564 = vmatpush.bf16.msra.mxu0 %v11062_v8  ;;  %v11066_v25 = vld [vmem:[%s14637_s1 + $0x48] sm:$0xff]  ;;  %v11065_v29 = vld [vmem:[%s14637_s1 + $0x40] sm:$0xff]  ;;  %v22_v33 = vld [vmem:[%s14638_s0 + $0x10] sm:$0xff] }
   0xb   :  { %6577 = vmatpush.bf16.msra.mxu1 %v11070_v9  ;;  %v11074_v26 = vld [vmem:[%s14637_s1 + $0x88] sm:$0xff]  ;;  %v20_v30 = vld [vmem:[%s14638_s0] sm:$0xff]  ;;  %v11104_v34 = vld [vmem:[%s14637_s1 + $0x178] sm:$0xff]  ;;  %v121_v40 = vpack.c.bf16 %v22_v33, %v22_v33 }
   0xc   :  { %6590 = vmatpush.bf16.msra.mxu2 %v11078_v10  ;;  %v11082_v27 = vld [vmem:[%s14637_s1 + $0xc8] sm:$0xff]  ;;  %v11073_v31 = vld [vmem:[%s14637_s1 + $0x80] sm:$0xff]  ;;  %v11112_v35 = vld [vmem:[%s14637_s1 + $0x1b8] sm:$0xff]  ;;  %v119_v38 = vpack.c.bf16 %v20_v30, %v20_v30 }
   0xd   :  { %6603 = vmatpush.bf16.msra.mxu3 %v11086_v11  ;;  %v21_v36 = vld [vmem:[%s14638_s0 + $0x8] sm:$0xff]  ;;  %v11081_v37 = vld [vmem:[%s14637_s1 + $0xc0] sm:$0xff]  ;;  %v11120_v39 = vld [vmem:[%s14637_s1 + $0x1f8] sm:$0xff] }
   0xe   :  { %6565 = vmatpush.bf16.msra.mxu0 %v11061_v12  ;;  %v23_v41 = vld [vmem:[%s14638_s0 + $0x18] sm:$0xff]  ;;  %v11095_v42 = vld [vmem:[%s14637_s1 + $0x130] sm:$0xff]  ;;  %v120_v43 = vpack.c.bf16 %v21_v36, %v21_v36  ;;  %v11094_v48 = vld [vmem:[%s14637_s1 + $0x128] sm:$0xff] }
   0xf   :  { %6578 = vmatpush.bf16.msra.mxu1 %v11069_v13  ;;  %v11103_v44 = vld [vmem:[%s14637_s1 + $0x170] sm:$0xff]  ;;  %v122_v46 = vpack.c.bf16 %v23_v41, %v23_v41  ;;  %v11102_v49 = vld [vmem:[%s14637_s1 + $0x168] sm:$0xff]  ;;  %v11093_v52 = vld [vmem:[%s14637_s1 + $0x120] sm:$0xff] }
  0x10   :  { %6591 = vmatpush.bf16.msra.mxu2 %v11077_v14  ;;  %v11111_v45 = vld [vmem:[%s14637_s1 + $0x1b0] sm:$0xff]  ;;  %v11110_v50 = vld [vmem:[%s14637_s1 + $0x1a8] sm:$0xff]  ;;  %v11101_v53 = vld [vmem:[%s14637_s1 + $0x160] sm:$0xff] }
  0x11   :  { %6604 = vmatpush.bf16.msra.mxu3 %v11085_v15  ;;  %v11119_v47 = vld [vmem:[%s14637_s1 + $0x1f0] sm:$0xff]  ;;  %v11118_v51 = vld [vmem:[%s14637_s1 + $0x1e8] sm:$0xff]  ;;  %v11109_v54 = vld [vmem:[%s14637_s1 + $0x1a0] sm:$0xff] }
  0x12   :  { %6566 = vmatpush.bf16.msra.mxu0 %v11060_v16  ;;  %v11117_v55 = vld [vmem:[%s14637_s1 + $0x1e0] sm:$0xff]  ;;  %v11092_v56 = vld [vmem:[%s14637_s1 + $0x118] sm:$0xff]  ;;  %v11091_v60 = vld [vmem:[%s14637_s1 + $0x110] sm:$0xff] }
  0x13   :  { %6579 = vmatpush.bf16.msra.mxu1 %v11068_v17  ;;  %v11100_v57 = vld [vmem:[%s14637_s1 + $0x158] sm:$0xff]  ;;  %v11099_v61 = vld [vmem:[%s14637_s1 + $0x150] sm:$0xff]  ;;  %v11090_v0 = vld [vmem:[%s14637_s1 + $0x108] sm:$0xff] }
  0x14   :  { %6592 = vmatpush.bf16.msra.mxu2 %v11076_v18  ;;  %v11108_v58 = vld [vmem:[%s14637_s1 + $0x198] sm:$0xff]  ;;  %v11107_v62 = vld [vmem:[%s14637_s1 + $0x190] sm:$0xff]  ;;  %v11098_v1 = vld [vmem:[%s14637_s1 + $0x148] sm:$0xff] }
  0x15   :  { %6605 = vmatpush.bf16.msra.mxu3 %v11084_v19  ;;  %v11116_v59 = vld [vmem:[%s14637_s1 + $0x1d8] sm:$0xff]  ;;  %v11115_v63 = vld [vmem:[%s14637_s1 + $0x1d0] sm:$0xff]  ;;  %v11106_v2 = vld [vmem:[%s14637_s1 + $0x188] sm:$0xff] }
  0x16   :  { %6567 = vmatpush.bf16.msra.mxu0 %v11059_v20  ;;  %v11114_v3 = vld [vmem:[%s14637_s1 + $0x1c8] sm:$0xff]  ;;  %v11089_v4 = vld [vmem:[%s14637_s1 + $0x100] sm:$0xff]  ;;  %v11128_v7 = vld [vmem:[%s14637_s1 + $0x238] sm:$0xff] }
  0x17   :  { %6580 = vmatpush.bf16.msra.mxu1 %v11067_v21  ;;  %v11097_v5 = vld [vmem:[%s14637_s1 + $0x140] sm:$0xff]  ;;  %v26_v8 = vld [vmem:[%s14638_s0 + $0x30] sm:$0xff]  ;;  %v11136_v9 = vld [vmem:[%s14637_s1 + $0x278] sm:$0xff] }
  0x18   :  { %6593 = vmatpush.bf16.msra.mxu2 %v11075_v22  ;;  %v11105_v6 = vld [vmem:[%s14637_s1 + $0x180] sm:$0xff]  ;;  %v25_v11 = vld [vmem:[%s14638_s0 + $0x28] sm:$0xff]  ;;  %v11144_v12 = vld [vmem:[%s14637_s1 + $0x2b8] sm:$0xff]  ;;  %v125_v15 = vpack.c.bf16 %v26_v8, %v26_v8 }
  0x19   :  { %6606 = vmatpush.bf16.msra.mxu3 %v11083_v23  ;;  %v24_v10 = vld [vmem:[%s14638_s0 + $0x20] sm:$0xff]  ;;  %v11152_v14 = vld [vmem:[%s14637_s1 + $0x2f8] sm:$0xff]  ;;  %v124_v18 = vpack.c.bf16 %v25_v11, %v25_v11  ;;  %v11127_v19 = vld [vmem:[%s14637_s1 + $0x230] sm:$0xff] }
  0x1a   :  { %6568 = vmatpush.bf16.msra.mxu0 %v11058_v24  ;;  %v11113_v13 = vld [vmem:[%s14637_s1 + $0x1c0] sm:$0xff]  ;;  %v27_v16 = vld [vmem:[%s14638_s0 + $0x38] sm:$0xff]  ;;  %v123_v17 = vpack.c.bf16 %v24_v10, %v24_v10  ;;  %v11135_v20 = vld [vmem:[%s14637_s1 + $0x270] sm:$0xff] }
  0x1b   :  { %6581 = vmatpush.bf16.msra.mxu1 %v11066_v25  ;;  %v11143_v21 = vld [vmem:[%s14637_s1 + $0x2b0] sm:$0xff]  ;;  %v126_v22 = vpack.c.bf16 %v27_v16, %v27_v16  ;;  %v11126_v24 = vld [vmem:[%s14637_s1 + $0x228] sm:$0xff]  ;;  %v11141_v30 = vld [vmem:[%s14637_s1 + $0x2a0] sm:$0xff] }
  0x1c   :  { %6594 = vmatpush.bf16.msra.mxu2 %v11074_v26  ;;  %v11151_v23 = vld [vmem:[%s14637_s1 + $0x2f0] sm:$0xff]  ;;  %v11134_v25 = vld [vmem:[%s14637_s1 + $0x268] sm:$0xff]  ;;  %v11132_v33 = vld [vmem:[%s14637_s1 + $0x258] sm:$0xff] }
  0x1d   :  { %6607 = vmatpush.bf16.msra.mxu3 %v11082_v27  ;;  %v11142_v26 = vld [vmem:[%s14637_s1 + $0x2a8] sm:$0xff]  ;;  %v11123_v36 = vld [vmem:[%s14637_s1 + $0x210] sm:$0xff]  ;;  %v11156_v8 = vld [vmem:[%s14637_s1 + $0x318] sm:$0xff] }
  0x1e   :  { %6569 = vmatpush.bf16.msra.mxu0 %v11057_v28  ;;  %v11150_v27 = vld [vmem:[%s14637_s1 + $0x2e8] sm:$0xff]  ;;  %v11125_v28 = vld [vmem:[%s14637_s1 + $0x220] sm:$0xff]  ;;  %v11172_v10 = vld [vmem:[%s14637_s1 + $0x398] sm:$0xff] }
  0x1f   :  { %6582 = vmatpush.bf16.msra.mxu1 %v11065_v29  ;;  %v11133_v29 = vld [vmem:[%s14637_s1 + $0x260] sm:$0xff]  ;;  %v11130_v41 = vld [vmem:[%s14637_s1 + $0x248] sm:$0xff]  ;;  %v11180_v11 = vld [vmem:[%s14637_s1 + $0x3d8] sm:$0xff] }
  0x20   :  { %6595 = vmatpush.bf16.msra.mxu2 %v11073_v31  ;;  %v11149_v31 = vld [vmem:[%s14637_s1 + $0x2e0] sm:$0xff]  ;;  %v11154_v16 = vld [vmem:[%s14637_s1 + $0x308] sm:$0xff] }
  0x21   :  { %6608 = vmatpush.bf16.msra.mxu3 %v11081_v37  ;;  %6570 = vmatmul.bf16.vlgmr.msra.gmra.mxu0 %v119_v38  ;;  %v11131_v37 = vld [vmem:[%s14637_s1 + $0x250] sm:$0xff] }
  0x22   :  { %6614 = vmatpush.bf16.msrb.mxu0 %v11096_v32  ;;  %6583 = vmatmul.bf16.vlgmr.msra.gmra.mxu1 %v120_v43  ;;  %v11124_v32 = vld [vmem:[%s14637_s1 + $0x218] sm:$0xff]  ;;  %v11139_v38 = vld [vmem:[%s14637_s1 + $0x290] sm:$0xff]  ;;  %v11146_v43 = vld [vmem:[%s14637_s1 + $0x2c8] sm:$0xff] }
  0x23   :  { %6627 = vmatpush.bf16.msrb.mxu1 %v11104_v34  ;;  %6596 = vmatmul.bf16.vlgmr.msra.gmra.mxu2 %v121_v40  ;;  %v11140_v34 = vld [vmem:[%s14637_s1 + $0x298] sm:$0xff]  ;;  %v11122_v40 = vld [vmem:[%s14637_s1 + $0x208] sm:$0xff] }
  0x24   :  { %6640 = vmatpush.bf16.msrb.mxu2 %v11112_v35  ;;  %6609 = vmatmul.bf16.vlgmr.msra.gmra.mxu3 %v122_v46  ;;  %v11148_v35 = vld [vmem:[%s14637_s1 + $0x2d8] sm:$0xff]  ;;  %v28_v46 = vld [vmem:[%s14638_s0 + $0x40] sm:$0xff] }
  0x25   :  { %6653 = vmatpush.bf16.msrb.mxu3 %v11120_v39  ;;  %v11147_v39 = vld [vmem:[%s14637_s1 + $0x2d0] sm:$0xff] }
  0x26   :  { %6615 = vmatpush.bf16.msrb.mxu0 %v11095_v42  ;;  %v11138_v42 = vld [vmem:[%s14637_s1 + $0x288] sm:$0xff] }
  0x27   :  { %6628 = vmatpush.bf16.msrb.mxu1 %v11103_v44  ;;  %v11121_v44 = vld [vmem:[%s14637_s1 + $0x200] sm:$0xff] }
  0x28   :  { %6641 = vmatpush.bf16.msrb.mxu2 %v11111_v45  ;;  %v11129_v45 = vld [vmem:[%s14637_s1 + $0x240] sm:$0xff] }
  0x29   :  { %6654 = vmatpush.bf16.msrb.mxu3 %v11119_v47  ;;  %v11137_v47 = vld [vmem:[%s14637_s1 + $0x280] sm:$0xff] }
  0x2a   :  { %6616 = vmatpush.bf16.msrb.mxu0 %v11094_v48  ;;  %v11160_v48 = vld [vmem:[%s14637_s1 + $0x338] sm:$0xff] }
  0x2b   :  { %6629 = vmatpush.bf16.msrb.mxu1 %v11102_v49  ;;  %v30_v49 = vld [vmem:[%s14638_s0 + $0x50] sm:$0xff] }
  0x2c   :  { %6642 = vmatpush.bf16.msrb.mxu2 %v11110_v50  ;;  %v11168_v50 = vld [vmem:[%s14637_s1 + $0x378] sm:$0xff] }
  0x2d   :  { %6655 = vmatpush.bf16.msrb.mxu3 %v11118_v51  ;;  %v11176_v51 = vld [vmem:[%s14637_s1 + $0x3b8] sm:$0xff] }
  0x2e   :  { %6617 = vmatpush.bf16.msrb.mxu0 %v11093_v52  ;;  %v29_v52 = vld [vmem:[%s14638_s0 + $0x48] sm:$0xff] }
  0x2f   :  { %6630 = vmatpush.bf16.msrb.mxu1 %v11101_v53  ;;  %v11145_v53 = vld [vmem:[%s14637_s1 + $0x2c0] sm:$0xff] }
  0x30   :  { %6643 = vmatpush.bf16.msrb.mxu2 %v11109_v54  ;;  %v127_v54 = vpack.c.bf16 %v28_v46, %v28_v46  ;;  %v11205_v46 = vld [vmem:[%s14637_s1 + $0x4a0] sm:$0xff] }
  0x31   :  { %6656 = vmatpush.bf16.msrb.mxu3 %v11117_v55  ;;  %v31_v55 = vld [vmem:[%s14638_s0 + $0x58] sm:$0xff] }
  0x32   :  { %6618 = vmatpush.bf16.msrb.mxu0 %v11092_v56  ;;  %v129_v56 = vpack.c.bf16 %v30_v49, %v30_v49  ;;  %v11196_v49 = vld [vmem:[%s14637_s1 + $0x458] sm:$0xff] }
  0x33   :  { %6631 = vmatpush.bf16.msrb.mxu1 %v11100_v57  ;;  %v11184_v57 = vld [vmem:[%s14637_s1 + $0x3f8] sm:$0xff] }
  0x34   :  { %6644 = vmatpush.bf16.msrb.mxu2 %v11108_v58  ;;  %v128_v58 = vpack.c.bf16 %v29_v52, %v29_v52  ;;  %v11187_v52 = vld [vmem:[%s14637_s1 + $0x410] sm:$0xff] }
  0x35   :  { %6657 = vmatpush.bf16.msrb.mxu3 %v11116_v59  ;;  %v11159_v59 = vld [vmem:[%s14637_s1 + $0x330] sm:$0xff] }
  0x36   :  { %6619 = vmatpush.bf16.msrb.mxu0 %v11091_v60  ;;  %v130_v60 = vpack.c.bf16 %v31_v55, %v31_v55  ;;  %v11211_v55 = vld [vmem:[%s14637_s1 + $0x4d0] sm:$0xff] }
  0x37   :  { %6632 = vmatpush.bf16.msrb.mxu1 %v11099_v61  ;;  %v11167_v61 = vld [vmem:[%s14637_s1 + $0x370] sm:$0xff] }
  0x38   :  { %6645 = vmatpush.bf16.msrb.mxu2 %v11107_v62  ;;  %v11175_v62 = vld [vmem:[%s14637_s1 + $0x3b0] sm:$0xff] }
  0x39   :  { %6658 = vmatpush.bf16.msrb.mxu3 %v11115_v63  ;;  %v11183_v63 = vld [vmem:[%s14637_s1 + $0x3f0] sm:$0xff] }
  0x3a   :  { %6620 = vmatpush.bf16.msrb.mxu0 %v11090_v0  ;;  %v11158_v0 = vld [vmem:[%s14637_s1 + $0x328] sm:$0xff] }
  0x3b   :  { %6633 = vmatpush.bf16.msrb.mxu1 %v11098_v1  ;;  %v11166_v1 = vld [vmem:[%s14637_s1 + $0x368] sm:$0xff] }
  0x3c   :  { %6646 = vmatpush.bf16.msrb.mxu2 %v11106_v2  ;;  %v11174_v2 = vld [vmem:[%s14637_s1 + $0x3a8] sm:$0xff] }
  0x3d   :  { %6659 = vmatpush.bf16.msrb.mxu3 %v11114_v3  ;;  %v11182_v3 = vld [vmem:[%s14637_s1 + $0x3e8] sm:$0xff] }
  0x3e   :  { %6621 = vmatpush.bf16.msrb.mxu0 %v11089_v4  ;;  %v11157_v4 = vld [vmem:[%s14637_s1 + $0x320] sm:$0xff] }
  0x3f   :  { %6634 = vmatpush.bf16.msrb.mxu1 %v11097_v5  ;;  %v11165_v5 = vld [vmem:[%s14637_s1 + $0x360] sm:$0xff] }
  0x40   :  { %6647 = vmatpush.bf16.msrb.mxu2 %v11105_v6  ;;  %v11173_v6 = vld [vmem:[%s14637_s1 + $0x3a0] sm:$0xff] }
  0x41   :  { %6660 = vmatpush.bf16.msrb.mxu3 %v11113_v13  ;;  %6622 = vmatmul.bf16.vlgmr.msrb.gmra.mxu0 %v123_v17  ;;  %v11163_v13 = vld [vmem:[%s14637_s1 + $0x350] sm:$0xff]  ;;  %v11162_v17 = vld [vmem:[%s14637_s1 + $0x348] sm:$0xff] }
  0x42   :  { %6666 = vmatpush.bf16.msra.mxu0 %v11128_v7  ;;  %6635 = vmatmul.bf16.vlgmr.msrb.gmra.mxu1 %v124_v18  ;;  %v11181_v7 = vld [vmem:[%s14637_s1 + $0x3e0] sm:$0xff]  ;;  %v11170_v18 = vld [vmem:[%s14637_s1 + $0x388] sm:$0xff] }
  0x43   :  { %6679 = vmatpush.bf16.msra.mxu1 %v11136_v9  ;;  %6648 = vmatmul.bf16.vlgmr.msrb.gmra.mxu2 %v125_v15  ;;  %v11164_v9 = vld [vmem:[%s14637_s1 + $0x358] sm:$0xff]  ;;  %v11179_v15 = vld [vmem:[%s14637_s1 + $0x3d0] sm:$0xff] }
  0x44   :  { %6692 = vmatpush.bf16.msra.mxu2 %v11144_v12  ;;  %6661 = vmatmul.bf16.vlgmr.msrb.gmra.mxu3 %v126_v22  ;;  %v11155_v12 = vld [vmem:[%s14637_s1 + $0x310] sm:$0xff]  ;;  %v11169_v22 = vld [vmem:[%s14637_s1 + $0x380] sm:$0xff] }
  0x45   :  { %6705 = vmatpush.bf16.msra.mxu3 %v11152_v14  ;;  %v11171_v14 = vld [vmem:[%s14637_s1 + $0x390] sm:$0xff] }
  0x46   :  { %6667 = vmatpush.bf16.msra.mxu0 %v11127_v19  ;;  %v11178_v19 = vld [vmem:[%s14637_s1 + $0x3c8] sm:$0xff] }
  0x47   :  { %6680 = vmatpush.bf16.msra.mxu1 %v11135_v20  ;;  %v11153_v20 = vld [vmem:[%s14637_s1 + $0x300] sm:$0xff] }
  0x48   :  { %6693 = vmatpush.bf16.msra.mxu2 %v11143_v21  ;;  %v11161_v21 = vld [vmem:[%s14637_s1 + $0x340] sm:$0xff] }
  0x49   :  { %6706 = vmatpush.bf16.msra.mxu3 %v11151_v23  ;;  %v11192_v23 = vld [vmem:[%s14637_s1 + $0x438] sm:$0xff] }
  0x4a   :  { %6668 = vmatpush.bf16.msra.mxu0 %v11126_v24  ;;  %v32_v24 = vld [vmem:[%s14638_s0 + $0x60] sm:$0xff] }
  0x4b   :  { %6681 = vmatpush.bf16.msra.mxu1 %v11134_v25  ;;  %v11200_v25 = vld [vmem:[%s14637_s1 + $0x478] sm:$0xff] }
  0x4c   :  { %6694 = vmatpush.bf16.msra.mxu2 %v11142_v26  ;;  %v34_v26 = vld [vmem:[%s14638_s0 + $0x70] sm:$0xff] }
  0x4d   :  { %6707 = vmatpush.bf16.msra.mxu3 %v11150_v27  ;;  %v33_v27 = vld [vmem:[%s14638_s0 + $0x68] sm:$0xff] }
  0x4e   :  { %6669 = vmatpush.bf16.msra.mxu0 %v11125_v28  ;;  %v11208_v28 = vld [vmem:[%s14637_s1 + $0x4b8] sm:$0xff] }
  0x4f   :  { %6682 = vmatpush.bf16.msra.mxu1 %v11133_v29  ;;  %v11177_v29 = vld [vmem:[%s14637_s1 + $0x3c0] sm:$0xff] }
  0x50   :  { %6695 = vmatpush.bf16.msra.mxu2 %v11141_v30  ;;  %v35_v30 = vld [vmem:[%s14638_s0 + $0x78] sm:$0xff] }
  0x51   :  { %6708 = vmatpush.bf16.msra.mxu3 %v11149_v31  ;;  %v131_v31 = vpack.c.bf16 %v32_v24, %v32_v24  ;;  %v11237_v24 = vld [vmem:[%s14637_s1 + $0x5a0] sm:$0xff] }
  0x52   :  { %6670 = vmatpush.bf16.msra.mxu0 %v11124_v32  ;;  %v11216_v32 = vld [vmem:[%s14637_s1 + $0x4f8] sm:$0xff] }
  0x53   :  { %6683 = vmatpush.bf16.msra.mxu1 %v11132_v33  ;;  %v133_v33 = vpack.c.bf16 %v34_v26, %v34_v26 }
  0x54   :  { %6696 = vmatpush.bf16.msra.mxu2 %v11140_v34  ;;  %v132_v34 = vpack.c.bf16 %v33_v27, %v33_v27  ;;  %v11245_v27 = vld [vmem:[%s14637_s1 + $0x5e0] sm:$0xff] }
  0x55   :  { %6709 = vmatpush.bf16.msra.mxu3 %v11148_v35  ;;  %v134_v35 = vpack.c.bf16 %v35_v30, %v35_v30  ;;  %v11228_v30 = vld [vmem:[%s14637_s1 + $0x558] sm:$0xff] }
  0x56   :  { %6671 = vmatpush.bf16.msra.mxu0 %v11123_v36  ;;  %v11191_v36 = vld [vmem:[%s14637_s1 + $0x430] sm:$0xff] }
  0x57   :  { %6684 = vmatpush.bf16.msra.mxu1 %v11131_v37  ;;  %v11199_v37 = vld [vmem:[%s14637_s1 + $0x470] sm:$0xff] }
  0x58   :  { %6697 = vmatpush.bf16.msra.mxu2 %v11139_v38  ;;  %v11207_v38 = vld [vmem:[%s14637_s1 + $0x4b0] sm:$0xff] }
  0x59   :  { %6710 = vmatpush.bf16.msra.mxu3 %v11147_v39  ;;  %v11215_v39 = vld [vmem:[%s14637_s1 + $0x4f0] sm:$0xff] }
  0x5a   :  { %6672 = vmatpush.bf16.msra.mxu0 %v11122_v40  ;;  %v11190_v40 = vld [vmem:[%s14637_s1 + $0x428] sm:$0xff] }
  0x5b   :  { %6685 = vmatpush.bf16.msra.mxu1 %v11130_v41  ;;  %v11198_v41 = vld [vmem:[%s14637_s1 + $0x468] sm:$0xff] }
  0x5c   :  { %6698 = vmatpush.bf16.msra.mxu2 %v11138_v42  ;;  %v11206_v42 = vld [vmem:[%s14637_s1 + $0x4a8] sm:$0xff] }
  0x5d   :  { %6711 = vmatpush.bf16.msra.mxu3 %v11146_v43  ;;  %v11214_v43 = vld [vmem:[%s14637_s1 + $0x4e8] sm:$0xff] }
  0x5e   :  { %6673 = vmatpush.bf16.msra.mxu0 %v11121_v44  ;;  %v11189_v44 = vld [vmem:[%s14637_s1 + $0x420] sm:$0xff] }
  0x5f   :  { %6686 = vmatpush.bf16.msra.mxu1 %v11129_v45  ;;  %v11197_v45 = vld [vmem:[%s14637_s1 + $0x460] sm:$0xff] }
  0x60   :  { %6699 = vmatpush.bf16.msra.mxu2 %v11137_v47  ;;  %v11213_v47 = vld [vmem:[%s14637_s1 + $0x4e0] sm:$0xff] }
  0x61   :  { %6712 = vmatpush.bf16.msra.mxu3 %v11145_v53  ;;  %6674 = vmatmul.bf16.vlgmr.msra.gmra.mxu0 %v127_v54  ;;  %v11195_v53 = vld [vmem:[%s14637_s1 + $0x450] sm:$0xff] }
  0x62   :  { %6718 = vmatpush.bf16.msrb.mxu0 %v11160_v48  ;;  %6687 = vmatmul.bf16.vlgmr.msra.gmra.mxu1 %v128_v58  ;;  %v11188_v48 = vld [vmem:[%s14637_s1 + $0x418] sm:$0xff]  ;;  %v11203_v54 = vld [vmem:[%s14637_s1 + $0x490] sm:$0xff]  ;;  %v11202_v58 = vld [vmem:[%s14637_s1 + $0x488] sm:$0xff] }
  0x63   :  { %6731 = vmatpush.bf16.msrb.mxu1 %v11168_v50  ;;  %6700 = vmatmul.bf16.vlgmr.msra.gmra.mxu2 %v129_v56  ;;  %v11204_v50 = vld [vmem:[%s14637_s1 + $0x498] sm:$0xff]  ;;  %v11186_v56 = vld [vmem:[%s14637_s1 + $0x408] sm:$0xff] }
  0x64   :  { %6744 = vmatpush.bf16.msrb.mxu2 %v11176_v51  ;;  %6713 = vmatmul.bf16.vlgmr.msra.gmra.mxu3 %v130_v60  ;;  %v11212_v51 = vld [vmem:[%s14637_s1 + $0x4d8] sm:$0xff]  ;;  %v11185_v60 = vld [vmem:[%s14637_s1 + $0x400] sm:$0xff] }
  0x65   :  { %6757 = vmatpush.bf16.msrb.mxu3 %v11184_v57  ;;  %v11194_v57 = vld [vmem:[%s14637_s1 + $0x448] sm:$0xff] }
  0x66   :  { %6719 = vmatpush.bf16.msrb.mxu0 %v11159_v59  ;;  %v11210_v59 = vld [vmem:[%s14637_s1 + $0x4c8] sm:$0xff] }
  0x67   :  { %6732 = vmatpush.bf16.msrb.mxu1 %v11167_v61  ;;  %v11193_v61 = vld [vmem:[%s14637_s1 + $0x440] sm:$0xff] }
  0x68   :  { %6745 = vmatpush.bf16.msrb.mxu2 %v11175_v62  ;;  %v11201_v62 = vld [vmem:[%s14637_s1 + $0x480] sm:$0xff] }
  0x69   :  { %6758 = vmatpush.bf16.msrb.mxu3 %v11183_v63  ;;  %v36_v63 = vld [vmem:[%s14638_s0 + $0x80] sm:$0xff] }
  0x6a   :  { %6720 = vmatpush.bf16.msrb.mxu0 %v11158_v0  ;;  %v38_v0 = vld [vmem:[%s14638_s0 + $0x90] sm:$0xff] }
  0x6b   :  { %6733 = vmatpush.bf16.msrb.mxu1 %v11166_v1  ;;  %v11224_v1 = vld [vmem:[%s14637_s1 + $0x538] sm:$0xff] }
  0x6c   :  { %6746 = vmatpush.bf16.msrb.mxu2 %v11174_v2  ;;  %v11232_v2 = vld [vmem:[%s14637_s1 + $0x578] sm:$0xff] }
  0x6d   :  { %6759 = vmatpush.bf16.msrb.mxu3 %v11182_v3  ;;  %v37_v3 = vld [vmem:[%s14638_s0 + $0x88] sm:$0xff] }
  0x6e   :  { %6721 = vmatpush.bf16.msrb.mxu0 %v11157_v4  ;;  %v11240_v4 = vld [vmem:[%s14637_s1 + $0x5b8] sm:$0xff] }
  0x6f   :  { %6734 = vmatpush.bf16.msrb.mxu1 %v11165_v5  ;;  %v11209_v5 = vld [vmem:[%s14637_s1 + $0x4c0] sm:$0xff] }
  0x70   :  { %6747 = vmatpush.bf16.msrb.mxu2 %v11173_v6  ;;  %v39_v6 = vld [vmem:[%s14638_s0 + $0x98] sm:$0xff] }
  0x71   :  { %6760 = vmatpush.bf16.msrb.mxu3 %v11181_v7  ;;  %v135_v7 = vpack.c.bf16 %v36_v63, %v36_v63 }
  0x72   :  { %6722 = vmatpush.bf16.msrb.mxu0 %v11156_v8  ;;  %v137_v8 = vpack.c.bf16 %v38_v0, %v38_v0 }
  0x73   :  { %6735 = vmatpush.bf16.msrb.mxu1 %v11164_v9  ;;  %v11248_v9 = vld [vmem:[%s14637_s1 + $0x5f8] sm:$0xff] }
  0x74   :  { %6748 = vmatpush.bf16.msrb.mxu2 %v11172_v10  ;;  %v136_v10 = vpack.c.bf16 %v37_v3, %v37_v3  ;;  %v11271_v3 = vld [vmem:[%s14637_s1 + $0x6b0] sm:$0xff] }
  0x75   :  { %6761 = vmatpush.bf16.msrb.mxu3 %v11180_v11  ;;  %v138_v11 = vpack.c.bf16 %v39_v6, %v39_v6  ;;  %v11262_v6 = vld [vmem:[%s14637_s1 + $0x668] sm:$0xff] }
  0x76   :  { %6723 = vmatpush.bf16.msrb.mxu0 %v11155_v12  ;;  %v11223_v12 = vld [vmem:[%s14637_s1 + $0x530] sm:$0xff] }
  0x77   :  { %6736 = vmatpush.bf16.msrb.mxu1 %v11163_v13  ;;  %v11231_v13 = vld [vmem:[%s14637_s1 + $0x570] sm:$0xff] }
  0x78   :  { %6749 = vmatpush.bf16.msrb.mxu2 %v11171_v14  ;;  %v11239_v14 = vld [vmem:[%s14637_s1 + $0x5b0] sm:$0xff] }
  0x79   :  { %6762 = vmatpush.bf16.msrb.mxu3 %v11179_v15  ;;  %v11247_v15 = vld [vmem:[%s14637_s1 + $0x5f0] sm:$0xff] }
  0x7a   :  { %6724 = vmatpush.bf16.msrb.mxu0 %v11154_v16  ;;  %v11222_v16 = vld [vmem:[%s14637_s1 + $0x528] sm:$0xff] }
  0x7b   :  { %6737 = vmatpush.bf16.msrb.mxu1 %v11162_v17  ;;  %v11230_v17 = vld [vmem:[%s14637_s1 + $0x568] sm:$0xff] }
  0x7c   :  { %6750 = vmatpush.bf16.msrb.mxu2 %v11170_v18  ;;  %v11238_v18 = vld [vmem:[%s14637_s1 + $0x5a8] sm:$0xff] }
  0x7d   :  { %6763 = vmatpush.bf16.msrb.mxu3 %v11178_v19  ;;  %v11848_v19 = vld [vmem:[%s14639_s2] ss:$0 sm:$0xff] }
  0x7e   :  { %6725 = vmatpush.bf16.msrb.mxu0 %v11153_v20  ;;  %v11246_v20 = vld [vmem:[%s14637_s1 + $0x5e8] sm:$0xff] }
  0x7f   :  { %6738 = vmatpush.bf16.msrb.mxu1 %v11161_v21  ;;  %v11221_v21 = vld [vmem:[%s14637_s1 + $0x520] sm:$0xff] }
  0x80   :  { %6751 = vmatpush.bf16.msrb.mxu2 %v11169_v22 }
  0x81   :  { %6764 = vmatpush.bf16.msrb.mxu3 %v11177_v29  ;;  %6726 = vmatmul.bf16.vlgmr.msrb.gmra.mxu0 %v131_v31  ;;  %v11220_v29 = vld [vmem:[%s14637_s1 + $0x518] sm:$0xff] }
  0x82   :  { %6770 = vmatpush.bf16.msra.mxu0 %v11192_v23  ;;  %6739 = vmatmul.bf16.vlgmr.msrb.gmra.mxu1 %v132_v34  ;;  %v11229_v23 = vld [vmem:[%s14637_s1 + $0x560] sm:$0xff]  ;;  %v11236_v31 = vld [vmem:[%s14637_s1 + $0x598] sm:$0xff]  ;;  %v11219_v34 = vld [vmem:[%s14637_s1 + $0x510] sm:$0xff] }
  0x83   :  { %6783 = vmatpush.bf16.msra.mxu1 %v11200_v25  ;;  %6752 = vmatmul.bf16.vlgmr.msrb.gmra.mxu2 %v133_v33 }
  0x84   :  { %6796 = vmatpush.bf16.msra.mxu2 %v11208_v28  ;;  %6765 = vmatmul.bf16.vlgmr.msrb.gmra.mxu3 %v134_v35 }
  0x85   :  { %6809 = vmatpush.bf16.msra.mxu3 %v11216_v32  ;;  %v11244_v32 = vld [vmem:[%s14637_s1 + $0x5d8] sm:$0xff] }
  0x86   :  { %6771 = vmatpush.bf16.msra.mxu0 %v11191_v36 }
  0x87   :  { %6784 = vmatpush.bf16.msra.mxu1 %v11199_v37  ;;  %v11227_v37 = vld [vmem:[%s14637_s1 + $0x550] sm:$0xff] }
  0x88   :  { %6797 = vmatpush.bf16.msra.mxu2 %v11207_v38  ;;  %v11235_v38 = vld [vmem:[%s14637_s1 + $0x590] sm:$0xff] }
  0x89   :  { %6810 = vmatpush.bf16.msra.mxu3 %v11215_v39 }
  0x8a   :  { %6772 = vmatpush.bf16.msra.mxu0 %v11190_v40 }
  0x8b   :  { %6785 = vmatpush.bf16.msra.mxu1 %v11198_v41  ;;  %v11243_v41 = vld [vmem:[%s14637_s1 + $0x5d0] sm:$0xff] }
  0x8c   :  { %6798 = vmatpush.bf16.msra.mxu2 %v11206_v42 }
  0x8d   :  { %6811 = vmatpush.bf16.msra.mxu3 %v11214_v43  ;;  %v11218_v43 = vld [vmem:[%s14637_s1 + $0x508] sm:$0xff] }
  0x8e   :  { %6773 = vmatpush.bf16.msra.mxu0 %v11189_v44  ;;  %v11226_v44 = vld [vmem:[%s14637_s1 + $0x548] sm:$0xff] }
  0x8f   :  { %6786 = vmatpush.bf16.msra.mxu1 %v11197_v45  ;;  %v11234_v45 = vld [vmem:[%s14637_s1 + $0x588] sm:$0xff] }
  0x90   :  { %6799 = vmatpush.bf16.msra.mxu2 %v11205_v46  ;;  %v11242_v46 = vld [vmem:[%s14637_s1 + $0x5c8] sm:$0xff] }
  0x91   :  { %6812 = vmatpush.bf16.msra.mxu3 %v11213_v47 }
  0x92   :  { %6774 = vmatpush.bf16.msra.mxu0 %v11188_v48  ;;  %v11217_v48 = vld [vmem:[%s14637_s1 + $0x500] sm:$0xff] }
  0x93   :  { %6787 = vmatpush.bf16.msra.mxu1 %v11196_v49  ;;  %v11225_v49 = vld [vmem:[%s14637_s1 + $0x540] sm:$0xff] }
  0x94   :  { %6800 = vmatpush.bf16.msra.mxu2 %v11204_v50  ;;  %v11233_v50 = vld [vmem:[%s14637_s1 + $0x580] sm:$0xff] }
  0x95   :  { %6813 = vmatpush.bf16.msra.mxu3 %v11212_v51  ;;  %v40_v51 = vld [vmem:[%s14638_s0 + $0xa0] sm:$0xff] }
  0x96   :  { %6775 = vmatpush.bf16.msra.mxu0 %v11187_v52  ;;  %v42_v52 = vld [vmem:[%s14638_s0 + $0xb0] sm:$0xff] }
  0x97   :  { %6788 = vmatpush.bf16.msra.mxu1 %v11195_v53  ;;  %v11256_v53 = vld [vmem:[%s14637_s1 + $0x638] sm:$0xff] }
  0x98   :  { %6801 = vmatpush.bf16.msra.mxu2 %v11203_v54  ;;  %v11264_v54 = vld [vmem:[%s14637_s1 + $0x678] sm:$0xff] }
  0x99   :  { %6814 = vmatpush.bf16.msra.mxu3 %v11211_v55  ;;  %v41_v55 = vld [vmem:[%s14638_s0 + $0xa8] sm:$0xff] }
  0x9a   :  { %6776 = vmatpush.bf16.msra.mxu0 %v11186_v56  ;;  %v140_v63 = vpack.c.bf16 %v41_v55, %v41_v55  ;;  %v11303_v55 = vld [vmem:[%s14637_s1 + $0x7b0] sm:$0xff] }
  0x9b   :  { %6789 = vmatpush.bf16.msra.mxu1 %v11194_v57  ;;  %v11272_v57 = vld [vmem:[%s14637_s1 + $0x6b8] sm:$0xff] }
  0x9c   :  { %6802 = vmatpush.bf16.msra.mxu2 %v11202_v58  ;;  %v11241_v58 = vld [vmem:[%s14637_s1 + $0x5c0] sm:$0xff] }
  0x9d   :  { %6815 = vmatpush.bf16.msra.mxu3 %v11210_v59  ;;  %v43_v59 = vld [vmem:[%s14638_s0 + $0xb8] sm:$0xff] }
  0x9e   :  { %6777 = vmatpush.bf16.msra.mxu0 %v11185_v60  ;;  %v6571_v22 = vpop.f32.mrf.mxu0  ;;  %v139_v60 = vpack.c.bf16 %v40_v51, %v40_v51  ;;  %v142_v0 = vpack.c.bf16 %v43_v59, %v43_v59  ;;  %v11302_v59 = vld [vmem:[%s14637_s1 + $0x7a8] sm:$0xff] }
  0x9f   :  { %6790 = vmatpush.bf16.msra.mxu1 %v11193_v61  ;;  %v6572_v25 = vadd.f32 %v11848_v19, %v6571_v22  ;;  %v6584_v26 = vpop.f32.mrf.mxu1  ;;  %v141_v61 = vpack.c.bf16 %v42_v52, %v42_v52  ;;  %v11268_v19 = vld [vmem:[%s14637_s1 + $0x698] sm:$0xff] }
  0xa0   :  { %6803 = vmatpush.bf16.msra.mxu2 %v11201_v62  ;;  %v11280_v62 = vld [vmem:[%s14637_s1 + $0x6f8] sm:$0xff] }
  0xa1   :  { %6816 = vmatpush.bf16.msra.mxu3 %v11209_v5  ;;  %6778 = vmatmul.bf16.vlgmr.msra.gmra.mxu0 %v135_v7  ;;  %v6585_v28 = vadd.f32 %v6584_v26, %v6572_v25  ;;  %v11254_v5 = vld [vmem:[%s14637_s1 + $0x628] sm:$0xff]  ;;  %v11267_v25 = vld [vmem:[%s14637_s1 + $0x690] sm:$0xff] }
  0xa2   :  { %6822 = vmatpush.bf16.msrb.mxu0 %v11224_v1  ;;  %6791 = vmatmul.bf16.vlgmr.msra.gmra.mxu1 %v136_v10  ;;  %v11255_v1 = vld [vmem:[%s14637_s1 + $0x630] sm:$0xff]  ;;  %v11270_v7 = vld [vmem:[%s14637_s1 + $0x6a8] sm:$0xff]  ;;  %v11261_v10 = vld [vmem:[%s14637_s1 + $0x660] sm:$0xff] }
  0xa3   :  { %6835 = vmatpush.bf16.msrb.mxu1 %v11232_v2  ;;  %6804 = vmatmul.bf16.vlgmr.msra.gmra.mxu2 %v137_v8  ;;  %v11263_v2 = vld [vmem:[%s14637_s1 + $0x670] sm:$0xff]  ;;  %v11278_v8 = vld [vmem:[%s14637_s1 + $0x6e8] sm:$0xff] }
  0xa4   :  { %6848 = vmatpush.bf16.msrb.mxu2 %v11240_v4  ;;  %6817 = vmatmul.bf16.vlgmr.msra.gmra.mxu3 %v138_v11  ;;  %v11279_v4 = vld [vmem:[%s14637_s1 + $0x6f0] sm:$0xff]  ;;  %v11269_v11 = vld [vmem:[%s14637_s1 + $0x6a0] sm:$0xff] }
  0xa5   :  { %6861 = vmatpush.bf16.msrb.mxu3 %v11248_v9  ;;  %v11253_v9 = vld [vmem:[%s14637_s1 + $0x620] sm:$0xff] }
  0xa6   :  { %6823 = vmatpush.bf16.msrb.mxu0 %v11223_v12  ;;  %v6597_v33 = vpop.f32.mrf.mxu2  ;;  %v6573_v36 = vpop.f32.mrf.mxu0 }
  0xa7   :  { %6836 = vmatpush.bf16.msrb.mxu1 %v11231_v13  ;;  %v6598_v35 = vadd.f32 %v6597_v33, %v6585_v28  ;;  %v6610_v39 = vpop.f32.mrf.mxu3  ;;  %v6586_v40 = vpop.f32.mrf.mxu1  ;;  %v11266_v33 = vld [vmem:[%s14637_s1 + $0x688] sm:$0xff]  ;;  %v11249_v36 = vld [vmem:[%s14637_s1 + $0x600] sm:$0xff] }
  0xa8   :  { %6849 = vmatpush.bf16.msrb.mxu2 %v11239_v14  ;;  %v46_v40 = vld [vmem:[%s14638_s0 + $0xd0] sm:$0xff] }
  0xa9   :  { %6862 = vmatpush.bf16.msrb.mxu3 %v11247_v15  ;;  %v12495_v42 = vadd.f32 %v6610_v39, %v6598_v35  ;;  %v11277_v15 = vld [vmem:[%s14637_s1 + $0x6e0] sm:$0xff]  ;;  %v11274_v35 = vld [vmem:[%s14637_s1 + $0x6c8] sm:$0xff] }
  0xaa   :  { %6824 = vmatpush.bf16.msrb.mxu0 %v11222_v16  ;;  %v11252_v16 = vld [vmem:[%s14637_s1 + $0x618] sm:$0xff]  ;;  %v44_v39 = vld [vmem:[%s14638_s0 + $0xc0] sm:$0xff] }
  0xab   :  { %6837 = vmatpush.bf16.msrb.mxu1 %v11230_v17 }
  0xac   :  { %6850 = vmatpush.bf16.msrb.mxu2 %v11238_v18  ;;  %v11260_v18 = vld [vmem:[%s14637_s1 + $0x658] sm:$0xff] }
  0xad   :  { %6863 = vmatpush.bf16.msrb.mxu3 %v11246_v20 }
  0xae   :  { %6825 = vmatpush.bf16.msrb.mxu0 %v11221_v21  ;;  %v6599_v47 = vpop.f32.mrf.mxu2  ;;  %v11276_v21 = vld [vmem:[%s14637_s1 + $0x6d8] sm:$0xff] }
  0xaf   :  { %6838 = vmatpush.bf16.msrb.mxu1 %v11229_v23  ;;  %v6612_v56 = vpop.f32.mrf.mxu3  ;;  %v11251_v23 = vld [vmem:[%s14637_s1 + $0x610] sm:$0xff]  ;;  %v47_v47 = vld [vmem:[%s14638_s0 + $0xd8] sm:$0xff] }
  0xb0   :  { %6851 = vmatpush.bf16.msrb.mxu2 %v11237_v24  ;;  %v11259_v24 = vld [vmem:[%s14637_s1 + $0x650] sm:$0xff]  ;;  %v146_v52 = vpack.c.bf16 %v47_v47, %v47_v47  ;;  %v11334_v47 = vld [vmem:[%s14637_s1 + $0x8a8] sm:$0xff] }
  0xb1   :  { %6864 = vmatpush.bf16.msrb.mxu3 %v11245_v27  ;;  %v11311_v56 = vld [vmem:[%s14637_s1 + $0x7f0] sm:$0xff] }
  0xb2   :  { %6826 = vmatpush.bf16.msrb.mxu0 %v11220_v29 }
  0xb3   :  { %6839 = vmatpush.bf16.msrb.mxu1 %v11228_v30  ;;  %v11275_v30 = vld [vmem:[%s14637_s1 + $0x6d0] sm:$0xff] }
  0xb4   :  { %6852 = vmatpush.bf16.msrb.mxu2 %v11236_v31  ;;  %v11250_v31 = vld [vmem:[%s14637_s1 + $0x608] sm:$0xff] }
  0xb5   :  { %6865 = vmatpush.bf16.msrb.mxu3 %v11244_v32  ;;  %v11258_v32 = vld [vmem:[%s14637_s1 + $0x648] sm:$0xff] }
  0xb6   :  { %6827 = vmatpush.bf16.msrb.mxu0 %v11219_v34 }
  0xb7   :  { %6840 = vmatpush.bf16.msrb.mxu1 %v11227_v37  ;;  %v11257_v37 = vld [vmem:[%s14637_s1 + $0x640] sm:$0xff] }
  0xb8   :  { %6853 = vmatpush.bf16.msrb.mxu2 %v11235_v38  ;;  %v11265_v38 = vld [vmem:[%s14637_s1 + $0x680] sm:$0xff] }
  0xb9   :  { %6866 = vmatpush.bf16.msrb.mxu3 %v11243_v41 }
  0xba   :  { %6828 = vmatpush.bf16.msrb.mxu0 %v11218_v43  ;;  %v11296_v43 = vld [vmem:[%s14637_s1 + $0x778] sm:$0xff] }
  0xbb   :  { %6841 = vmatpush.bf16.msrb.mxu1 %v11226_v44  ;;  %v45_v44 = vld [vmem:[%s14638_s0 + $0xc8] sm:$0xff] }
  0xbc   :  { %6854 = vmatpush.bf16.msrb.mxu2 %v11234_v45  ;;  %v11304_v45 = vld [vmem:[%s14637_s1 + $0x7b8] sm:$0xff]  ;;  %v144_v51 = vpack.c.bf16 %v45_v44, %v45_v44  ;;  %v11343_v44 = vld [vmem:[%s14637_s1 + $0x8f0] sm:$0xff] }
  0xbd   :  { %6867 = vmatpush.bf16.msrb.mxu3 %v11242_v46  ;;  %v11273_v46 = vld [vmem:[%s14637_s1 + $0x6c0] sm:$0xff] }
  0xbe   :  { %6829 = vmatpush.bf16.msrb.mxu0 %v11217_v48  ;;  %v6623_v12 = vpop.f32.mrf.mxu0  ;;  %v143_v48 = vpack.c.bf16 %v44_v39, %v44_v39 }
  0xbf   :  { %6842 = vmatpush.bf16.msrb.mxu1 %v11225_v49  ;;  %v6636_v13 = vpop.f32.mrf.mxu1  ;;  %v6624_v14 = vadd.f32 %v6623_v12, %v12495_v42  ;;  %v11288_v42 = vld [vmem:[%s14637_s1 + $0x738] sm:$0xff]  ;;  %v145_v49 = vpack.c.bf16 %v46_v40, %v46_v40 }
  0xc0   :  { %6855 = vmatpush.bf16.msrb.mxu2 %v11233_v50  ;;  %v11312_v50 = vld [vmem:[%s14637_s1 + $0x7f8] sm:$0xff] }
  0xc1   :  { %6868 = vmatpush.bf16.msrb.mxu3 %v11241_v58  ;;  %6830 = vmatmul.bf16.vlgmr.msrb.gmra.mxu0 %v139_v60  ;;  %v6637_v17 = vadd.f32 %v6636_v13, %v6624_v14  ;;  %v11294_v58 = vld [vmem:[%s14637_s1 + $0x768] sm:$0xff]  ;;  %v11283_v13 = vld [vmem:[%s14637_s1 + $0x710] sm:$0xff] }
  0xc2   :  { %6874 = vmatpush.bf16.msra.mxu0 %v11256_v53  ;;  %6843 = vmatmul.bf16.vlgmr.msrb.gmra.mxu1 %v140_v63  ;;  %v11287_v53 = vld [vmem:[%s14637_s1 + $0x730] sm:$0xff]  ;;  %v11310_v60 = vld [vmem:[%s14637_s1 + $0x7e8] sm:$0xff]  ;;  %v11285_v63 = vld [vmem:[%s14637_s1 + $0x720] sm:$0xff] }
  0xc3   :  { %6887 = vmatpush.bf16.msra.mxu1 %v11264_v54  ;;  %6856 = vmatmul.bf16.vlgmr.msrb.gmra.mxu2 %v141_v61  ;;  %v11295_v54 = vld [vmem:[%s14637_s1 + $0x770] sm:$0xff] }
  0xc4   :  { %6900 = vmatpush.bf16.msra.mxu2 %v11272_v57  ;;  %6869 = vmatmul.bf16.vlgmr.msrb.gmra.mxu3 %v142_v0  ;;  %v11286_v57 = vld [vmem:[%s14637_s1 + $0x728] sm:$0xff]  ;;  %v11293_v0 = vld [vmem:[%s14637_s1 + $0x760] sm:$0xff] }
  0xc5   :  { %6913 = vmatpush.bf16.msra.mxu3 %v11280_v62 }
  0xc6   :  { %6875 = vmatpush.bf16.msra.mxu0 %v11255_v1  ;;  %v6649_v20 = vpop.f32.mrf.mxu2  ;;  %v6625_v27 = vpop.f32.mrf.mxu0  ;;  %v11301_v1 = vld [vmem:[%s14637_s1 + $0x7a0] sm:$0xff] }
  0xc7   :  { %6888 = vmatpush.bf16.msra.mxu1 %v11263_v2  ;;  %v6650_v22 = vadd.f32 %v6649_v20, %v6637_v17  ;;  %v6662_v26 = vpop.f32.mrf.mxu3  ;;  %v6638_v29 = vpop.f32.mrf.mxu1  ;;  %v11290_v20 = vld [vmem:[%s14637_s1 + $0x748] sm:$0xff]  ;;  %v11297_v27 = vld [vmem:[%s14637_s1 + $0x780] sm:$0xff] }
  0xc8   :  { %6901 = vmatpush.bf16.msra.mxu2 %v11271_v3  ;;  %v50_v29 = vld [vmem:[%s14638_s0 + $0xf0] sm:$0xff] }
  0xc9   :  { %6914 = vmatpush.bf16.msra.mxu3 %v11279_v4  ;;  %v6663_v28 = vadd.f32 %v6662_v26, %v6650_v22  ;;  %v11309_v4 = vld [vmem:[%s14637_s1 + $0x7e0] sm:$0xff] }
  0xca   :  { %6876 = vmatpush.bf16.msra.mxu0 %v11254_v5  ;;  %v11284_v5 = vld [vmem:[%s14637_s1 + $0x718] sm:$0xff] }
  0xcb   :  { %6889 = vmatpush.bf16.msra.mxu1 %v11262_v6  ;;  %v11292_v6 = vld [vmem:[%s14637_s1 + $0x758] sm:$0xff] }
  0xcc   :  { %6902 = vmatpush.bf16.msra.mxu2 %v11270_v7  ;;  %v11300_v7 = vld [vmem:[%s14637_s1 + $0x798] sm:$0xff] }
  0xcd   :  { %6915 = vmatpush.bf16.msra.mxu3 %v11278_v8 }
  0xce   :  { %6877 = vmatpush.bf16.msra.mxu0 %v11253_v9  ;;  %v6651_v34 = vpop.f32.mrf.mxu2 }
  0xcf   :  { %6890 = vmatpush.bf16.msra.mxu1 %v11261_v10  ;;  %v6664_v41 = vpop.f32.mrf.mxu3  ;;  %v11308_v10 = vld [vmem:[%s14637_s1 + $0x7d8] sm:$0xff]  ;;  %v11305_v34 = vld [vmem:[%s14637_s1 + $0x7c0] sm:$0xff] }
  0xd0   :  { %6903 = vmatpush.bf16.msra.mxu2 %v11269_v11  ;;  %v11319_v41 = vld [vmem:[%s14637_s1 + $0x830] sm:$0xff] }
  0xd1   :  { %6916 = vmatpush.bf16.msra.mxu3 %v11277_v15  ;;  %v11291_v15 = vld [vmem:[%s14637_s1 + $0x750] sm:$0xff] }
  0xd2   :  { %6878 = vmatpush.bf16.msra.mxu0 %v11252_v16  ;;  %v11299_v16 = vld [vmem:[%s14637_s1 + $0x790] sm:$0xff] }
  0xd3   :  { %6891 = vmatpush.bf16.msra.mxu1 %v11260_v18  ;;  %v11307_v18 = vld [vmem:[%s14637_s1 + $0x7d0] sm:$0xff] }
  0xd4   :  { %6904 = vmatpush.bf16.msra.mxu2 %v11268_v19  ;;  %v11282_v19 = vld [vmem:[%s14637_s1 + $0x708] sm:$0xff] }
  0xd5   :  { %6917 = vmatpush.bf16.msra.mxu3 %v11276_v21  ;;  %v11298_v21 = vld [vmem:[%s14637_s1 + $0x788] sm:$0xff] }
  0xd6   :  { %6879 = vmatpush.bf16.msra.mxu0 %v11251_v23  ;;  %v11306_v23 = vld [vmem:[%s14637_s1 + $0x7c8] sm:$0xff] }
  0xd7   :  { %6892 = vmatpush.bf16.msra.mxu1 %v11259_v24  ;;  %v11281_v24 = vld [vmem:[%s14637_s1 + $0x700] sm:$0xff] }
  0xd8   :  { %6905 = vmatpush.bf16.msra.mxu2 %v11267_v25  ;;  %v11289_v25 = vld [vmem:[%s14637_s1 + $0x740] sm:$0xff] }
  0xd9   :  { %6918 = vmatpush.bf16.msra.mxu3 %v11275_v30  ;;  %v11320_v30 = vld [vmem:[%s14637_s1 + $0x838] sm:$0xff] }
  0xda   :  { %6880 = vmatpush.bf16.msra.mxu0 %v11250_v31  ;;  %v11328_v31 = vld [vmem:[%s14637_s1 + $0x878] sm:$0xff] }
  0xdb   :  { %6893 = vmatpush.bf16.msra.mxu1 %v11258_v32  ;;  %v49_v32 = vld [vmem:[%s14638_s0 + $0xe8] sm:$0xff] }
  0xdc   :  { %6906 = vmatpush.bf16.msra.mxu2 %v11266_v33  ;;  %v11336_v33 = vld [vmem:[%s14637_s1 + $0x8b8] sm:$0xff]  ;;  %v148_v39 = vpack.c.bf16 %v49_v32, %v49_v32  ;;  %v11375_v32 = vld [vmem:[%s14637_s1 + $0x9f0] sm:$0xff] }
  0xdd   :  { %6919 = vmatpush.bf16.msra.mxu3 %v11274_v35  ;;  %v51_v35 = vld [vmem:[%s14638_s0 + $0xf8] sm:$0xff] }
  0xde   :  { %6881 = vmatpush.bf16.msra.mxu0 %v11249_v36  ;;  %v6675_v61 = vpop.f32.mrf.mxu0  ;;  %v150_v40 = vpack.c.bf16 %v51_v35, %v51_v35  ;;  %v11366_v35 = vld [vmem:[%s14637_s1 + $0x9a8] sm:$0xff] }
  0xdf   :  { %6894 = vmatpush.bf16.msra.mxu1 %v11257_v37  ;;  %v6676_v62 = vadd.f32 %v6675_v61, %v6663_v28  ;;  %v6688_v2 = vpop.f32.mrf.mxu1  ;;  %v48_v28 = vld [vmem:[%s14638_s0 + $0xe0] sm:$0xff]  ;;  %v149_v37 = vpack.c.bf16 %v50_v29, %v50_v29  ;;  %v11351_v29 = vld [vmem:[%s14637_s1 + $0x930] sm:$0xff] }
  0xe0   :  { %6907 = vmatpush.bf16.msra.mxu2 %v11265_v38  ;;  %v147_v36 = vpack.c.bf16 %v48_v28, %v48_v28  ;;  %v11344_v38 = vld [vmem:[%s14637_s1 + $0x8f8] sm:$0xff] }
  0xe1   :  { %6920 = vmatpush.bf16.msra.mxu3 %v11273_v46  ;;  %6882 = vmatmul.bf16.vlgmr.msra.gmra.mxu0 %v143_v48  ;;  %v6689_v3 = vadd.f32 %v6688_v2, %v6676_v62  ;;  %v11326_v46 = vld [vmem:[%s14637_s1 + $0x868] sm:$0xff]  ;;  %v11340_v62 = vld [vmem:[%s14637_s1 + $0x8d8] sm:$0xff] }
  0xe2   :  { %6926 = vmatpush.bf16.msrb.mxu0 %v11288_v42  ;;  %6895 = vmatmul.bf16.vlgmr.msra.gmra.mxu1 %v144_v51  ;;  %v11327_v42 = vld [vmem:[%s14637_s1 + $0x870] sm:$0xff]  ;;  %v11342_v48 = vld [vmem:[%s14637_s1 + $0x8e8] sm:$0xff]  ;;  %v11317_v51 = vld [vmem:[%s14637_s1 + $0x820] sm:$0xff] }
  0xe3   :  { %6939 = vmatpush.bf16.msrb.mxu1 %v11296_v43  ;;  %6908 = vmatmul.bf16.vlgmr.msra.gmra.mxu2 %v145_v49  ;;  %v11335_v43 = vld [vmem:[%s14637_s1 + $0x8b0] sm:$0xff] }
  0xe4   :  { %6952 = vmatpush.bf16.msrb.mxu2 %v11304_v45  ;;  %6921 = vmatmul.bf16.vlgmr.msra.gmra.mxu3 %v146_v52  ;;  %v11318_v45 = vld [vmem:[%s14637_s1 + $0x828] sm:$0xff] }
  0xe5   :  { %6965 = vmatpush.bf16.msrb.mxu3 %v11312_v50 }
  0xe6   :  { %6927 = vmatpush.bf16.msrb.mxu0 %v11287_v53  ;;  %v6701_v8 = vpop.f32.mrf.mxu2  ;;  %v6677_v11 = vpop.f32.mrf.mxu0  ;;  %v11325_v53 = vld [vmem:[%s14637_s1 + $0x860] sm:$0xff] }
  0xe7   :  { %6940 = vmatpush.bf16.msrb.mxu1 %v11295_v54  ;;  %v6702_v9 = vadd.f32 %v6701_v8, %v6689_v3  ;;  %v6714_v12 = vpop.f32.mrf.mxu3  ;;  %v6690_v17 = vpop.f32.mrf.mxu1  ;;  %v11333_v54 = vld [vmem:[%s14637_s1 + $0x8a0] sm:$0xff]  ;;  %v11322_v8 = vld [vmem:[%s14637_s1 + $0x848] sm:$0xff] }
  0xe8   :  { %6953 = vmatpush.bf16.msrb.mxu2 %v11303_v55  ;;  %v11338_v11 = vld [vmem:[%s14637_s1 + $0x8c8] sm:$0xff]  ;;  %v54_v17 = vld [vmem:[%s14638_s0 + $0x110] sm:$0xff] }
  0xe9   :  { %6966 = vmatpush.bf16.msrb.mxu3 %v11311_v56  ;;  %v6715_v14 = vadd.f32 %v6714_v12, %v6702_v9  ;;  %v11341_v56 = vld [vmem:[%s14637_s1 + $0x8e0] sm:$0xff]  ;;  %v11330_v9 = vld [vmem:[%s14637_s1 + $0x888] sm:$0xff] }
  0xea   :  { %6928 = vmatpush.bf16.msrb.mxu0 %v11286_v57  ;;  %v11316_v57 = vld [vmem:[%s14637_s1 + $0x818] sm:$0xff] }
  0xeb   :  { %6941 = vmatpush.bf16.msrb.mxu1 %v11294_v58  ;;  %v11324_v58 = vld [vmem:[%s14637_s1 + $0x858] sm:$0xff] }
  0xec   :  { %6954 = vmatpush.bf16.msrb.mxu2 %v11302_v59  ;;  %v11332_v59 = vld [vmem:[%s14637_s1 + $0x898] sm:$0xff] }
  0xed   :  { %6967 = vmatpush.bf16.msrb.mxu3 %v11310_v60 }
  0xee   :  { %6929 = vmatpush.bf16.msrb.mxu0 %v11285_v63  ;;  %v6703_v22 = vpop.f32.mrf.mxu2 }
  0xef   :  { %6942 = vmatpush.bf16.msrb.mxu1 %v11293_v0  ;;  %v6716_v26 = vpop.f32.mrf.mxu3  ;;  %v11337_v22 = vld [vmem:[%s14637_s1 + $0x8c0] sm:$0xff] }
  0xf0   :  { %6955 = vmatpush.bf16.msrb.mxu2 %v11301_v1  ;;  %v11315_v1 = vld [vmem:[%s14637_s1 + $0x810] sm:$0xff]  ;;  %v11376_v26 = vld [vmem:[%s14637_s1 + $0x9f8] sm:$0xff] }
  0xf1   :  { %6968 = vmatpush.bf16.msrb.mxu3 %v11309_v4  ;;  %v11323_v4 = vld [vmem:[%s14637_s1 + $0x850] sm:$0xff] }
  0xf2   :  { %6930 = vmatpush.bf16.msrb.mxu0 %v11284_v5  ;;  %v11331_v5 = vld [vmem:[%s14637_s1 + $0x890] sm:$0xff] }
  0xf3   :  { %6943 = vmatpush.bf16.msrb.mxu1 %v11292_v6  ;;  %v11339_v6 = vld [vmem:[%s14637_s1 + $0x8d0] sm:$0xff] }
  0xf4   :  { %6956 = vmatpush.bf16.msrb.mxu2 %v11300_v7  ;;  %v11314_v7 = vld [vmem:[%s14637_s1 + $0x808] sm:$0xff] }
  0xf5   :  { %6969 = vmatpush.bf16.msrb.mxu3 %v11308_v10 }
  0xf6   :  { %6931 = vmatpush.bf16.msrb.mxu0 %v11283_v13  ;;  %v11313_v13 = vld [vmem:[%s14637_s1 + $0x800] sm:$0xff] }
  0xf7   :  { %6944 = vmatpush.bf16.msrb.mxu1 %v11291_v15  ;;  %v11329_v15 = vld [vmem:[%s14637_s1 + $0x880] sm:$0xff] }
  0xf8   :  { %6957 = vmatpush.bf16.msrb.mxu2 %v11299_v16  ;;  %v52_v16 = vld [vmem:[%s14638_s0 + $0x100] sm:$0xff] }
  0xf9   :  { %6970 = vmatpush.bf16.msrb.mxu3 %v11307_v18  ;;  %v11352_v18 = vld [vmem:[%s14637_s1 + $0x938] sm:$0xff] }
  0xfa   :  { %6932 = vmatpush.bf16.msrb.mxu0 %v11282_v19  ;;  %v11360_v19 = vld [vmem:[%s14637_s1 + $0x978] sm:$0xff] }
  0xfb   :  { %6945 = vmatpush.bf16.msrb.mxu1 %v11290_v20  ;;  %v53_v20 = vld [vmem:[%s14638_s0 + $0x108] sm:$0xff] }
  0xfc   :  { %6958 = vmatpush.bf16.msrb.mxu2 %v11298_v21  ;;  %v11368_v21 = vld [vmem:[%s14637_s1 + $0x9b8] sm:$0xff] }
  0xfd   :  { %6971 = vmatpush.bf16.msrb.mxu3 %v11306_v23  ;;  %v55_v23 = vld [vmem:[%s14638_s0 + $0x118] sm:$0xff] }
  0xfe   :  { %6933 = vmatpush.bf16.msrb.mxu0 %v11281_v24  ;;  %v6727_v49 = vpop.f32.mrf.mxu0  ;;  %v151_v24 = vpack.c.bf16 %v52_v16, %v52_v16  ;;  %v154_v28 = vpack.c.bf16 %v55_v23, %v55_v23  ;;  %v11398_v23 = vld [vmem:[%s14637_s1 + $0xaa8] sm:$0xff] }
  0xff   :  { %6946 = vmatpush.bf16.msrb.mxu1 %v11289_v25  ;;  %v6728_v50 = vadd.f32 %v6727_v49, %v6715_v14  ;;  %v6740_v52 = vpop.f32.mrf.mxu1  ;;  %v11321_v14 = vld [vmem:[%s14637_s1 + $0x840] sm:$0xff]  ;;  %v153_v25 = vpack.c.bf16 %v54_v17, %v54_v17  ;;  %v11383_v17 = vld [vmem:[%s14637_s1 + $0xa30] sm:$0xff] }
 0x100   :  { %6959 = vmatpush.bf16.msrb.mxu2 %v11297_v27  ;;  %v152_v27 = vpack.c.bf16 %v53_v20, %v53_v20  ;;  %v11407_v20 = vld [vmem:[%s14637_s1 + $0xaf0] sm:$0xff] }
 0x101   :  { %6972 = vmatpush.bf16.msrb.mxu3 %v11305_v34  ;;  %6934 = vmatmul.bf16.vlgmr.msrb.gmra.mxu0 %v147_v36  ;;  %v6741_v55 = vadd.f32 %v6740_v52, %v6728_v50  ;;  %v11358_v34 = vld [vmem:[%s14637_s1 + $0x968] sm:$0xff]  ;;  %v11372_v50 = vld [vmem:[%s14637_s1 + $0x9d8] sm:$0xff] }
 0x102   :  { %6978 = vmatpush.bf16.msra.mxu0 %v11320_v30  ;;  %6947 = vmatmul.bf16.vlgmr.msrb.gmra.mxu1 %v148_v39  ;;  %v11359_v30 = vld [vmem:[%s14637_s1 + $0x970] sm:$0xff]  ;;  %v11374_v36 = vld [vmem:[%s14637_s1 + $0x9e8] sm:$0xff]  ;;  %v11349_v39 = vld [vmem:[%s14637_s1 + $0x920] sm:$0xff] }
 0x103   :  { %6991 = vmatpush.bf16.msra.mxu1 %v11328_v31  ;;  %6960 = vmatmul.bf16.vlgmr.msrb.gmra.mxu2 %v149_v37  ;;  %v11367_v31 = vld [vmem:[%s14637_s1 + $0x9b0] sm:$0xff] }
 0x104   :  { %7004 = vmatpush.bf16.msra.mxu2 %v11336_v33  ;;  %6973 = vmatmul.bf16.vlgmr.msrb.gmra.mxu3 %v150_v40  ;;  %v11350_v33 = vld [vmem:[%s14637_s1 + $0x928] sm:$0xff] }
 0x105   :  { %7017 = vmatpush.bf16.msra.mxu3 %v11344_v38 }
 0x106   :  { %6979 = vmatpush.bf16.msra.mxu0 %v11319_v41  ;;  %v6753_v60 = vpop.f32.mrf.mxu2  ;;  %v6729_v0 = vpop.f32.mrf.mxu0  ;;  %v11357_v41 = vld [vmem:[%s14637_s1 + $0x960] sm:$0xff] }
 0x107   :  { %6992 = vmatpush.bf16.msra.mxu1 %v11327_v42  ;;  %v6754_v61 = vadd.f32 %v6753_v60, %v6741_v55  ;;  %v6766_v63 = vpop.f32.mrf.mxu3  ;;  %v6742_v2 = vpop.f32.mrf.mxu1  ;;  %v11365_v42 = vld [vmem:[%s14637_s1 + $0x9a0] sm:$0xff]  ;;  %v11354_v60 = vld [vmem:[%s14637_s1 + $0x948] sm:$0xff] }
 0x108   :  { %7005 = vmatpush.bf16.msra.mxu2 %v11335_v43  ;;  %v11353_v2 = vld [vmem:[%s14637_s1 + $0x940] sm:$0xff] }
 0x109   :  { %7018 = vmatpush.bf16.msra.mxu3 %v11343_v44  ;;  %v6767_v3 = vadd.f32 %v6766_v63, %v6754_v61  ;;  %v11373_v44 = vld [vmem:[%s14637_s1 + $0x9e0] sm:$0xff]  ;;  %v11362_v61 = vld [vmem:[%s14637_s1 + $0x988] sm:$0xff] }
 0x10a   :  { %6980 = vmatpush.bf16.msra.mxu0 %v11318_v45  ;;  %v11348_v45 = vld [vmem:[%s14637_s1 + $0x918] sm:$0xff]  ;;  %v11370_v63 = vld [vmem:[%s14637_s1 + $0x9c8] sm:$0xff] }
 0x10b   :  { %6993 = vmatpush.bf16.msra.mxu1 %v11326_v46  ;;  %v11356_v46 = vld [vmem:[%s14637_s1 + $0x958] sm:$0xff] }
 0x10c   :  { %7006 = vmatpush.bf16.msra.mxu2 %v11334_v47  ;;  %v11364_v47 = vld [vmem:[%s14637_s1 + $0x998] sm:$0xff] }
 0x10d   :  { %7019 = vmatpush.bf16.msra.mxu3 %v11342_v48 }
 0x10e   :  { %6981 = vmatpush.bf16.msra.mxu0 %v11317_v51  ;;  %v6755_v10 = vpop.f32.mrf.mxu2 }
 0x10f   :  { %6994 = vmatpush.bf16.msra.mxu1 %v11325_v53  ;;  %v6768_v12 = vpop.f32.mrf.mxu3  ;;  %v11369_v10 = vld [vmem:[%s14637_s1 + $0x9c0] sm:$0xff] }
 0x110   :  { %7007 = vmatpush.bf16.msra.mxu2 %v11333_v54  ;;  %v11347_v54 = vld [vmem:[%s14637_s1 + $0x910] sm:$0xff] }
 0x111   :  { %7020 = vmatpush.bf16.msra.mxu3 %v11341_v56  ;;  %v11355_v56 = vld [vmem:[%s14637_s1 + $0x950] sm:$0xff] }
 0x112   :  { %6982 = vmatpush.bf16.msra.mxu0 %v11316_v57  ;;  %v11363_v57 = vld [vmem:[%s14637_s1 + $0x990] sm:$0xff] }
 0x113   :  { %6995 = vmatpush.bf16.msra.mxu1 %v11324_v58  ;;  %v11371_v58 = vld [vmem:[%s14637_s1 + $0x9d0] sm:$0xff] }
 0x114   :  { %7008 = vmatpush.bf16.msra.mxu2 %v11332_v59  ;;  %v11346_v59 = vld [vmem:[%s14637_s1 + $0x908] sm:$0xff] }
 0x115   :  { %7021 = vmatpush.bf16.msra.mxu3 %v11340_v62 }
 0x116   :  { %6983 = vmatpush.bf16.msra.mxu0 %v11315_v1  ;;  %v11345_v1 = vld [vmem:[%s14637_s1 + $0x900] sm:$0xff] }
 0x117   :  { %6996 = vmatpush.bf16.msra.mxu1 %v11323_v4  ;;  %v56_v4 = vld [vmem:[%s14638_s0 + $0x120] sm:$0xff] }
 0x118   :  { %7009 = vmatpush.bf16.msra.mxu2 %v11331_v5  ;;  %v58_v5 = vld [vmem:[%s14638_s0 + $0x130] sm:$0xff]  ;;  %v155_v12 = vpack.c.bf16 %v56_v4, %v56_v4 }
 0x119   :  { %7022 = vmatpush.bf16.msra.mxu3 %v11339_v6  ;;  %v11384_v6 = vld [vmem:[%s14637_s1 + $0xa38] sm:$0xff] }
 0x11a   :  { %6984 = vmatpush.bf16.msra.mxu0 %v11314_v7  ;;  %v11392_v7 = vld [vmem:[%s14637_s1 + $0xa78] sm:$0xff] }
 0x11b   :  { %6997 = vmatpush.bf16.msra.mxu1 %v11322_v8  ;;  %v57_v8 = vld [vmem:[%s14638_s0 + $0x128] sm:$0xff] }
 0x11c   :  { %7010 = vmatpush.bf16.msra.mxu2 %v11330_v9  ;;  %v11400_v9 = vld [vmem:[%s14637_s1 + $0xab8] sm:$0xff] }
 0x11d   :  { %7023 = vmatpush.bf16.msra.mxu3 %v11338_v11  ;;  %v59_v11 = vld [vmem:[%s14638_s0 + $0x138] sm:$0xff] }
 0x11e   :  { %6985 = vmatpush.bf16.msra.mxu0 %v11313_v13  ;;  %v6779_v37 = vpop.f32.mrf.mxu0  ;;  %v157_v13 = vpack.c.bf16 %v58_v5, %v58_v5  ;;  %v158_v16 = vpack.c.bf16 %v59_v11, %v59_v11  ;;  %v11415_v5 = vld [vmem:[%s14637_s1 + $0xb30] sm:$0xff]  ;;  %v11430_v11 = vld [vmem:[%s14637_s1 + $0xba8] sm:$0xff] }
 0x11f   :  { %6998 = vmatpush.bf16.msra.mxu1 %v11321_v14  ;;  %v6780_v38 = vadd.f32 %v6779_v37, %v6767_v3  ;;  %v6792_v40 = vpop.f32.mrf.mxu1  ;;  %v11361_v3 = vld [vmem:[%s14637_s1 + $0x980] sm:$0xff]  ;;  %v11408_v14 = vld [vmem:[%s14637_s1 + $0xaf8] sm:$0xff] }
 0x120   :  { %7011 = vmatpush.bf16.msra.mxu2 %v11329_v15  ;;  %v156_v15 = vpack.c.bf16 %v57_v8, %v57_v8  ;;  %v11439_v8 = vld [vmem:[%s14637_s1 + $0xbf0] sm:$0xff] }
 0x121   :  { %7024 = vmatpush.bf16.msra.mxu3 %v11337_v22  ;;  %6986 = vmatmul.bf16.vlgmr.msra.gmra.mxu0 %v151_v24  ;;  %v6793_v43 = vadd.f32 %v6792_v40, %v6780_v38  ;;  %v11390_v22 = vld [vmem:[%s14637_s1 + $0xa68] sm:$0xff]  ;;  %v11404_v38 = vld [vmem:[%s14637_s1 + $0xad8] sm:$0xff] }
 0x122   :  { %7030 = vmatpush.bf16.msrb.mxu0 %v11352_v18  ;;  %6999 = vmatmul.bf16.vlgmr.msra.gmra.mxu1 %v152_v27  ;;  %v11391_v18 = vld [vmem:[%s14637_s1 + $0xa70] sm:$0xff]  ;;  %v11406_v24 = vld [vmem:[%s14637_s1 + $0xae8] sm:$0xff]  ;;  %v11381_v27 = vld [vmem:[%s14637_s1 + $0xa20] sm:$0xff] }
 0x123   :  { %7043 = vmatpush.bf16.msrb.mxu1 %v11360_v19  ;;  %7012 = vmatmul.bf16.vlgmr.msra.gmra.mxu2 %v153_v25  ;;  %v11399_v19 = vld [vmem:[%s14637_s1 + $0xab0] sm:$0xff] }
 0x124   :  { %7056 = vmatpush.bf16.msrb.mxu2 %v11368_v21  ;;  %7025 = vmatmul.bf16.vlgmr.msra.gmra.mxu3 %v154_v28  ;;  %v11382_v21 = vld [vmem:[%s14637_s1 + $0xa28] sm:$0xff] }
 0x125   :  { %7069 = vmatpush.bf16.msrb.mxu3 %v11376_v26 }
 0x126   :  { %7031 = vmatpush.bf16.msrb.mxu0 %v11351_v29  ;;  %v6805_v48 = vpop.f32.mrf.mxu2  ;;  %v6781_v52 = vpop.f32.mrf.mxu0  ;;  %v11389_v29 = vld [vmem:[%s14637_s1 + $0xa60] sm:$0xff] }
 0x127   :  { %7044 = vmatpush.bf16.msrb.mxu1 %v11359_v30  ;;  %v6806_v49 = vadd.f32 %v6805_v48, %v6793_v43  ;;  %v6818_v51 = vpop.f32.mrf.mxu3  ;;  %v6794_v55 = vpop.f32.mrf.mxu1  ;;  %v11397_v30 = vld [vmem:[%s14637_s1 + $0xaa0] sm:$0xff]  ;;  %v11386_v48 = vld [vmem:[%s14637_s1 + $0xa48] sm:$0xff] }
 0x128   :  { %7057 = vmatpush.bf16.msrb.mxu2 %v11367_v31  ;;  %v11393_v55 = vld [vmem:[%s14637_s1 + $0xa80] sm:$0xff] }
 0x129   :  { %7070 = vmatpush.bf16.msrb.mxu3 %v11375_v32  ;;  %v12918_v53 = vadd.f32 %v6818_v51, %v6806_v49  ;;  %v11405_v32 = vld [vmem:[%s14637_s1 + $0xae0] sm:$0xff]  ;;  %v11394_v49 = vld [vmem:[%s14637_s1 + $0xa88] sm:$0xff] }
 0x12a   :  { %7032 = vmatpush.bf16.msrb.mxu0 %v11350_v33  ;;  %v11380_v33 = vld [vmem:[%s14637_s1 + $0xa18] sm:$0xff]  ;;  %v11402_v51 = vld [vmem:[%s14637_s1 + $0xac8] sm:$0xff] }
 0x12b   :  { %7045 = vmatpush.bf16.msrb.mxu1 %v11358_v34  ;;  %v11388_v34 = vld [vmem:[%s14637_s1 + $0xa58] sm:$0xff] }
 0x12c   :  { %7058 = vmatpush.bf16.msrb.mxu2 %v11366_v35  ;;  %v11396_v35 = vld [vmem:[%s14637_s1 + $0xa98] sm:$0xff] }
 0x12d   :  { %7071 = vmatpush.bf16.msrb.mxu3 %v11374_v36 }
 0x12e   :  { %7033 = vmatpush.bf16.msrb.mxu0 %v11349_v39  ;;  %v6807_v62 = vpop.f32.mrf.mxu2 }
 0x12f   :  { %7046 = vmatpush.bf16.msrb.mxu1 %v11357_v41  ;;  %v6820_v0 = vpop.f32.mrf.mxu3  ;;  %v11401_v62 = vld [vmem:[%s14637_s1 + $0xac0] sm:$0xff] }
 0x130   :  { %7059 = vmatpush.bf16.msrb.mxu2 %v11365_v42  ;;  %v11379_v42 = vld [vmem:[%s14637_s1 + $0xa10] sm:$0xff] }
 0x131   :  { %7072 = vmatpush.bf16.msrb.mxu3 %v11373_v44  ;;  %v11387_v44 = vld [vmem:[%s14637_s1 + $0xa50] sm:$0xff] }
 0x132   :  { %7034 = vmatpush.bf16.msrb.mxu0 %v11348_v45  ;;  %v11395_v45 = vld [vmem:[%s14637_s1 + $0xa90] sm:$0xff] }
 0x133   :  { %7047 = vmatpush.bf16.msrb.mxu1 %v11356_v46  ;;  %v11403_v46 = vld [vmem:[%s14637_s1 + $0xad0] sm:$0xff] }
 0x134   :  { %7060 = vmatpush.bf16.msrb.mxu2 %v11364_v47  ;;  %v11378_v47 = vld [vmem:[%s14637_s1 + $0xa08] sm:$0xff] }
 0x135   :  { %7073 = vmatpush.bf16.msrb.mxu3 %v11372_v50 }
 0x136   :  { %7035 = vmatpush.bf16.msrb.mxu0 %v11347_v54  ;;  %v11385_v54 = vld [vmem:[%s14637_s1 + $0xa40] sm:$0xff] }
 0x137   :  { %7048 = vmatpush.bf16.msrb.mxu1 %v11355_v56  ;;  %v60_v56 = vld [vmem:[%s14638_s0 + $0x140] sm:$0xff] }
 0x138   :  { %7061 = vmatpush.bf16.msrb.mxu2 %v11363_v57  ;;  %v62_v57 = vld [vmem:[%s14638_s0 + $0x150] sm:$0xff]  ;;  %v159_v0 = vpack.c.bf16 %v60_v56, %v60_v56 }
 0x139   :  { %7074 = vmatpush.bf16.msrb.mxu3 %v11371_v58  ;;  %v11416_v58 = vld [vmem:[%s14637_s1 + $0xb38] sm:$0xff] }
 0x13a   :  { %7036 = vmatpush.bf16.msrb.mxu0 %v11346_v59  ;;  %v11424_v59 = vld [vmem:[%s14637_s1 + $0xb78] sm:$0xff] }
 0x13b   :  { %7049 = vmatpush.bf16.msrb.mxu1 %v11354_v60  ;;  %v61_v60 = vld [vmem:[%s14638_s0 + $0x148] sm:$0xff] }
 0x13c   :  { %7062 = vmatpush.bf16.msrb.mxu2 %v11362_v61  ;;  %v11432_v61 = vld [vmem:[%s14637_s1 + $0xbb8] sm:$0xff] }
 0x13d   :  { %7075 = vmatpush.bf16.msrb.mxu3 %v11370_v63  ;;  %v63_v63 = vld [vmem:[%s14638_s0 + $0x158] sm:$0xff] }
 0x13e   :  { %7037 = vmatpush.bf16.msrb.mxu0 %v11345_v1  ;;  %v6831_v25 = vpop.f32.mrf.mxu0  ;;  %v161_v1 = vpack.c.bf16 %v62_v57, %v62_v57  ;;  %v162_v4 = vpack.c.bf16 %v63_v63, %v63_v63  ;;  %v11447_v57 = vld [vmem:[%s14637_s1 + $0xc30] sm:$0xff]  ;;  %v11462_v63 = vld [vmem:[%s14637_s1 + $0xca8] sm:$0xff] }
 0x13f   :  { %7050 = vmatpush.bf16.msrb.mxu1 %v11353_v2  ;;  %v6832_v26 = vadd.f32 %v6831_v25, %v12918_v53  ;;  %v6844_v28 = vpop.f32.mrf.mxu1  ;;  %v11377_v53 = vld [vmem:[%s14637_s1 + $0xa00] sm:$0xff]  ;;  %v11440_v2 = vld [vmem:[%s14637_s1 + $0xbf8] sm:$0xff] }
 0x140   :  { %7063 = vmatpush.bf16.msrb.mxu2 %v11361_v3  ;;  %v160_v3 = vpack.c.bf16 %v61_v60, %v61_v60  ;;  %v11471_v60 = vld [vmem:[%s14637_s1 + $0xcf0] sm:$0xff] }
 0x141   :  { %7076 = vmatpush.bf16.msrb.mxu3 %v11369_v10  ;;  %7038 = vmatmul.bf16.vlgmr.msrb.gmra.mxu0 %v155_v12  ;;  %v6845_v31 = vadd.f32 %v6844_v28, %v6832_v26  ;;  %v11422_v10 = vld [vmem:[%s14637_s1 + $0xb68] sm:$0xff]  ;;  %v11436_v26 = vld [vmem:[%s14637_s1 + $0xbd8] sm:$0xff] }
 0x142   :  { %7082 = vmatpush.bf16.msra.mxu0 %v11384_v6  ;;  %7051 = vmatmul.bf16.vlgmr.msrb.gmra.mxu1 %v156_v15  ;;  %v11423_v6 = vld [vmem:[%s14637_s1 + $0xb70] sm:$0xff]  ;;  %v11438_v12 = vld [vmem:[%s14637_s1 + $0xbe8] sm:$0xff]  ;;  %v11413_v15 = vld [vmem:[%s14637_s1 + $0xb20] sm:$0xff] }
 0x143   :  { %7095 = vmatpush.bf16.msra.mxu1 %v11392_v7  ;;  %7064 = vmatmul.bf16.vlgmr.msrb.gmra.mxu2 %v157_v13  ;;  %v11431_v7 = vld [vmem:[%s14637_s1 + $0xbb0] sm:$0xff] }
 0x144   :  { %7108 = vmatpush.bf16.msra.mxu2 %v11400_v9  ;;  %7077 = vmatmul.bf16.vlgmr.msrb.gmra.mxu3 %v158_v16  ;;  %v11414_v9 = vld [vmem:[%s14637_s1 + $0xb28] sm:$0xff] }
 0x145   :  { %7121 = vmatpush.bf16.msra.mxu3 %v11408_v14 }
 0x146   :  { %7083 = vmatpush.bf16.msra.mxu0 %v11383_v17  ;;  %v6857_v36 = vpop.f32.mrf.mxu2  ;;  %v6833_v40 = vpop.f32.mrf.mxu0  ;;  %v11421_v17 = vld [vmem:[%s14637_s1 + $0xb60] sm:$0xff] }
 0x147   :  { %7096 = vmatpush.bf16.msra.mxu1 %v11391_v18  ;;  %v6858_v37 = vadd.f32 %v6857_v36, %v6845_v31  ;;  %v6870_v39 = vpop.f32.mrf.mxu3  ;;  %v6846_v43 = vpop.f32.mrf.mxu1  ;;  %v11429_v18 = vld [vmem:[%s14637_s1 + $0xba0] sm:$0xff]  ;;  %v11418_v36 = vld [vmem:[%s14637_s1 + $0xb48] sm:$0xff] }
 0x148   :  { %7109 = vmatpush.bf16.msra.mxu2 %v11399_v19  ;;  %v11425_v43 = vld [vmem:[%s14637_s1 + $0xb80] sm:$0xff] }
 0x149   :  { %7122 = vmatpush.bf16.msra.mxu3 %v11407_v20  ;;  %v13029_v41 = vadd.f32 %v6870_v39, %v6858_v37  ;;  %v11437_v20 = vld [vmem:[%s14637_s1 + $0xbe0] sm:$0xff]  ;;  %v11426_v37 = vld [vmem:[%s14637_s1 + $0xb88] sm:$0xff] }
 0x14a   :  { %7084 = vmatpush.bf16.msra.mxu0 %v11382_v21  ;;  %v11412_v21 = vld [vmem:[%s14637_s1 + $0xb18] sm:$0xff]  ;;  %v11434_v39 = vld [vmem:[%s14637_s1 + $0xbc8] sm:$0xff] }
 0x14b   :  { %7097 = vmatpush.bf16.msra.mxu1 %v11390_v22  ;;  %v11420_v22 = vld [vmem:[%s14637_s1 + $0xb58] sm:$0xff] }
 0x14c   :  { %7110 = vmatpush.bf16.msra.mxu2 %v11398_v23  ;;  %v11428_v23 = vld [vmem:[%s14637_s1 + $0xb98] sm:$0xff] }
 0x14d   :  { %7123 = vmatpush.bf16.msra.mxu3 %v11406_v24 }
 0x14e   :  { %7085 = vmatpush.bf16.msra.mxu0 %v11381_v27  ;;  %v6859_v50 = vpop.f32.mrf.mxu2 }
 0x14f   :  { %7098 = vmatpush.bf16.msra.mxu1 %v11389_v29  ;;  %v6872_v52 = vpop.f32.mrf.mxu3  ;;  %v11433_v50 = vld [vmem:[%s14637_s1 + $0xbc0] sm:$0xff] }
 0x150   :  { %7111 = vmatpush.bf16.msra.mxu2 %v11397_v30  ;;  %v11411_v30 = vld [vmem:[%s14637_s1 + $0xb10] sm:$0xff] }
 0x151   :  { %7124 = vmatpush.bf16.msra.mxu3 %v11405_v32  ;;  %v11419_v32 = vld [vmem:[%s14637_s1 + $0xb50] sm:$0xff] }
 0x152   :  { %7086 = vmatpush.bf16.msra.mxu0 %v11380_v33  ;;  %v11427_v33 = vld [vmem:[%s14637_s1 + $0xb90] sm:$0xff] }
 0x153   :  { %7099 = vmatpush.bf16.msra.mxu1 %v11388_v34  ;;  %v11435_v34 = vld [vmem:[%s14637_s1 + $0xbd0] sm:$0xff] }
 0x154   :  { %7112 = vmatpush.bf16.msra.mxu2 %v11396_v35  ;;  %v11410_v35 = vld [vmem:[%s14637_s1 + $0xb08] sm:$0xff] }
 0x155   :  { %7125 = vmatpush.bf16.msra.mxu3 %v11404_v38 }
 0x156   :  { %7087 = vmatpush.bf16.msra.mxu0 %v11379_v42  ;;  %v11417_v42 = vld [vmem:[%s14637_s1 + $0xb40] sm:$0xff] }
 0x157   :  { %7100 = vmatpush.bf16.msra.mxu1 %v11387_v44  ;;  %v64_v44 = vld [vmem:[%s14638_s0 + $0x160] sm:$0xff] }
 0x158   :  { %7113 = vmatpush.bf16.msra.mxu2 %v11395_v45  ;;  %v66_v45 = vld [vmem:[%s14638_s0 + $0x170] sm:$0xff]  ;;  %v163_v52 = vpack.c.bf16 %v64_v44, %v64_v44 }
 0x159   :  { %7126 = vmatpush.bf16.msra.mxu3 %v11403_v46  ;;  %v11448_v46 = vld [vmem:[%s14637_s1 + $0xc38] sm:$0xff] }
 0x15a   :  { %7088 = vmatpush.bf16.msra.mxu0 %v11378_v47  ;;  %v11456_v47 = vld [vmem:[%s14637_s1 + $0xc78] sm:$0xff] }
 0x15b   :  { %7101 = vmatpush.bf16.msra.mxu1 %v11386_v48  ;;  %v65_v48 = vld [vmem:[%s14638_s0 + $0x168] sm:$0xff] }
 0x15c   :  { %7114 = vmatpush.bf16.msra.mxu2 %v11394_v49  ;;  %v11464_v49 = vld [vmem:[%s14637_s1 + $0xcb8] sm:$0xff] }
 0x15d   :  { %7127 = vmatpush.bf16.msra.mxu3 %v11402_v51  ;;  %v67_v51 = vld [vmem:[%s14638_s0 + $0x178] sm:$0xff] }
 0x15e   :  { %7089 = vmatpush.bf16.msra.mxu0 %v11377_v53  ;;  %v6883_v13 = vpop.f32.mrf.mxu0  ;;  %v165_v53 = vpack.c.bf16 %v66_v45, %v66_v45  ;;  %v166_v56 = vpack.c.bf16 %v67_v51, %v67_v51  ;;  %v11479_v45 = vld [vmem:[%s14637_s1 + $0xd30] sm:$0xff]  ;;  %v11494_v51 = vld [vmem:[%s14637_s1 + $0xda8] sm:$0xff] }
 0x15f   :  { %7102 = vmatpush.bf16.msra.mxu1 %v11385_v54  ;;  %v6884_v14 = vadd.f32 %v6883_v13, %v13029_v41  ;;  %v6896_v16 = vpop.f32.mrf.mxu1  ;;  %v11409_v41 = vld [vmem:[%s14637_s1 + $0xb00] sm:$0xff]  ;;  %v11472_v54 = vld [vmem:[%s14637_s1 + $0xcf8] sm:$0xff] }
 0x160   :  { %7115 = vmatpush.bf16.msra.mxu2 %v11393_v55  ;;  %v164_v55 = vpack.c.bf16 %v65_v48, %v65_v48  ;;  %v11503_v48 = vld [vmem:[%s14637_s1 + $0xdf0] sm:$0xff] }
 0x161   :  { %7128 = vmatpush.bf16.msra.mxu3 %v11401_v62  ;;  %7090 = vmatmul.bf16.vlgmr.msra.gmra.mxu0 %v159_v0  ;;  %v6897_v19 = vadd.f32 %v6896_v16, %v6884_v14  ;;  %v11454_v62 = vld [vmem:[%s14637_s1 + $0xc68] sm:$0xff]  ;;  %v11468_v14 = vld [vmem:[%s14637_s1 + $0xcd8] sm:$0xff] }
 0x162   :  { %7134 = vmatpush.bf16.msrb.mxu0 %v11416_v58  ;;  %7103 = vmatmul.bf16.vlgmr.msra.gmra.mxu1 %v160_v3  ;;  %v11455_v58 = vld [vmem:[%s14637_s1 + $0xc70] sm:$0xff]  ;;  %v11470_v0 = vld [vmem:[%s14637_s1 + $0xce8] sm:$0xff]  ;;  %v11445_v3 = vld [vmem:[%s14637_s1 + $0xc20] sm:$0xff] }
 0x163   :  { %7147 = vmatpush.bf16.msrb.mxu1 %v11424_v59  ;;  %7116 = vmatmul.bf16.vlgmr.msra.gmra.mxu2 %v161_v1  ;;  %v11463_v59 = vld [vmem:[%s14637_s1 + $0xcb0] sm:$0xff] }
 0x164   :  { %7160 = vmatpush.bf16.msrb.mxu2 %v11432_v61  ;;  %7129 = vmatmul.bf16.vlgmr.msra.gmra.mxu3 %v162_v4  ;;  %v11446_v61 = vld [vmem:[%s14637_s1 + $0xc28] sm:$0xff] }
 0x165   :  { %7173 = vmatpush.bf16.msrb.mxu3 %v11440_v2 }
 0x166   :  { %7135 = vmatpush.bf16.msrb.mxu0 %v11415_v5  ;;  %v6909_v24 = vpop.f32.mrf.mxu2  ;;  %v6885_v28 = vpop.f32.mrf.mxu0  ;;  %v11453_v5 = vld [vmem:[%s14637_s1 + $0xc60] sm:$0xff] }
 0x167   :  { %7148 = vmatpush.bf16.msrb.mxu1 %v11423_v6  ;;  %v6910_v25 = vadd.f32 %v6909_v24, %v6897_v19  ;;  %v6922_v27 = vpop.f32.mrf.mxu3  ;;  %v6898_v31 = vpop.f32.mrf.mxu1  ;;  %v11461_v6 = vld [vmem:[%s14637_s1 + $0xca0] sm:$0xff]  ;;  %v11450_v24 = vld [vmem:[%s14637_s1 + $0xc48] sm:$0xff] }
 0x168   :  { %7161 = vmatpush.bf16.msrb.mxu2 %v11431_v7  ;;  %v11457_v31 = vld [vmem:[%s14637_s1 + $0xc80] sm:$0xff] }
 0x169   :  { %7174 = vmatpush.bf16.msrb.mxu3 %v11439_v8  ;;  %v13140_v29 = vadd.f32 %v6922_v27, %v6910_v25  ;;  %v11469_v8 = vld [vmem:[%s14637_s1 + $0xce0] sm:$0xff]  ;;  %v11458_v25 = vld [vmem:[%s14637_s1 + $0xc88] sm:$0xff] }
 0x16a   :  { %7136 = vmatpush.bf16.msrb.mxu0 %v11414_v9  ;;  %v11444_v9 = vld [vmem:[%s14637_s1 + $0xc18] sm:$0xff]  ;;  %v11466_v27 = vld [vmem:[%s14637_s1 + $0xcc8] sm:$0xff] }
 0x16b   :  { %7149 = vmatpush.bf16.msrb.mxu1 %v11422_v10  ;;  %v11452_v10 = vld [vmem:[%s14637_s1 + $0xc58] sm:$0xff] }
 0x16c   :  { %7162 = vmatpush.bf16.msrb.mxu2 %v11430_v11  ;;  %v11460_v11 = vld [vmem:[%s14637_s1 + $0xc98] sm:$0xff] }
 0x16d   :  { %7175 = vmatpush.bf16.msrb.mxu3 %v11438_v12 }
 0x16e   :  { %7137 = vmatpush.bf16.msrb.mxu0 %v11413_v15  ;;  %v6911_v38 = vpop.f32.mrf.mxu2 }
 0x16f   :  { %7150 = vmatpush.bf16.msrb.mxu1 %v11421_v17  ;;  %v6924_v40 = vpop.f32.mrf.mxu3  ;;  %v11465_v38 = vld [vmem:[%s14637_s1 + $0xcc0] sm:$0xff] }
 0x170   :  { %7163 = vmatpush.bf16.msrb.mxu2 %v11429_v18  ;;  %v11443_v18 = vld [vmem:[%s14637_s1 + $0xc10] sm:$0xff] }
 0x171   :  { %7176 = vmatpush.bf16.msrb.mxu3 %v11437_v20  ;;  %v11451_v20 = vld [vmem:[%s14637_s1 + $0xc50] sm:$0xff] }
 0x172   :  { %7138 = vmatpush.bf16.msrb.mxu0 %v11412_v21  ;;  %v11459_v21 = vld [vmem:[%s14637_s1 + $0xc90] sm:$0xff] }
 0x173   :  { %7151 = vmatpush.bf16.msrb.mxu1 %v11420_v22  ;;  %v11467_v22 = vld [vmem:[%s14637_s1 + $0xcd0] sm:$0xff] }
 0x174   :  { %7164 = vmatpush.bf16.msrb.mxu2 %v11428_v23  ;;  %v11442_v23 = vld [vmem:[%s14637_s1 + $0xc08] sm:$0xff] }
 0x175   :  { %7177 = vmatpush.bf16.msrb.mxu3 %v11436_v26 }
 0x176   :  { %7139 = vmatpush.bf16.msrb.mxu0 %v11411_v30  ;;  %v11449_v30 = vld [vmem:[%s14637_s1 + $0xc40] sm:$0xff] }
 0x177   :  { %7152 = vmatpush.bf16.msrb.mxu1 %v11419_v32  ;;  %v68_v32 = vld [vmem:[%s14638_s0 + $0x180] sm:$0xff] }
 0x178   :  { %7165 = vmatpush.bf16.msrb.mxu2 %v11427_v33  ;;  %v70_v33 = vld [vmem:[%s14638_s0 + $0x190] sm:$0xff]  ;;  %v167_v40 = vpack.c.bf16 %v68_v32, %v68_v32 }
 0x179   :  { %7178 = vmatpush.bf16.msrb.mxu3 %v11435_v34  ;;  %v11480_v34 = vld [vmem:[%s14637_s1 + $0xd38] sm:$0xff] }
 0x17a   :  { %7140 = vmatpush.bf16.msrb.mxu0 %v11410_v35  ;;  %v11488_v35 = vld [vmem:[%s14637_s1 + $0xd78] sm:$0xff] }
 0x17b   :  { %7153 = vmatpush.bf16.msrb.mxu1 %v11418_v36  ;;  %v69_v36 = vld [vmem:[%s14638_s0 + $0x188] sm:$0xff] }
 0x17c   :  { %7166 = vmatpush.bf16.msrb.mxu2 %v11426_v37  ;;  %v11496_v37 = vld [vmem:[%s14637_s1 + $0xdb8] sm:$0xff] }
 0x17d   :  { %7179 = vmatpush.bf16.msrb.mxu3 %v11434_v39  ;;  %v71_v39 = vld [vmem:[%s14638_s0 + $0x198] sm:$0xff] }
 0x17e   :  { %7141 = vmatpush.bf16.msrb.mxu0 %v11409_v41  ;;  %v6935_v1 = vpop.f32.mrf.mxu0  ;;  %v169_v41 = vpack.c.bf16 %v70_v33, %v70_v33  ;;  %v170_v44 = vpack.c.bf16 %v71_v39, %v71_v39  ;;  %v11511_v33 = vld [vmem:[%s14637_s1 + $0xe30] sm:$0xff]  ;;  %v11526_v39 = vld [vmem:[%s14637_s1 + $0xea8] sm:$0xff] }
 0x17f   :  { %7154 = vmatpush.bf16.msrb.mxu1 %v11417_v42  ;;  %v6936_v2 = vadd.f32 %v6935_v1, %v13140_v29  ;;  %v6948_v4 = vpop.f32.mrf.mxu1  ;;  %v11441_v29 = vld [vmem:[%s14637_s1 + $0xc00] sm:$0xff]  ;;  %v11504_v42 = vld [vmem:[%s14637_s1 + $0xdf8] sm:$0xff] }
 0x180   :  { %7167 = vmatpush.bf16.msrb.mxu2 %v11425_v43  ;;  %v168_v43 = vpack.c.bf16 %v69_v36, %v69_v36  ;;  %v11535_v36 = vld [vmem:[%s14637_s1 + $0xef0] sm:$0xff] }
 0x181   :  { %7180 = vmatpush.bf16.msrb.mxu3 %v11433_v50  ;;  %7142 = vmatmul.bf16.vlgmr.msrb.gmra.mxu0 %v163_v52  ;;  %v6949_v7 = vadd.f32 %v6948_v4, %v6936_v2  ;;  %v11486_v50 = vld [vmem:[%s14637_s1 + $0xd68] sm:$0xff]  ;;  %v11500_v2 = vld [vmem:[%s14637_s1 + $0xdd8] sm:$0xff] }
 0x182   :  { %7186 = vmatpush.bf16.msra.mxu0 %v11448_v46  ;;  %7155 = vmatmul.bf16.vlgmr.msrb.gmra.mxu1 %v164_v55  ;;  %v11487_v46 = vld [vmem:[%s14637_s1 + $0xd70] sm:$0xff]  ;;  %v11502_v52 = vld [vmem:[%s14637_s1 + $0xde8] sm:$0xff]  ;;  %v11477_v55 = vld [vmem:[%s14637_s1 + $0xd20] sm:$0xff] }
 0x183   :  { %7199 = vmatpush.bf16.msra.mxu1 %v11456_v47  ;;  %7168 = vmatmul.bf16.vlgmr.msrb.gmra.mxu2 %v165_v53  ;;  %v11495_v47 = vld [vmem:[%s14637_s1 + $0xdb0] sm:$0xff] }
 0x184   :  { %7212 = vmatpush.bf16.msra.mxu2 %v11464_v49  ;;  %7181 = vmatmul.bf16.vlgmr.msrb.gmra.mxu3 %v166_v56  ;;  %v11478_v49 = vld [vmem:[%s14637_s1 + $0xd28] sm:$0xff] }
 0x185   :  { %7225 = vmatpush.bf16.msra.mxu3 %v11472_v54 }
 0x186   :  { %7187 = vmatpush.bf16.msra.mxu0 %v11447_v57  ;;  %v6961_v12 = vpop.f32.mrf.mxu2  ;;  %v6937_v16 = vpop.f32.mrf.mxu0  ;;  %v11485_v57 = vld [vmem:[%s14637_s1 + $0xd60] sm:$0xff] }
 0x187   :  { %7200 = vmatpush.bf16.msra.mxu1 %v11455_v58  ;;  %v6962_v13 = vadd.f32 %v6961_v12, %v6949_v7  ;;  %v6974_v15 = vpop.f32.mrf.mxu3  ;;  %v6950_v19 = vpop.f32.mrf.mxu1  ;;  %v11493_v58 = vld [vmem:[%s14637_s1 + $0xda0] sm:$0xff]  ;;  %v11482_v12 = vld [vmem:[%s14637_s1 + $0xd48] sm:$0xff] }
 0x188   :  { %7213 = vmatpush.bf16.msra.mxu2 %v11463_v59  ;;  %v11489_v19 = vld [vmem:[%s14637_s1 + $0xd80] sm:$0xff] }
 0x189   :  { %7226 = vmatpush.bf16.msra.mxu3 %v11471_v60  ;;  %v13251_v17 = vadd.f32 %v6974_v15, %v6962_v13  ;;  %v11501_v60 = vld [vmem:[%s14637_s1 + $0xde0] sm:$0xff]  ;;  %v11490_v13 = vld [vmem:[%s14637_s1 + $0xd88] sm:$0xff] }
 0x18a   :  { %7188 = vmatpush.bf16.msra.mxu0 %v11446_v61  ;;  %v11476_v61 = vld [vmem:[%s14637_s1 + $0xd18] sm:$0xff]  ;;  %v11498_v15 = vld [vmem:[%s14637_s1 + $0xdc8] sm:$0xff] }
 0x18b   :  { %7201 = vmatpush.bf16.msra.mxu1 %v11454_v62  ;;  %v11484_v62 = vld [vmem:[%s14637_s1 + $0xd58] sm:$0xff] }
 0x18c   :  { %7214 = vmatpush.bf16.msra.mxu2 %v11462_v63  ;;  %v11492_v63 = vld [vmem:[%s14637_s1 + $0xd98] sm:$0xff] }
 0x18d   :  { %7227 = vmatpush.bf16.msra.mxu3 %v11470_v0 }
 0x18e   :  { %7189 = vmatpush.bf16.msra.mxu0 %v11445_v3  ;;  %v6963_v26 = vpop.f32.mrf.mxu2 }
 0x18f   :  { %7202 = vmatpush.bf16.msra.mxu1 %v11453_v5  ;;  %v6976_v28 = vpop.f32.mrf.mxu3  ;;  %v11497_v26 = vld [vmem:[%s14637_s1 + $0xdc0] sm:$0xff] }
 0x190   :  { %7215 = vmatpush.bf16.msra.mxu2 %v11461_v6  ;;  %v11475_v6 = vld [vmem:[%s14637_s1 + $0xd10] sm:$0xff] }
 0x191   :  { %7228 = vmatpush.bf16.msra.mxu3 %v11469_v8  ;;  %v11483_v8 = vld [vmem:[%s14637_s1 + $0xd50] sm:$0xff] }
 0x192   :  { %7190 = vmatpush.bf16.msra.mxu0 %v11444_v9  ;;  %v11491_v9 = vld [vmem:[%s14637_s1 + $0xd90] sm:$0xff] }
 0x193   :  { %7203 = vmatpush.bf16.msra.mxu1 %v11452_v10  ;;  %v11499_v10 = vld [vmem:[%s14637_s1 + $0xdd0] sm:$0xff] }
 0x194   :  { %7216 = vmatpush.bf16.msra.mxu2 %v11460_v11  ;;  %v11474_v11 = vld [vmem:[%s14637_s1 + $0xd08] sm:$0xff] }
 0x195   :  { %7229 = vmatpush.bf16.msra.mxu3 %v11468_v14 }
 0x196   :  { %7191 = vmatpush.bf16.msra.mxu0 %v11443_v18  ;;  %v11481_v18 = vld [vmem:[%s14637_s1 + $0xd40] sm:$0xff] }
 0x197   :  { %7204 = vmatpush.bf16.msra.mxu1 %v11451_v20  ;;  %v72_v20 = vld [vmem:[%s14638_s0 + $0x1a0] sm:$0xff] }
 0x198   :  { %7217 = vmatpush.bf16.msra.mxu2 %v11459_v21  ;;  %v74_v21 = vld [vmem:[%s14638_s0 + $0x1b0] sm:$0xff]  ;;  %v171_v28 = vpack.c.bf16 %v72_v20, %v72_v20 }
 0x199   :  { %7230 = vmatpush.bf16.msra.mxu3 %v11467_v22  ;;  %v11512_v22 = vld [vmem:[%s14637_s1 + $0xe38] sm:$0xff] }
 0x19a   :  { %7192 = vmatpush.bf16.msra.mxu0 %v11442_v23  ;;  %v11520_v23 = vld [vmem:[%s14637_s1 + $0xe78] sm:$0xff] }
 0x19b   :  { %7205 = vmatpush.bf16.msra.mxu1 %v11450_v24  ;;  %v73_v24 = vld [vmem:[%s14638_s0 + $0x1a8] sm:$0xff] }
 0x19c   :  { %7218 = vmatpush.bf16.msra.mxu2 %v11458_v25  ;;  %v11528_v25 = vld [vmem:[%s14637_s1 + $0xeb8] sm:$0xff] }
 0x19d   :  { %7231 = vmatpush.bf16.msra.mxu3 %v11466_v27  ;;  %v75_v27 = vld [vmem:[%s14638_s0 + $0x1b8] sm:$0xff] }
 0x19e   :  { %7193 = vmatpush.bf16.msra.mxu0 %v11441_v29  ;;  %v6987_v53 = vpop.f32.mrf.mxu0  ;;  %v173_v29 = vpack.c.bf16 %v74_v21, %v74_v21  ;;  %v174_v32 = vpack.c.bf16 %v75_v27, %v75_v27  ;;  %v11543_v21 = vld [vmem:[%s14637_s1 + $0xf30] sm:$0xff]  ;;  %v11558_v27 = vld [vmem:[%s14637_s1 + $0xfa8] sm:$0xff] }
 0x19f   :  { %7206 = vmatpush.bf16.msra.mxu1 %v11449_v30  ;;  %v6988_v54 = vadd.f32 %v6987_v53, %v13251_v17  ;;  %v7000_v56 = vpop.f32.mrf.mxu1  ;;  %v11473_v17 = vld [vmem:[%s14637_s1 + $0xd00] sm:$0xff]  ;;  %v11536_v30 = vld [vmem:[%s14637_s1 + $0xef8] sm:$0xff] }
 0x1a0   :  { %7219 = vmatpush.bf16.msra.mxu2 %v11457_v31  ;;  %v172_v31 = vpack.c.bf16 %v73_v24, %v73_v24  ;;  %v11567_v24 = vld [vmem:[%s14637_s1 + $0xff0] sm:$0xff] }
 0x1a1   :  { %7232 = vmatpush.bf16.msra.mxu3 %v11465_v38  ;;  %7194 = vmatmul.bf16.vlgmr.msra.gmra.mxu0 %v167_v40  ;;  %v7001_v59 = vadd.f32 %v7000_v56, %v6988_v54  ;;  %v11518_v38 = vld [vmem:[%s14637_s1 + $0xe68] sm:$0xff]  ;;  %v11532_v54 = vld [vmem:[%s14637_s1 + $0xed8] sm:$0xff] }
 0x1a2   :  { %7238 = vmatpush.bf16.msrb.mxu0 %v11480_v34  ;;  %7207 = vmatmul.bf16.vlgmr.msra.gmra.mxu1 %v168_v43  ;;  %v11519_v34 = vld [vmem:[%s14637_s1 + $0xe70] sm:$0xff]  ;;  %v11534_v40 = vld [vmem:[%s14637_s1 + $0xee8] sm:$0xff]  ;;  %v11509_v43 = vld [vmem:[%s14637_s1 + $0xe20] sm:$0xff] }
 0x1a3   :  { %7251 = vmatpush.bf16.msrb.mxu1 %v11488_v35  ;;  %7220 = vmatmul.bf16.vlgmr.msra.gmra.mxu2 %v169_v41  ;;  %v11527_v35 = vld [vmem:[%s14637_s1 + $0xeb0] sm:$0xff] }
 0x1a4   :  { %7264 = vmatpush.bf16.msrb.mxu2 %v11496_v37  ;;  %7233 = vmatmul.bf16.vlgmr.msra.gmra.mxu3 %v170_v44  ;;  %v11510_v37 = vld [vmem:[%s14637_s1 + $0xe28] sm:$0xff] }
 0x1a5   :  { %7277 = vmatpush.bf16.msrb.mxu3 %v11504_v42 }
 0x1a6   :  { %7239 = vmatpush.bf16.msrb.mxu0 %v11479_v45  ;;  %v7013_v0 = vpop.f32.mrf.mxu2  ;;  %v6989_v4 = vpop.f32.mrf.mxu0  ;;  %v11517_v45 = vld [vmem:[%s14637_s1 + $0xe60] sm:$0xff] }
 0x1a7   :  { %7252 = vmatpush.bf16.msrb.mxu1 %v11487_v46  ;;  %v7014_v1 = vadd.f32 %v7013_v0, %v7001_v59  ;;  %v7026_v3 = vpop.f32.mrf.mxu3  ;;  %v7002_v7 = vpop.f32.mrf.mxu1  ;;  %v11525_v46 = vld [vmem:[%s14637_s1 + $0xea0] sm:$0xff]  ;;  %v11514_v0 = vld [vmem:[%s14637_s1 + $0xe48] sm:$0xff] }
 0x1a8   :  { %7265 = vmatpush.bf16.msrb.mxu2 %v11495_v47  ;;  %v11521_v7 = vld [vmem:[%s14637_s1 + $0xe80] sm:$0xff] }
 0x1a9   :  { %7278 = vmatpush.bf16.msrb.mxu3 %v11503_v48  ;;  %v13362_v5 = vadd.f32 %v7026_v3, %v7014_v1  ;;  %v11533_v48 = vld [vmem:[%s14637_s1 + $0xee0] sm:$0xff]  ;;  %v11522_v1 = vld [vmem:[%s14637_s1 + $0xe88] sm:$0xff] }
 0x1aa   :  { %7240 = vmatpush.bf16.msrb.mxu0 %v11478_v49  ;;  %v11508_v49 = vld [vmem:[%s14637_s1 + $0xe18] sm:$0xff]  ;;  %v11530_v3 = vld [vmem:[%s14637_s1 + $0xec8] sm:$0xff] }
 0x1ab   :  { %7253 = vmatpush.bf16.msrb.mxu1 %v11486_v50  ;;  %v11516_v50 = vld [vmem:[%s14637_s1 + $0xe58] sm:$0xff] }
 0x1ac   :  { %7266 = vmatpush.bf16.msrb.mxu2 %v11494_v51  ;;  %v11524_v51 = vld [vmem:[%s14637_s1 + $0xe98] sm:$0xff] }
 0x1ad   :  { %7279 = vmatpush.bf16.msrb.mxu3 %v11502_v52 }
 0x1ae   :  { %7241 = vmatpush.bf16.msrb.mxu0 %v11477_v55  ;;  %v7015_v14 = vpop.f32.mrf.mxu2 }
 0x1af   :  { %7254 = vmatpush.bf16.msrb.mxu1 %v11485_v57  ;;  %v7028_v16 = vpop.f32.mrf.mxu3  ;;  %v11529_v14 = vld [vmem:[%s14637_s1 + $0xec0] sm:$0xff] }
 0x1b0   :  { %7267 = vmatpush.bf16.msrb.mxu2 %v11493_v58  ;;  %v11507_v58 = vld [vmem:[%s14637_s1 + $0xe10] sm:$0xff] }
 0x1b1   :  { %7280 = vmatpush.bf16.msrb.mxu3 %v11501_v60  ;;  %v11515_v60 = vld [vmem:[%s14637_s1 + $0xe50] sm:$0xff] }
 0x1b2   :  { %7242 = vmatpush.bf16.msrb.mxu0 %v11476_v61  ;;  %v11523_v61 = vld [vmem:[%s14637_s1 + $0xe90] sm:$0xff] }
 0x1b3   :  { %7255 = vmatpush.bf16.msrb.mxu1 %v11484_v62  ;;  %v11531_v62 = vld [vmem:[%s14637_s1 + $0xed0] sm:$0xff] }
 0x1b4   :  { %7268 = vmatpush.bf16.msrb.mxu2 %v11492_v63  ;;  %v11506_v63 = vld [vmem:[%s14637_s1 + $0xe08] sm:$0xff] }
 0x1b5   :  { %7281 = vmatpush.bf16.msrb.mxu3 %v11500_v2 }
 0x1b6   :  { %7243 = vmatpush.bf16.msrb.mxu0 %v11475_v6  ;;  %v11513_v6 = vld [vmem:[%s14637_s1 + $0xe40] sm:$0xff] }
 0x1b7   :  { %7256 = vmatpush.bf16.msrb.mxu1 %v11483_v8  ;;  %v76_v8 = vld [vmem:[%s14638_s0 + $0x1c0] sm:$0xff] }
 0x1b8   :  { %7269 = vmatpush.bf16.msrb.mxu2 %v11491_v9  ;;  %v78_v9 = vld [vmem:[%s14638_s0 + $0x1d0] sm:$0xff]  ;;  %v175_v16 = vpack.c.bf16 %v76_v8, %v76_v8 }
 0x1b9   :  { %7282 = vmatpush.bf16.msrb.mxu3 %v11499_v10  ;;  %v11544_v10 = vld [vmem:[%s14637_s1 + $0xf38] sm:$0xff] }
 0x1ba   :  { %7244 = vmatpush.bf16.msrb.mxu0 %v11474_v11  ;;  %v11552_v11 = vld [vmem:[%s14637_s1 + $0xf78] sm:$0xff] }
 0x1bb   :  { %7257 = vmatpush.bf16.msrb.mxu1 %v11482_v12  ;;  %v77_v12 = vld [vmem:[%s14638_s0 + $0x1c8] sm:$0xff] }
 0x1bc   :  { %7270 = vmatpush.bf16.msrb.mxu2 %v11490_v13  ;;  %v11560_v13 = vld [vmem:[%s14637_s1 + $0xfb8] sm:$0xff] }
 0x1bd   :  { %7283 = vmatpush.bf16.msrb.mxu3 %v11498_v15  ;;  %v79_v15 = vld [vmem:[%s14638_s0 + $0x1d8] sm:$0xff] }
 0x1be   :  { %7245 = vmatpush.bf16.msrb.mxu0 %v11473_v17  ;;  %v7039_v41 = vpop.f32.mrf.mxu0  ;;  %v177_v17 = vpack.c.bf16 %v78_v9, %v78_v9  ;;  %v178_v20 = vpack.c.bf16 %v79_v15, %v79_v15  ;;  %v11575_v9 = vld [vmem:[%s14637_s1 + $0x1030] sm:$0xff]  ;;  %v11590_v15 = vld [vmem:[%s14637_s1 + $0x10a8] sm:$0xff] }
 0x1bf   :  { %7258 = vmatpush.bf16.msrb.mxu1 %v11481_v18  ;;  %v7040_v42 = vadd.f32 %v7039_v41, %v13362_v5  ;;  %v7052_v44 = vpop.f32.mrf.mxu1  ;;  %v11505_v5 = vld [vmem:[%s14637_s1 + $0xe00] sm:$0xff]  ;;  %v11568_v18 = vld [vmem:[%s14637_s1 + $0xff8] sm:$0xff] }
 0x1c0   :  { %7271 = vmatpush.bf16.msrb.mxu2 %v11489_v19  ;;  %v176_v19 = vpack.c.bf16 %v77_v12, %v77_v12  ;;  %v11599_v12 = vld [vmem:[%s14637_s1 + $0x10f0] sm:$0xff] }
 0x1c1   :  { %7284 = vmatpush.bf16.msrb.mxu3 %v11497_v26  ;;  %7246 = vmatmul.bf16.vlgmr.msrb.gmra.mxu0 %v171_v28  ;;  %v7053_v47 = vadd.f32 %v7052_v44, %v7040_v42  ;;  %v11550_v26 = vld [vmem:[%s14637_s1 + $0xf68] sm:$0xff]  ;;  %v11564_v42 = vld [vmem:[%s14637_s1 + $0xfd8] sm:$0xff] }
 0x1c2   :  { %7290 = vmatpush.bf16.msra.mxu0 %v11512_v22  ;;  %7259 = vmatmul.bf16.vlgmr.msrb.gmra.mxu1 %v172_v31  ;;  %v11551_v22 = vld [vmem:[%s14637_s1 + $0xf70] sm:$0xff]  ;;  %v11566_v28 = vld [vmem:[%s14637_s1 + $0xfe8] sm:$0xff]  ;;  %v11541_v31 = vld [vmem:[%s14637_s1 + $0xf20] sm:$0xff] }
 0x1c3   :  { %7303 = vmatpush.bf16.msra.mxu1 %v11520_v23  ;;  %7272 = vmatmul.bf16.vlgmr.msrb.gmra.mxu2 %v173_v29  ;;  %v11559_v23 = vld [vmem:[%s14637_s1 + $0xfb0] sm:$0xff] }
 0x1c4   :  { %7316 = vmatpush.bf16.msra.mxu2 %v11528_v25  ;;  %7285 = vmatmul.bf16.vlgmr.msrb.gmra.mxu3 %v174_v32  ;;  %v11542_v25 = vld [vmem:[%s14637_s1 + $0xf28] sm:$0xff] }
 0x1c5   :  { %7329 = vmatpush.bf16.msra.mxu3 %v11536_v30 }
 0x1c6   :  { %7291 = vmatpush.bf16.msra.mxu0 %v11511_v33  ;;  %v7065_v52 = vpop.f32.mrf.mxu2  ;;  %v7041_v56 = vpop.f32.mrf.mxu0  ;;  %v11549_v33 = vld [vmem:[%s14637_s1 + $0xf60] sm:$0xff] }
 0x1c7   :  { %7304 = vmatpush.bf16.msra.mxu1 %v11519_v34  ;;  %v7066_v53 = vadd.f32 %v7065_v52, %v7053_v47  ;;  %v7078_v55 = vpop.f32.mrf.mxu3  ;;  %v7054_v59 = vpop.f32.mrf.mxu1  ;;  %v11557_v34 = vld [vmem:[%s14637_s1 + $0xfa0] sm:$0xff]  ;;  %v11546_v52 = vld [vmem:[%s14637_s1 + $0xf48] sm:$0xff] }
 0x1c8   :  { %7317 = vmatpush.bf16.msra.mxu2 %v11527_v35  ;;  %v11553_v59 = vld [vmem:[%s14637_s1 + $0xf80] sm:$0xff] }
 0x1c9   :  { %7330 = vmatpush.bf16.msra.mxu3 %v11535_v36  ;;  %v13473_v57 = vadd.f32 %v7078_v55, %v7066_v53  ;;  %v11565_v36 = vld [vmem:[%s14637_s1 + $0xfe0] sm:$0xff]  ;;  %v11554_v53 = vld [vmem:[%s14637_s1 + $0xf88] sm:$0xff] }
 0x1ca   :  { %7292 = vmatpush.bf16.msra.mxu0 %v11510_v37  ;;  %v11540_v37 = vld [vmem:[%s14637_s1 + $0xf18] sm:$0xff]  ;;  %v11562_v55 = vld [vmem:[%s14637_s1 + $0xfc8] sm:$0xff] }
 0x1cb   :  { %7305 = vmatpush.bf16.msra.mxu1 %v11518_v38  ;;  %v11548_v38 = vld [vmem:[%s14637_s1 + $0xf58] sm:$0xff] }
 0x1cc   :  { %7318 = vmatpush.bf16.msra.mxu2 %v11526_v39  ;;  %v11556_v39 = vld [vmem:[%s14637_s1 + $0xf98] sm:$0xff] }
 0x1cd   :  { %7331 = vmatpush.bf16.msra.mxu3 %v11534_v40 }
 0x1ce   :  { %7293 = vmatpush.bf16.msra.mxu0 %v11509_v43  ;;  %v7067_v2 = vpop.f32.mrf.mxu2 }
 0x1cf   :  { %7306 = vmatpush.bf16.msra.mxu1 %v11517_v45  ;;  %v7080_v4 = vpop.f32.mrf.mxu3  ;;  %v11561_v2 = vld [vmem:[%s14637_s1 + $0xfc0] sm:$0xff] }
 0x1d0   :  { %7319 = vmatpush.bf16.msra.mxu2 %v11525_v46  ;;  %v11539_v46 = vld [vmem:[%s14637_s1 + $0xf10] sm:$0xff] }
 0x1d1   :  { %7332 = vmatpush.bf16.msra.mxu3 %v11533_v48  ;;  %v11547_v48 = vld [vmem:[%s14637_s1 + $0xf50] sm:$0xff] }
 0x1d2   :  { %7294 = vmatpush.bf16.msra.mxu0 %v11508_v49  ;;  %v11555_v49 = vld [vmem:[%s14637_s1 + $0xf90] sm:$0xff] }
 0x1d3   :  { %7307 = vmatpush.bf16.msra.mxu1 %v11516_v50  ;;  %v11563_v50 = vld [vmem:[%s14637_s1 + $0xfd0] sm:$0xff] }
 0x1d4   :  { %7320 = vmatpush.bf16.msra.mxu2 %v11524_v51  ;;  %v11538_v51 = vld [vmem:[%s14637_s1 + $0xf08] sm:$0xff] }
 0x1d5   :  { %7333 = vmatpush.bf16.msra.mxu3 %v11532_v54 }
 0x1d6   :  { %7295 = vmatpush.bf16.msra.mxu0 %v11507_v58  ;;  %v11545_v58 = vld [vmem:[%s14637_s1 + $0xf40] sm:$0xff] }
 0x1d7   :  { %7308 = vmatpush.bf16.msra.mxu1 %v11515_v60  ;;  %v80_v60 = vld [vmem:[%s14638_s0 + $0x1e0] sm:$0xff] }
 0x1d8   :  { %7321 = vmatpush.bf16.msra.mxu2 %v11523_v61  ;;  %v82_v61 = vld [vmem:[%s14638_s0 + $0x1f0] sm:$0xff]  ;;  %v179_v4 = vpack.c.bf16 %v80_v60, %v80_v60 }
 0x1d9   :  { %7334 = vmatpush.bf16.msra.mxu3 %v11531_v62  ;;  %v11576_v62 = vld [vmem:[%s14637_s1 + $0x1038] sm:$0xff] }
 0x1da   :  { %7296 = vmatpush.bf16.msra.mxu0 %v11506_v63  ;;  %v11584_v63 = vld [vmem:[%s14637_s1 + $0x1078] sm:$0xff] }
 0x1db   :  { %7309 = vmatpush.bf16.msra.mxu1 %v11514_v0  ;;  %v81_v0 = vld [vmem:[%s14638_s0 + $0x1e8] sm:$0xff] }
 0x1dc   :  { %7322 = vmatpush.bf16.msra.mxu2 %v11522_v1  ;;  %v11592_v1 = vld [vmem:[%s14637_s1 + $0x10b8] sm:$0xff] }
 0x1dd   :  { %7335 = vmatpush.bf16.msra.mxu3 %v11530_v3  ;;  %v83_v3 = vld [vmem:[%s14638_s0 + $0x1f8] sm:$0xff] }
 0x1de   :  { %7297 = vmatpush.bf16.msra.mxu0 %v11505_v5  ;;  %v7091_v29 = vpop.f32.mrf.mxu0  ;;  %v181_v5 = vpack.c.bf16 %v82_v61, %v82_v61  ;;  %v182_v8 = vpack.c.bf16 %v83_v3, %v83_v3  ;;  %v11607_v61 = vld [vmem:[%s14637_s1 + $0x1130] sm:$0xff]  ;;  %v11622_v3 = vld [vmem:[%s14637_s1 + $0x11a8] sm:$0xff] }
 0x1df   :  { %7310 = vmatpush.bf16.msra.mxu1 %v11513_v6  ;;  %v7092_v30 = vadd.f32 %v7091_v29, %v13473_v57  ;;  %v7104_v32 = vpop.f32.mrf.mxu1  ;;  %v11537_v57 = vld [vmem:[%s14637_s1 + $0xf00] sm:$0xff]  ;;  %v11600_v6 = vld [vmem:[%s14637_s1 + $0x10f8] sm:$0xff] }
 0x1e0   :  { %7323 = vmatpush.bf16.msra.mxu2 %v11521_v7  ;;  %v180_v7 = vpack.c.bf16 %v81_v0, %v81_v0  ;;  %v11631_v0 = vld [vmem:[%s14637_s1 + $0x11f0] sm:$0xff] }
 0x1e1   :  { %7336 = vmatpush.bf16.msra.mxu3 %v11529_v14  ;;  %7298 = vmatmul.bf16.vlgmr.msra.gmra.mxu0 %v175_v16  ;;  %v7105_v35 = vadd.f32 %v7104_v32, %v7092_v30  ;;  %v11582_v14 = vld [vmem:[%s14637_s1 + $0x1068] sm:$0xff]  ;;  %v11596_v30 = vld [vmem:[%s14637_s1 + $0x10d8] sm:$0xff] }
 0x1e2   :  { %7342 = vmatpush.bf16.msrb.mxu0 %v11544_v10  ;;  %7311 = vmatmul.bf16.vlgmr.msra.gmra.mxu1 %v176_v19  ;;  %v11583_v10 = vld [vmem:[%s14637_s1 + $0x1070] sm:$0xff]  ;;  %v11598_v16 = vld [vmem:[%s14637_s1 + $0x10e8] sm:$0xff]  ;;  %v11573_v19 = vld [vmem:[%s14637_s1 + $0x1020] sm:$0xff] }
 0x1e3   :  { %7355 = vmatpush.bf16.msrb.mxu1 %v11552_v11  ;;  %7324 = vmatmul.bf16.vlgmr.msra.gmra.mxu2 %v177_v17  ;;  %v11591_v11 = vld [vmem:[%s14637_s1 + $0x10b0] sm:$0xff] }
 0x1e4   :  { %7368 = vmatpush.bf16.msrb.mxu2 %v11560_v13  ;;  %7337 = vmatmul.bf16.vlgmr.msra.gmra.mxu3 %v178_v20  ;;  %v11574_v13 = vld [vmem:[%s14637_s1 + $0x1028] sm:$0xff] }
 0x1e5   :  { %7381 = vmatpush.bf16.msrb.mxu3 %v11568_v18 }
 0x1e6   :  { %7343 = vmatpush.bf16.msrb.mxu0 %v11543_v21  ;;  %v7117_v40 = vpop.f32.mrf.mxu2  ;;  %v7093_v44 = vpop.f32.mrf.mxu0  ;;  %v11581_v21 = vld [vmem:[%s14637_s1 + $0x1060] sm:$0xff] }
 0x1e7   :  { %7356 = vmatpush.bf16.msrb.mxu1 %v11551_v22  ;;  %v7118_v41 = vadd.f32 %v7117_v40, %v7105_v35  ;;  %v7130_v43 = vpop.f32.mrf.mxu3  ;;  %v7106_v47 = vpop.f32.mrf.mxu1  ;;  %v11589_v22 = vld [vmem:[%s14637_s1 + $0x10a0] sm:$0xff]  ;;  %v11578_v40 = vld [vmem:[%s14637_s1 + $0x1048] sm:$0xff] }
 0x1e8   :  { %7369 = vmatpush.bf16.msrb.mxu2 %v11559_v23  ;;  %v11585_v47 = vld [vmem:[%s14637_s1 + $0x1080] sm:$0xff] }
 0x1e9   :  { %7382 = vmatpush.bf16.msrb.mxu3 %v11567_v24  ;;  %v13584_v45 = vadd.f32 %v7130_v43, %v7118_v41  ;;  %v11597_v24 = vld [vmem:[%s14637_s1 + $0x10e0] sm:$0xff]  ;;  %v11586_v41 = vld [vmem:[%s14637_s1 + $0x1088] sm:$0xff] }
 0x1ea   :  { %7344 = vmatpush.bf16.msrb.mxu0 %v11542_v25  ;;  %v11572_v25 = vld [vmem:[%s14637_s1 + $0x1018] sm:$0xff]  ;;  %v11594_v43 = vld [vmem:[%s14637_s1 + $0x10c8] sm:$0xff] }
 0x1eb   :  { %7357 = vmatpush.bf16.msrb.mxu1 %v11550_v26  ;;  %v11580_v26 = vld [vmem:[%s14637_s1 + $0x1058] sm:$0xff] }
 0x1ec   :  { %7370 = vmatpush.bf16.msrb.mxu2 %v11558_v27  ;;  %v11588_v27 = vld [vmem:[%s14637_s1 + $0x1098] sm:$0xff] }
 0x1ed   :  { %7383 = vmatpush.bf16.msrb.mxu3 %v11566_v28 }
 0x1ee   :  { %7345 = vmatpush.bf16.msrb.mxu0 %v11541_v31  ;;  %v7119_v54 = vpop.f32.mrf.mxu2 }
 0x1ef   :  { %7358 = vmatpush.bf16.msrb.mxu1 %v11549_v33  ;;  %v7132_v56 = vpop.f32.mrf.mxu3  ;;  %v11593_v54 = vld [vmem:[%s14637_s1 + $0x10c0] sm:$0xff] }
 0x1f0   :  { %7371 = vmatpush.bf16.msrb.mxu2 %v11557_v34  ;;  %v11571_v34 = vld [vmem:[%s14637_s1 + $0x1010] sm:$0xff] }
 0x1f1   :  { %7384 = vmatpush.bf16.msrb.mxu3 %v11565_v36  ;;  %v11579_v36 = vld [vmem:[%s14637_s1 + $0x1050] sm:$0xff] }
 0x1f2   :  { %7346 = vmatpush.bf16.msrb.mxu0 %v11540_v37  ;;  %v11587_v37 = vld [vmem:[%s14637_s1 + $0x1090] sm:$0xff] }
 0x1f3   :  { %7359 = vmatpush.bf16.msrb.mxu1 %v11548_v38  ;;  %v11595_v38 = vld [vmem:[%s14637_s1 + $0x10d0] sm:$0xff] }
 0x1f4   :  { %7372 = vmatpush.bf16.msrb.mxu2 %v11556_v39  ;;  %v11570_v39 = vld [vmem:[%s14637_s1 + $0x1008] sm:$0xff] }
 0x1f5   :  { %7385 = vmatpush.bf16.msrb.mxu3 %v11564_v42 }
 0x1f6   :  { %7347 = vmatpush.bf16.msrb.mxu0 %v11539_v46  ;;  %v11577_v46 = vld [vmem:[%s14637_s1 + $0x1040] sm:$0xff] }
 0x1f7   :  { %7360 = vmatpush.bf16.msrb.mxu1 %v11547_v48  ;;  %v84_v48 = vld [vmem:[%s14638_s0 + $0x200] sm:$0xff] }
 0x1f8   :  { %7373 = vmatpush.bf16.msrb.mxu2 %v11555_v49  ;;  %v86_v49 = vld [vmem:[%s14638_s0 + $0x210] sm:$0xff]  ;;  %v183_v56 = vpack.c.bf16 %v84_v48, %v84_v48 }
 0x1f9   :  { %7386 = vmatpush.bf16.msrb.mxu3 %v11563_v50  ;;  %v11608_v50 = vld [vmem:[%s14637_s1 + $0x1138] sm:$0xff]  ;;  %v11639_v48 = vld [vmem:[%s14637_s1 + $0x1230] sm:$0xff] }
 0x1fa   :  { %7348 = vmatpush.bf16.msrb.mxu0 %v11538_v51  ;;  %v11616_v51 = vld [vmem:[%s14637_s1 + $0x1178] sm:$0xff] }
 0x1fb   :  { %7361 = vmatpush.bf16.msrb.mxu1 %v11546_v52  ;;  %v85_v52 = vld [vmem:[%s14638_s0 + $0x208] sm:$0xff] }
 0x1fc   :  { %7374 = vmatpush.bf16.msrb.mxu2 %v11554_v53  ;;  %v11624_v53 = vld [vmem:[%s14637_s1 + $0x11b8] sm:$0xff] }
 0x1fd   :  { %7387 = vmatpush.bf16.msrb.mxu3 %v11562_v55  ;;  %v87_v55 = vld [vmem:[%s14638_s0 + $0x218] sm:$0xff] }
 0x1fe   :  { %7349 = vmatpush.bf16.msrb.mxu0 %v11537_v57  ;;  %v7143_v17 = vpop.f32.mrf.mxu0  ;;  %v185_v57 = vpack.c.bf16 %v86_v49, %v86_v49  ;;  %v186_v60 = vpack.c.bf16 %v87_v55, %v87_v55  ;;  %v11647_v49 = vld [vmem:[%s14637_s1 + $0x1270] sm:$0xff] }
 0x1ff   :  { %7362 = vmatpush.bf16.msrb.mxu1 %v11545_v58  ;;  %v7144_v18 = vadd.f32 %v7143_v17, %v13584_v45  ;;  %v7156_v20 = vpop.f32.mrf.mxu1  ;;  %v11569_v45 = vld [vmem:[%s14637_s1 + $0x1000] sm:$0xff]  ;;  %v11632_v58 = vld [vmem:[%s14637_s1 + $0x11f8] sm:$0xff] }
 0x200   :  { %7375 = vmatpush.bf16.msrb.mxu2 %v11553_v59  ;;  %v184_v59 = vpack.c.bf16 %v85_v52, %v85_v52  ;;  %v11638_v52 = vld [vmem:[%s14637_s1 + $0x1228] sm:$0xff] }
 0x201   :  { %7388 = vmatpush.bf16.msrb.mxu3 %v11561_v2  ;;  %7350 = vmatmul.bf16.vlgmr.msrb.gmra.mxu0 %v179_v4  ;;  %v7157_v23 = vadd.f32 %v7156_v20, %v7144_v18  ;;  %v11614_v2 = vld [vmem:[%s14637_s1 + $0x1168] sm:$0xff]  ;;  %v11628_v18 = vld [vmem:[%s14637_s1 + $0x11d8] sm:$0xff] }
 0x202   :  { %7394 = vmatpush.bf16.msra.mxu0 %v11576_v62  ;;  %7363 = vmatmul.bf16.vlgmr.msrb.gmra.mxu1 %v180_v7  ;;  %v11615_v62 = vld [vmem:[%s14637_s1 + $0x1170] sm:$0xff]  ;;  %v11630_v4 = vld [vmem:[%s14637_s1 + $0x11e8] sm:$0xff]  ;;  %v11605_v7 = vld [vmem:[%s14637_s1 + $0x1120] sm:$0xff] }
 0x203   :  { %7407 = vmatpush.bf16.msra.mxu1 %v11584_v63  ;;  %7376 = vmatmul.bf16.vlgmr.msrb.gmra.mxu2 %v181_v5  ;;  %v11623_v63 = vld [vmem:[%s14637_s1 + $0x11b0] sm:$0xff] }
 0x204   :  { %7420 = vmatpush.bf16.msra.mxu2 %v11592_v1  ;;  %7389 = vmatmul.bf16.vlgmr.msrb.gmra.mxu3 %v182_v8  ;;  %v11606_v1 = vld [vmem:[%s14637_s1 + $0x1128] sm:$0xff] }
 0x205   :  { %7433 = vmatpush.bf16.msra.mxu3 %v11600_v6 }
 0x206   :  { %7395 = vmatpush.bf16.msra.mxu0 %v11575_v9  ;;  %v7169_v28 = vpop.f32.mrf.mxu2  ;;  %v7145_v32 = vpop.f32.mrf.mxu0  ;;  %v11613_v9 = vld [vmem:[%s14637_s1 + $0x1160] sm:$0xff] }
 0x207   :  { %7408 = vmatpush.bf16.msra.mxu1 %v11583_v10  ;;  %v7170_v29 = vadd.f32 %v7169_v28, %v7157_v23  ;;  %v7182_v31 = vpop.f32.mrf.mxu3  ;;  %v7158_v35 = vpop.f32.mrf.mxu1  ;;  %v11621_v10 = vld [vmem:[%s14637_s1 + $0x11a0] sm:$0xff]  ;;  %v11611_v23 = vld [vmem:[%s14637_s1 + $0x1150] sm:$0xff]  ;;  %v11618_v28 = vld [vmem:[%s14637_s1 + $0x1188] sm:$0xff] }
 0x208   :  { %7421 = vmatpush.bf16.msra.mxu2 %v11591_v11  ;;  %v11601_v32 = vld [vmem:[%s14637_s1 + $0x1100] sm:$0xff] }
 0x209   :  { %7434 = vmatpush.bf16.msra.mxu3 %v11599_v12  ;;  %v13695_v33 = vadd.f32 %v7182_v31, %v7170_v29  ;;  %v11629_v12 = vld [vmem:[%s14637_s1 + $0x11e0] sm:$0xff] }
 0x20a   :  { %7396 = vmatpush.bf16.msra.mxu0 %v11574_v13  ;;  %v11604_v13 = vld [vmem:[%s14637_s1 + $0x1118] sm:$0xff]  ;;  %v88_v35 = vld [vmem:[%s14638_s0 + $0x220] sm:$0xff] }
 0x20b   :  { %7409 = vmatpush.bf16.msra.mxu1 %v11582_v14  ;;  %v11612_v14 = vld [vmem:[%s14637_s1 + $0x1158] sm:$0xff] }
 0x20c   :  { %7422 = vmatpush.bf16.msra.mxu2 %v11590_v15  ;;  %v11620_v15 = vld [vmem:[%s14637_s1 + $0x1198] sm:$0xff] }
 0x20d   :  { %7435 = vmatpush.bf16.msra.mxu3 %v11598_v16 }
 0x20e   :  { %7397 = vmatpush.bf16.msra.mxu0 %v11573_v19  ;;  %v7171_v42 = vpop.f32.mrf.mxu2 }
 0x20f   :  { %7410 = vmatpush.bf16.msra.mxu1 %v11581_v21  ;;  %v7184_v44 = vpop.f32.mrf.mxu3  ;;  %v11603_v21 = vld [vmem:[%s14637_s1 + $0x1110] sm:$0xff]  ;;  %v91_v42 = vld [vmem:[%s14638_s0 + $0x238] sm:$0xff] }
 0x210   :  { %7423 = vmatpush.bf16.msra.mxu2 %v11589_v22 }
 0x211   :  { %7436 = vmatpush.bf16.msra.mxu3 %v11597_v24  ;;  %v11619_v24 = vld [vmem:[%s14637_s1 + $0x1190] sm:$0xff] }
 0x212   :  { %7398 = vmatpush.bf16.msra.mxu0 %v11572_v25  ;;  %v11627_v25 = vld [vmem:[%s14637_s1 + $0x11d0] sm:$0xff] }
 0x213   :  { %7411 = vmatpush.bf16.msra.mxu1 %v11580_v26  ;;  %v11602_v26 = vld [vmem:[%s14637_s1 + $0x1108] sm:$0xff] }
 0x214   :  { %7424 = vmatpush.bf16.msra.mxu2 %v11588_v27  ;;  %v11610_v27 = vld [vmem:[%s14637_s1 + $0x1148] sm:$0xff] }
 0x215   :  { %7437 = vmatpush.bf16.msra.mxu3 %v11596_v30  ;;  %v11626_v30 = vld [vmem:[%s14637_s1 + $0x11c8] sm:$0xff] }
 0x216   :  { %7399 = vmatpush.bf16.msra.mxu0 %v11571_v34  ;;  %v11617_v34 = vld [vmem:[%s14637_s1 + $0x1180] sm:$0xff] }
 0x217   :  { %7412 = vmatpush.bf16.msra.mxu1 %v11579_v36  ;;  %v90_v36 = vld [vmem:[%s14638_s0 + $0x230] sm:$0xff] }
 0x218   :  { %7425 = vmatpush.bf16.msra.mxu2 %v11587_v37  ;;  %v11640_v37 = vld [vmem:[%s14637_s1 + $0x1238] sm:$0xff]  ;;  %v189_v44 = vpack.c.bf16 %v90_v36, %v90_v36 }
 0x219   :  { %7438 = vmatpush.bf16.msra.mxu3 %v11595_v38  ;;  %v11648_v38 = vld [vmem:[%s14637_s1 + $0x1278] sm:$0xff] }
 0x21a   :  { %7400 = vmatpush.bf16.msra.mxu0 %v11570_v39  ;;  %v89_v39 = vld [vmem:[%s14638_s0 + $0x228] sm:$0xff] }
 0x21b   :  { %7413 = vmatpush.bf16.msra.mxu1 %v11578_v40  ;;  %v11656_v40 = vld [vmem:[%s14637_s1 + $0x12b8] sm:$0xff] }
 0x21c   :  { %7426 = vmatpush.bf16.msra.mxu2 %v11586_v41  ;;  %v11625_v41 = vld [vmem:[%s14637_s1 + $0x11c0] sm:$0xff] }
 0x21d   :  { %7439 = vmatpush.bf16.msra.mxu3 %v11594_v43  ;;  %v187_v43 = vpack.c.bf16 %v88_v35, %v88_v35 }
 0x21e   :  { %7401 = vmatpush.bf16.msra.mxu0 %v11569_v45  ;;  %v7195_v5 = vpop.f32.mrf.mxu0  ;;  %v11664_v45 = vld [vmem:[%s14637_s1 + $0x12f8] sm:$0xff] }
 0x21f   :  { %7414 = vmatpush.bf16.msra.mxu1 %v11577_v46  ;;  %v7196_v6 = vadd.f32 %v7195_v5, %v13695_v33  ;;  %v7208_v8 = vpop.f32.mrf.mxu1  ;;  %v11609_v33 = vld [vmem:[%s14637_s1 + $0x1140] sm:$0xff]  ;;  %v188_v46 = vpack.c.bf16 %v89_v39, %v89_v39  ;;  %v11687_v39 = vld [vmem:[%s14637_s1 + $0x13b0] sm:$0xff] }
 0x220   :  { %7427 = vmatpush.bf16.msra.mxu2 %v11585_v47  ;;  %v190_v47 = vpack.c.bf16 %v91_v42, %v91_v42  ;;  %v11678_v42 = vld [vmem:[%s14637_s1 + $0x1368] sm:$0xff] }
 0x221   :  { %7440 = vmatpush.bf16.msra.mxu3 %v11593_v54  ;;  %7402 = vmatmul.bf16.vlgmr.msra.gmra.mxu0 %v183_v56  ;;  %v7209_v11 = vadd.f32 %v7208_v8, %v7196_v6  ;;  %v11654_v54 = vld [vmem:[%s14637_s1 + $0x12a8] sm:$0xff]  ;;  %v11660_v6 = vld [vmem:[%s14637_s1 + $0x12d8] sm:$0xff] }
 0x222   :  { %7446 = vmatpush.bf16.msrb.mxu0 %v11608_v50  ;;  %7415 = vmatmul.bf16.vlgmr.msra.gmra.mxu1 %v184_v59  ;;  %v11655_v50 = vld [vmem:[%s14637_s1 + $0x12b0] sm:$0xff]  ;;  %v11662_v56 = vld [vmem:[%s14637_s1 + $0x12e8] sm:$0xff]  ;;  %v11637_v59 = vld [vmem:[%s14637_s1 + $0x1220] sm:$0xff] }
 0x223   :  { %7459 = vmatpush.bf16.msrb.mxu1 %v11616_v51  ;;  %7428 = vmatmul.bf16.vlgmr.msra.gmra.mxu2 %v185_v57  ;;  %v11663_v51 = vld [vmem:[%s14637_s1 + $0x12f0] sm:$0xff] }
 0x224   :  { %7472 = vmatpush.bf16.msrb.mxu2 %v11624_v53  ;;  %7441 = vmatmul.bf16.vlgmr.msra.gmra.mxu3 %v186_v60  ;;  %v11646_v53 = vld [vmem:[%s14637_s1 + $0x1268] sm:$0xff] }
 0x225   :  { %7485 = vmatpush.bf16.msrb.mxu3 %v11632_v58 }
 0x226   :  { %7447 = vmatpush.bf16.msrb.mxu0 %v11607_v61  ;;  %v7221_v16 = vpop.f32.mrf.mxu2  ;;  %v7197_v20 = vpop.f32.mrf.mxu0  ;;  %v11645_v61 = vld [vmem:[%s14637_s1 + $0x1260] sm:$0xff] }
 0x227   :  { %7460 = vmatpush.bf16.msrb.mxu1 %v11615_v62  ;;  %v13803_v17 = vadd.f32 %v7221_v16, %v7209_v11  ;;  %v13808_v19 = vpop.f32.mrf.mxu3  ;;  %v7210_v22 = vpop.f32.mrf.mxu1  ;;  %v11653_v62 = vld [vmem:[%s14637_s1 + $0x12a0] sm:$0xff]  ;;  %v11642_v16 = vld [vmem:[%s14637_s1 + $0x1248] sm:$0xff] }
 0x228   :  { %7473 = vmatpush.bf16.msrb.mxu2 %v11623_v63  ;;  %v11641_v22 = vld [vmem:[%s14637_s1 + $0x1240] sm:$0xff] }
 0x229   :  { %7486 = vmatpush.bf16.msrb.mxu3 %v11631_v0  ;;  %v7235_v55 = vadd.f32 %v13808_v19, %v13803_v17  ;;  %v11661_v0 = vld [vmem:[%s14637_s1 + $0x12e0] sm:$0xff]  ;;  %v11650_v17 = vld [vmem:[%s14637_s1 + $0x1288] sm:$0xff] }
 0x22a   :  { %7448 = vmatpush.bf16.msrb.mxu0 %v11606_v1  ;;  %v11636_v1 = vld [vmem:[%s14637_s1 + $0x1218] sm:$0xff]  ;;  %v11658_v19 = vld [vmem:[%s14637_s1 + $0x12c8] sm:$0xff] }
 0x22b   :  { %7461 = vmatpush.bf16.msrb.mxu1 %v11614_v2  ;;  %v11644_v2 = vld [vmem:[%s14637_s1 + $0x1258] sm:$0xff] }
 0x22c   :  { %7474 = vmatpush.bf16.msrb.mxu2 %v11622_v3  ;;  %v11652_v3 = vld [vmem:[%s14637_s1 + $0x1298] sm:$0xff] }
 0x22d   :  { %7487 = vmatpush.bf16.msrb.mxu3 %v11630_v4 }
 0x22e   :  { %7449 = vmatpush.bf16.msrb.mxu0 %v11605_v7  ;;  %v7223_v29 = vpop.f32.mrf.mxu2 }
 0x22f   :  { %7462 = vmatpush.bf16.msrb.mxu1 %v11613_v9  ;;  %v7236_v31 = vpop.f32.mrf.mxu3  ;;  %v11688_v29 = vld [vmem:[%s14637_s1 + $0x13b8] sm:$0xff] }
 0x230   :  { %7475 = vmatpush.bf16.msrb.mxu2 %v11621_v10  ;;  %v11635_v10 = vld [vmem:[%s14637_s1 + $0x1210] sm:$0xff]  ;;  %v95_v31 = vld [vmem:[%s14638_s0 + $0x258] sm:$0xff] }
 0x231   :  { %7488 = vmatpush.bf16.msrb.mxu3 %v11629_v12  ;;  %v11643_v12 = vld [vmem:[%s14637_s1 + $0x1250] sm:$0xff]  ;;  %v194_v36 = vpack.c.bf16 %v95_v31, %v95_v31  ;;  %v11718_v31 = vld [vmem:[%s14637_s1 + $0x14a8] sm:$0xff] }
 0x232   :  { %7450 = vmatpush.bf16.msrb.mxu0 %v11604_v13  ;;  %v11651_v13 = vld [vmem:[%s14637_s1 + $0x1290] sm:$0xff] }
 0x233   :  { %7463 = vmatpush.bf16.msrb.mxu1 %v11612_v14  ;;  %v11659_v14 = vld [vmem:[%s14637_s1 + $0x12d0] sm:$0xff] }
 0x234   :  { %7476 = vmatpush.bf16.msrb.mxu2 %v11620_v15  ;;  %v11634_v15 = vld [vmem:[%s14637_s1 + $0x1208] sm:$0xff] }
 0x235   :  { %7489 = vmatpush.bf16.msrb.mxu3 %v11628_v18 }
 0x236   :  { %7451 = vmatpush.bf16.msrb.mxu0 %v11603_v21  ;;  %v11633_v21 = vld [vmem:[%s14637_s1 + $0x1200] sm:$0xff] }
 0x237   :  { %7464 = vmatpush.bf16.msrb.mxu1 %v11611_v23  ;;  %v11649_v23 = vld [vmem:[%s14637_s1 + $0x1280] sm:$0xff] }
 0x238   :  { %7477 = vmatpush.bf16.msrb.mxu2 %v11619_v24  ;;  %v92_v24 = vld [vmem:[%s14638_s0 + $0x240] sm:$0xff] }
 0x239   :  { %7490 = vmatpush.bf16.msrb.mxu3 %v11627_v25  ;;  %v94_v25 = vld [vmem:[%s14638_s0 + $0x250] sm:$0xff] }
 0x23a   :  { %7452 = vmatpush.bf16.msrb.mxu0 %v11602_v26  ;;  %v11672_v26 = vld [vmem:[%s14637_s1 + $0x1338] sm:$0xff] }
 0x23b   :  { %7465 = vmatpush.bf16.msrb.mxu1 %v11610_v27  ;;  %v11680_v27 = vld [vmem:[%s14637_s1 + $0x1378] sm:$0xff] }
 0x23c   :  { %7478 = vmatpush.bf16.msrb.mxu2 %v11618_v28  ;;  %v93_v28 = vld [vmem:[%s14638_s0 + $0x248] sm:$0xff] }
 0x23d   :  { %7491 = vmatpush.bf16.msrb.mxu3 %v11626_v30  ;;  %v11657_v30 = vld [vmem:[%s14637_s1 + $0x12c0] sm:$0xff]  ;;  %v192_v35 = vpack.c.bf16 %v93_v28, %v93_v28  ;;  %v11727_v28 = vld [vmem:[%s14637_s1 + $0x14f0] sm:$0xff] }
 0x23e   :  { %7453 = vmatpush.bf16.msrb.mxu0 %v11601_v32  ;;  %v7247_v57 = vpop.f32.mrf.mxu0  ;;  %v191_v32 = vpack.c.bf16 %v92_v24, %v92_v24 }
 0x23f   :  { %7466 = vmatpush.bf16.msrb.mxu1 %v11609_v33  ;;  %v7248_v58 = vadd.f32 %v7247_v57, %v7235_v55  ;;  %v7260_v60 = vpop.f32.mrf.mxu1  ;;  %v193_v33 = vpack.c.bf16 %v94_v25, %v94_v25  ;;  %v11684_v55 = vld [vmem:[%s14637_s1 + $0x1398] sm:$0xff]  ;;  %v11703_v25 = vld [vmem:[%s14637_s1 + $0x1430] sm:$0xff] }
 0x240   :  { %7479 = vmatpush.bf16.msrb.mxu2 %v11617_v34  ;;  %v11696_v34 = vld [vmem:[%s14637_s1 + $0x13f8] sm:$0xff] }
 0x241   :  { %7492 = vmatpush.bf16.msrb.mxu3 %v11625_v41  ;;  %7454 = vmatmul.bf16.vlgmr.msrb.gmra.mxu0 %v187_v43  ;;  %v7261_v63 = vadd.f32 %v7260_v60, %v7248_v58  ;;  %v11670_v41 = vld [vmem:[%s14637_s1 + $0x1328] sm:$0xff]  ;;  %v11692_v58 = vld [vmem:[%s14637_s1 + $0x13d8] sm:$0xff] }
 0x242   :  { %7498 = vmatpush.bf16.msra.mxu0 %v11640_v37  ;;  %7467 = vmatmul.bf16.vlgmr.msrb.gmra.mxu1 %v188_v46  ;;  %v11671_v37 = vld [vmem:[%s14637_s1 + $0x1330] sm:$0xff]  ;;  %v11686_v43 = vld [vmem:[%s14637_s1 + $0x13a8] sm:$0xff] }
 0x243   :  { %7511 = vmatpush.bf16.msra.mxu1 %v11648_v38  ;;  %7480 = vmatmul.bf16.vlgmr.msrb.gmra.mxu2 %v189_v44  ;;  %v11679_v38 = vld [vmem:[%s14637_s1 + $0x1370] sm:$0xff]  ;;  %v11694_v44 = vld [vmem:[%s14637_s1 + $0x13e8] sm:$0xff] }
 0x244   :  { %7524 = vmatpush.bf16.msra.mxu2 %v11656_v40  ;;  %7493 = vmatmul.bf16.vlgmr.msrb.gmra.mxu3 %v190_v47  ;;  %v11695_v40 = vld [vmem:[%s14637_s1 + $0x13f0] sm:$0xff]  ;;  %v11669_v47 = vld [vmem:[%s14637_s1 + $0x1320] sm:$0xff] }
 0x245   :  { %7537 = vmatpush.bf16.msra.mxu3 %v11664_v45 }
 0x246   :  { %7499 = vmatpush.bf16.msra.mxu0 %v11639_v48  ;;  %v7273_v4 = vpop.f32.mrf.mxu2  ;;  %v7249_v8 = vpop.f32.mrf.mxu0 }
 0x247   :  { %7512 = vmatpush.bf16.msra.mxu1 %v11647_v49  ;;  %v7274_v5 = vadd.f32 %v7273_v4, %v7261_v63  ;;  %v7286_v7 = vpop.f32.mrf.mxu3  ;;  %v7262_v11 = vpop.f32.mrf.mxu1  ;;  %v11677_v49 = vld [vmem:[%s14637_s1 + $0x1360] sm:$0xff]  ;;  %v11674_v4 = vld [vmem:[%s14637_s1 + $0x1348] sm:$0xff] }
 0x248   :  { %7525 = vmatpush.bf16.msra.mxu2 %v11655_v50  ;;  %v11685_v50 = vld [vmem:[%s14637_s1 + $0x13a0] sm:$0xff] }
 0x249   :  { %7538 = vmatpush.bf16.msra.mxu3 %v11663_v51  ;;  %v13920_v9 = vadd.f32 %v7286_v7, %v7274_v5  ;;  %v11682_v5 = vld [vmem:[%s14637_s1 + $0x1388] sm:$0xff]  ;;  %v11681_v11 = vld [vmem:[%s14637_s1 + $0x1380] sm:$0xff] }
 0x24a   :  { %7500 = vmatpush.bf16.msra.mxu0 %v11638_v52  ;;  %v11693_v52 = vld [vmem:[%s14637_s1 + $0x13e0] sm:$0xff]  ;;  %v11690_v7 = vld [vmem:[%s14637_s1 + $0x13c8] sm:$0xff] }
 0x24b   :  { %7513 = vmatpush.bf16.msra.mxu1 %v11646_v53  ;;  %v11668_v53 = vld [vmem:[%s14637_s1 + $0x1318] sm:$0xff] }
 0x24c   :  { %7526 = vmatpush.bf16.msra.mxu2 %v11654_v54  ;;  %v11676_v54 = vld [vmem:[%s14637_s1 + $0x1358] sm:$0xff] }
 0x24d   :  { %7539 = vmatpush.bf16.msra.mxu3 %v11662_v56 }
 0x24e   :  { %7501 = vmatpush.bf16.msra.mxu0 %v11637_v59  ;;  %v7275_v18 = vpop.f32.mrf.mxu2 }
 0x24f   :  { %7514 = vmatpush.bf16.msra.mxu1 %v11645_v61  ;;  %v7288_v20 = vpop.f32.mrf.mxu3  ;;  %v11689_v18 = vld [vmem:[%s14637_s1 + $0x13c0] sm:$0xff] }
 0x250   :  { %7527 = vmatpush.bf16.msra.mxu2 %v11653_v62  ;;  %v11667_v62 = vld [vmem:[%s14637_s1 + $0x1310] sm:$0xff] }
 0x251   :  { %7540 = vmatpush.bf16.msra.mxu3 %v11661_v0  ;;  %v11675_v0 = vld [vmem:[%s14637_s1 + $0x1350] sm:$0xff] }
 0x252   :  { %7502 = vmatpush.bf16.msra.mxu0 %v11636_v1  ;;  %v11683_v1 = vld [vmem:[%s14637_s1 + $0x1390] sm:$0xff] }
 0x253   :  { %7515 = vmatpush.bf16.msra.mxu1 %v11644_v2  ;;  %v11691_v2 = vld [vmem:[%s14637_s1 + $0x13d0] sm:$0xff] }
 0x254   :  { %7528 = vmatpush.bf16.msra.mxu2 %v11652_v3  ;;  %v11666_v3 = vld [vmem:[%s14637_s1 + $0x1308] sm:$0xff] }
 0x255   :  { %7541 = vmatpush.bf16.msra.mxu3 %v11660_v6 }
 0x256   :  { %7503 = vmatpush.bf16.msra.mxu0 %v11635_v10  ;;  %v11673_v10 = vld [vmem:[%s14637_s1 + $0x1340] sm:$0xff] }
 0x257   :  { %7516 = vmatpush.bf16.msra.mxu1 %v11643_v12  ;;  %v96_v12 = vld [vmem:[%s14638_s0 + $0x260] sm:$0xff] }
 0x258   :  { %7529 = vmatpush.bf16.msra.mxu2 %v11651_v13  ;;  %v98_v13 = vld [vmem:[%s14638_s0 + $0x270] sm:$0xff]  ;;  %v195_v20 = vpack.c.bf16 %v96_v12, %v96_v12 }
 0x259   :  { %7542 = vmatpush.bf16.msra.mxu3 %v11659_v14  ;;  %v11704_v14 = vld [vmem:[%s14637_s1 + $0x1438] sm:$0xff] }
 0x25a   :  { %7504 = vmatpush.bf16.msra.mxu0 %v11634_v15  ;;  %v11712_v15 = vld [vmem:[%s14637_s1 + $0x1478] sm:$0xff] }
 0x25b   :  { %7517 = vmatpush.bf16.msra.mxu1 %v11642_v16  ;;  %v97_v16 = vld [vmem:[%s14638_s0 + $0x268] sm:$0xff] }
 0x25c   :  { %7530 = vmatpush.bf16.msra.mxu2 %v11650_v17  ;;  %v11720_v17 = vld [vmem:[%s14637_s1 + $0x14b8] sm:$0xff] }
 0x25d   :  { %7543 = vmatpush.bf16.msra.mxu3 %v11658_v19  ;;  %v99_v19 = vld [vmem:[%s14638_s0 + $0x278] sm:$0xff] }
 0x25e   :  { %7505 = vmatpush.bf16.msra.mxu0 %v11633_v21  ;;  %v7299_v45 = vpop.f32.mrf.mxu0  ;;  %v197_v21 = vpack.c.bf16 %v98_v13, %v98_v13  ;;  %v198_v24 = vpack.c.bf16 %v99_v19, %v99_v19  ;;  %v11735_v13 = vld [vmem:[%s14637_s1 + $0x1530] sm:$0xff]  ;;  %v11750_v19 = vld [vmem:[%s14637_s1 + $0x15a8] sm:$0xff] }
 0x25f   :  { %7518 = vmatpush.bf16.msra.mxu1 %v11641_v22  ;;  %v7300_v46 = vadd.f32 %v7299_v45, %v13920_v9  ;;  %v7312_v48 = vpop.f32.mrf.mxu1  ;;  %v11665_v9 = vld [vmem:[%s14637_s1 + $0x1300] sm:$0xff]  ;;  %v11728_v22 = vld [vmem:[%s14637_s1 + $0x14f8] sm:$0xff] }
 0x260   :  { %7531 = vmatpush.bf16.msra.mxu2 %v11649_v23  ;;  %v196_v23 = vpack.c.bf16 %v97_v16, %v97_v16  ;;  %v11759_v16 = vld [vmem:[%s14637_s1 + $0x15f0] sm:$0xff] }
 0x261   :  { %7544 = vmatpush.bf16.msra.mxu3 %v11657_v30  ;;  %7506 = vmatmul.bf16.vlgmr.msra.gmra.mxu0 %v191_v32  ;;  %v7313_v51 = vadd.f32 %v7312_v48, %v7300_v46  ;;  %v11710_v30 = vld [vmem:[%s14637_s1 + $0x1468] sm:$0xff]  ;;  %v11724_v46 = vld [vmem:[%s14637_s1 + $0x14d8] sm:$0xff] }
 0x262   :  { %7550 = vmatpush.bf16.msrb.mxu0 %v11672_v26  ;;  %7519 = vmatmul.bf16.vlgmr.msra.gmra.mxu1 %v192_v35  ;;  %v11711_v26 = vld [vmem:[%s14637_s1 + $0x1470] sm:$0xff]  ;;  %v11726_v32 = vld [vmem:[%s14637_s1 + $0x14e8] sm:$0xff]  ;;  %v11701_v35 = vld [vmem:[%s14637_s1 + $0x1420] sm:$0xff] }
 0x263   :  { %7563 = vmatpush.bf16.msrb.mxu1 %v11680_v27  ;;  %7532 = vmatmul.bf16.vlgmr.msra.gmra.mxu2 %v193_v33  ;;  %v11719_v27 = vld [vmem:[%s14637_s1 + $0x14b0] sm:$0xff] }
 0x264   :  { %7576 = vmatpush.bf16.msrb.mxu2 %v11688_v29  ;;  %7545 = vmatmul.bf16.vlgmr.msra.gmra.mxu3 %v194_v36  ;;  %v11702_v29 = vld [vmem:[%s14637_s1 + $0x1428] sm:$0xff] }
 0x265   :  { %7589 = vmatpush.bf16.msrb.mxu3 %v11696_v34 }
 0x266   :  { %7551 = vmatpush.bf16.msrb.mxu0 %v11671_v37  ;;  %v7325_v56 = vpop.f32.mrf.mxu2  ;;  %v7301_v60 = vpop.f32.mrf.mxu0  ;;  %v11709_v37 = vld [vmem:[%s14637_s1 + $0x1460] sm:$0xff] }
 0x267   :  { %7564 = vmatpush.bf16.msrb.mxu1 %v11679_v38  ;;  %v7326_v57 = vadd.f32 %v7325_v56, %v7313_v51  ;;  %v7338_v59 = vpop.f32.mrf.mxu3  ;;  %v7314_v63 = vpop.f32.mrf.mxu1  ;;  %v11717_v38 = vld [vmem:[%s14637_s1 + $0x14a0] sm:$0xff]  ;;  %v11706_v56 = vld [vmem:[%s14637_s1 + $0x1448] sm:$0xff] }
 0x268   :  { %7577 = vmatpush.bf16.msrb.mxu2 %v11687_v39  ;;  %v11713_v63 = vld [vmem:[%s14637_s1 + $0x1480] sm:$0xff] }
 0x269   :  { %7590 = vmatpush.bf16.msrb.mxu3 %v11695_v40  ;;  %v14031_v61 = vadd.f32 %v7338_v59, %v7326_v57  ;;  %v11725_v40 = vld [vmem:[%s14637_s1 + $0x14e0] sm:$0xff]  ;;  %v11714_v57 = vld [vmem:[%s14637_s1 + $0x1488] sm:$0xff] }
 0x26a   :  { %7552 = vmatpush.bf16.msrb.mxu0 %v11670_v41  ;;  %v11700_v41 = vld [vmem:[%s14637_s1 + $0x1418] sm:$0xff]  ;;  %v11722_v59 = vld [vmem:[%s14637_s1 + $0x14c8] sm:$0xff] }
 0x26b   :  { %7565 = vmatpush.bf16.msrb.mxu1 %v11678_v42  ;;  %v11708_v42 = vld [vmem:[%s14637_s1 + $0x1458] sm:$0xff] }
 0x26c   :  { %7578 = vmatpush.bf16.msrb.mxu2 %v11686_v43  ;;  %v11716_v43 = vld [vmem:[%s14637_s1 + $0x1498] sm:$0xff] }
 0x26d   :  { %7591 = vmatpush.bf16.msrb.mxu3 %v11694_v44 }
 0x26e   :  { %7553 = vmatpush.bf16.msrb.mxu0 %v11669_v47  ;;  %v7327_v6 = vpop.f32.mrf.mxu2 }
 0x26f   :  { %7566 = vmatpush.bf16.msrb.mxu1 %v11677_v49  ;;  %v7340_v8 = vpop.f32.mrf.mxu3  ;;  %v11721_v6 = vld [vmem:[%s14637_s1 + $0x14c0] sm:$0xff] }
 0x270   :  { %7579 = vmatpush.bf16.msrb.mxu2 %v11685_v50  ;;  %v11699_v50 = vld [vmem:[%s14637_s1 + $0x1410] sm:$0xff] }
 0x271   :  { %7592 = vmatpush.bf16.msrb.mxu3 %v11693_v52  ;;  %v11707_v52 = vld [vmem:[%s14637_s1 + $0x1450] sm:$0xff] }
 0x272   :  { %7554 = vmatpush.bf16.msrb.mxu0 %v11668_v53  ;;  %v11715_v53 = vld [vmem:[%s14637_s1 + $0x1490] sm:$0xff] }
 0x273   :  { %7567 = vmatpush.bf16.msrb.mxu1 %v11676_v54  ;;  %v11723_v54 = vld [vmem:[%s14637_s1 + $0x14d0] sm:$0xff] }
 0x274   :  { %7580 = vmatpush.bf16.msrb.mxu2 %v11684_v55  ;;  %v11698_v55 = vld [vmem:[%s14637_s1 + $0x1408] sm:$0xff] }
 0x275   :  { %7593 = vmatpush.bf16.msrb.mxu3 %v11692_v58 }
 0x276   :  { %7555 = vmatpush.bf16.msrb.mxu0 %v11667_v62  ;;  %v11705_v62 = vld [vmem:[%s14637_s1 + $0x1440] sm:$0xff] }
 0x277   :  { %7568 = vmatpush.bf16.msrb.mxu1 %v11675_v0  ;;  %v100_v0 = vld [vmem:[%s14638_s0 + $0x280] sm:$0xff] }
 0x278   :  { %7581 = vmatpush.bf16.msrb.mxu2 %v11683_v1  ;;  %v102_v1 = vld [vmem:[%s14638_s0 + $0x290] sm:$0xff]  ;;  %v199_v8 = vpack.c.bf16 %v100_v0, %v100_v0 }
 0x279   :  { %7594 = vmatpush.bf16.msrb.mxu3 %v11691_v2  ;;  %v11736_v2 = vld [vmem:[%s14637_s1 + $0x1538] sm:$0xff] }
 0x27a   :  { %7556 = vmatpush.bf16.msrb.mxu0 %v11666_v3  ;;  %v11744_v3 = vld [vmem:[%s14637_s1 + $0x1578] sm:$0xff] }
 0x27b   :  { %7569 = vmatpush.bf16.msrb.mxu1 %v11674_v4  ;;  %v101_v4 = vld [vmem:[%s14638_s0 + $0x288] sm:$0xff] }
 0x27c   :  { %7582 = vmatpush.bf16.msrb.mxu2 %v11682_v5  ;;  %v11752_v5 = vld [vmem:[%s14637_s1 + $0x15b8] sm:$0xff] }
 0x27d   :  { %7595 = vmatpush.bf16.msrb.mxu3 %v11690_v7  ;;  %v103_v7 = vld [vmem:[%s14638_s0 + $0x298] sm:$0xff] }
 0x27e   :  { %7557 = vmatpush.bf16.msrb.mxu0 %v11665_v9  ;;  %v7351_v33 = vpop.f32.mrf.mxu0  ;;  %v201_v9 = vpack.c.bf16 %v102_v1, %v102_v1  ;;  %v202_v12 = vpack.c.bf16 %v103_v7, %v103_v7  ;;  %v11767_v1 = vld [vmem:[%s14637_s1 + $0x1630] sm:$0xff]  ;;  %v11782_v7 = vld [vmem:[%s14637_s1 + $0x16a8] sm:$0xff] }
 0x27f   :  { %7570 = vmatpush.bf16.msrb.mxu1 %v11673_v10  ;;  %v7352_v34 = vadd.f32 %v7351_v33, %v14031_v61  ;;  %v7364_v36 = vpop.f32.mrf.mxu1  ;;  %v11697_v61 = vld [vmem:[%s14637_s1 + $0x1400] sm:$0xff]  ;;  %v11760_v10 = vld [vmem:[%s14637_s1 + $0x15f8] sm:$0xff] }
 0x280   :  { %7583 = vmatpush.bf16.msrb.mxu2 %v11681_v11  ;;  %v200_v11 = vpack.c.bf16 %v101_v4, %v101_v4  ;;  %v11791_v4 = vld [vmem:[%s14637_s1 + $0x16f0] sm:$0xff] }
 0x281   :  { %7596 = vmatpush.bf16.msrb.mxu3 %v11689_v18  ;;  %7558 = vmatmul.bf16.vlgmr.msrb.gmra.mxu0 %v195_v20  ;;  %v7365_v39 = vadd.f32 %v7364_v36, %v7352_v34  ;;  %v11742_v18 = vld [vmem:[%s14637_s1 + $0x1568] sm:$0xff]  ;;  %v11756_v34 = vld [vmem:[%s14637_s1 + $0x15d8] sm:$0xff] }
 0x282   :  { %7602 = vmatpush.bf16.msra.mxu0 %v11704_v14  ;;  %7571 = vmatmul.bf16.vlgmr.msrb.gmra.mxu1 %v196_v23  ;;  %v11743_v14 = vld [vmem:[%s14637_s1 + $0x1570] sm:$0xff]  ;;  %v11758_v20 = vld [vmem:[%s14637_s1 + $0x15e8] sm:$0xff]  ;;  %v11733_v23 = vld [vmem:[%s14637_s1 + $0x1520] sm:$0xff] }
 0x283   :  { %7615 = vmatpush.bf16.msra.mxu1 %v11712_v15  ;;  %7584 = vmatmul.bf16.vlgmr.msrb.gmra.mxu2 %v197_v21  ;;  %v11751_v15 = vld [vmem:[%s14637_s1 + $0x15b0] sm:$0xff] }
 0x284   :  { %7628 = vmatpush.bf16.msra.mxu2 %v11720_v17  ;;  %7597 = vmatmul.bf16.vlgmr.msrb.gmra.mxu3 %v198_v24  ;;  %v11734_v17 = vld [vmem:[%s14637_s1 + $0x1528] sm:$0xff] }
 0x285   :  { %7641 = vmatpush.bf16.msra.mxu3 %v11728_v22 }
 0x286   :  { %7603 = vmatpush.bf16.msra.mxu0 %v11703_v25  ;;  %v7377_v44 = vpop.f32.mrf.mxu2  ;;  %v7353_v48 = vpop.f32.mrf.mxu0  ;;  %v11741_v25 = vld [vmem:[%s14637_s1 + $0x1560] sm:$0xff] }
 0x287   :  { %7616 = vmatpush.bf16.msra.mxu1 %v11711_v26  ;;  %v7378_v45 = vadd.f32 %v7377_v44, %v7365_v39  ;;  %v7390_v47 = vpop.f32.mrf.mxu3  ;;  %v7366_v51 = vpop.f32.mrf.mxu1  ;;  %v11749_v26 = vld [vmem:[%s14637_s1 + $0x15a0] sm:$0xff]  ;;  %v11738_v44 = vld [vmem:[%s14637_s1 + $0x1548] sm:$0xff] }
 0x288   :  { %7629 = vmatpush.bf16.msra.mxu2 %v11719_v27  ;;  %v11745_v51 = vld [vmem:[%s14637_s1 + $0x1580] sm:$0xff] }
 0x289   :  { %7642 = vmatpush.bf16.msra.mxu3 %v11727_v28  ;;  %v14142_v49 = vadd.f32 %v7390_v47, %v7378_v45  ;;  %v11757_v28 = vld [vmem:[%s14637_s1 + $0x15e0] sm:$0xff]  ;;  %v11746_v45 = vld [vmem:[%s14637_s1 + $0x1588] sm:$0xff] }
 0x28a   :  { %7604 = vmatpush.bf16.msra.mxu0 %v11702_v29  ;;  %v11732_v29 = vld [vmem:[%s14637_s1 + $0x1518] sm:$0xff]  ;;  %v11754_v47 = vld [vmem:[%s14637_s1 + $0x15c8] sm:$0xff] }
 0x28b   :  { %7617 = vmatpush.bf16.msra.mxu1 %v11710_v30  ;;  %v11740_v30 = vld [vmem:[%s14637_s1 + $0x1558] sm:$0xff] }
 0x28c   :  { %7630 = vmatpush.bf16.msra.mxu2 %v11718_v31  ;;  %v11748_v31 = vld [vmem:[%s14637_s1 + $0x1598] sm:$0xff] }
 0x28d   :  { %7643 = vmatpush.bf16.msra.mxu3 %v11726_v32 }
 0x28e   :  { %7605 = vmatpush.bf16.msra.mxu0 %v11701_v35  ;;  %v7379_v58 = vpop.f32.mrf.mxu2 }
 0x28f   :  { %7618 = vmatpush.bf16.msra.mxu1 %v11709_v37  ;;  %v7392_v60 = vpop.f32.mrf.mxu3  ;;  %v11753_v58 = vld [vmem:[%s14637_s1 + $0x15c0] sm:$0xff] }
 0x290   :  { %7631 = vmatpush.bf16.msra.mxu2 %v11717_v38  ;;  %v11731_v38 = vld [vmem:[%s14637_s1 + $0x1510] sm:$0xff] }
 0x291   :  { %7644 = vmatpush.bf16.msra.mxu3 %v11725_v40  ;;  %v11739_v40 = vld [vmem:[%s14637_s1 + $0x1550] sm:$0xff] }
 0x292   :  { %7606 = vmatpush.bf16.msra.mxu0 %v11700_v41  ;;  %v11747_v41 = vld [vmem:[%s14637_s1 + $0x1590] sm:$0xff] }
 0x293   :  { %7619 = vmatpush.bf16.msra.mxu1 %v11708_v42  ;;  %v11755_v42 = vld [vmem:[%s14637_s1 + $0x15d0] sm:$0xff] }
 0x294   :  { %7632 = vmatpush.bf16.msra.mxu2 %v11716_v43  ;;  %v11730_v43 = vld [vmem:[%s14637_s1 + $0x1508] sm:$0xff] }
 0x295   :  { %7645 = vmatpush.bf16.msra.mxu3 %v11724_v46 }
 0x296   :  { %7607 = vmatpush.bf16.msra.mxu0 %v11699_v50  ;;  %v11737_v50 = vld [vmem:[%s14637_s1 + $0x1540] sm:$0xff] }
 0x297   :  { %7620 = vmatpush.bf16.msra.mxu1 %v11707_v52  ;;  %v104_v52 = vld [vmem:[%s14638_s0 + $0x2a0] sm:$0xff] }
 0x298   :  { %7633 = vmatpush.bf16.msra.mxu2 %v11715_v53  ;;  %v106_v53 = vld [vmem:[%s14638_s0 + $0x2b0] sm:$0xff]  ;;  %v203_v60 = vpack.c.bf16 %v104_v52, %v104_v52 }
 0x299   :  { %7646 = vmatpush.bf16.msra.mxu3 %v11723_v54  ;;  %v11768_v54 = vld [vmem:[%s14637_s1 + $0x1638] sm:$0xff] }
 0x29a   :  { %7608 = vmatpush.bf16.msra.mxu0 %v11698_v55  ;;  %v11776_v55 = vld [vmem:[%s14637_s1 + $0x1678] sm:$0xff] }
 0x29b   :  { %7621 = vmatpush.bf16.msra.mxu1 %v11706_v56  ;;  %v105_v56 = vld [vmem:[%s14638_s0 + $0x2a8] sm:$0xff] }
 0x29c   :  { %7634 = vmatpush.bf16.msra.mxu2 %v11714_v57  ;;  %v11784_v57 = vld [vmem:[%s14637_s1 + $0x16b8] sm:$0xff] }
 0x29d   :  { %7647 = vmatpush.bf16.msra.mxu3 %v11722_v59  ;;  %v107_v59 = vld [vmem:[%s14638_s0 + $0x2b8] sm:$0xff] }
 0x29e   :  { %7609 = vmatpush.bf16.msra.mxu0 %v11697_v61  ;;  %v7403_v21 = vpop.f32.mrf.mxu0  ;;  %v205_v61 = vpack.c.bf16 %v106_v53, %v106_v53  ;;  %v206_v0 = vpack.c.bf16 %v107_v59, %v107_v59  ;;  %v11799_v53 = vld [vmem:[%s14637_s1 + $0x1730] sm:$0xff]  ;;  %v11814_v59 = vld [vmem:[%s14637_s1 + $0x17a8] sm:$0xff] }
 0x29f   :  { %7622 = vmatpush.bf16.msra.mxu1 %v11705_v62  ;;  %v7404_v22 = vadd.f32 %v7403_v21, %v14142_v49  ;;  %v7416_v24 = vpop.f32.mrf.mxu1  ;;  %v11729_v49 = vld [vmem:[%s14637_s1 + $0x1500] sm:$0xff]  ;;  %v11792_v62 = vld [vmem:[%s14637_s1 + $0x16f8] sm:$0xff] }
 0x2a0   :  { %7635 = vmatpush.bf16.msra.mxu2 %v11713_v63  ;;  %v204_v63 = vpack.c.bf16 %v105_v56, %v105_v56  ;;  %v11823_v56 = vld [vmem:[%s14637_s1 + $0x17f0] sm:$0xff] }
 0x2a1   :  { %7648 = vmatpush.bf16.msra.mxu3 %v11721_v6  ;;  %7610 = vmatmul.bf16.vlgmr.msra.gmra.mxu0 %v199_v8  ;;  %v7417_v27 = vadd.f32 %v7416_v24, %v7404_v22  ;;  %v11774_v6 = vld [vmem:[%s14637_s1 + $0x1668] sm:$0xff]  ;;  %v11788_v22 = vld [vmem:[%s14637_s1 + $0x16d8] sm:$0xff] }
 0x2a2   :  { %7654 = vmatpush.bf16.msrb.mxu0 %v11736_v2  ;;  %7623 = vmatmul.bf16.vlgmr.msra.gmra.mxu1 %v200_v11  ;;  %v11775_v2 = vld [vmem:[%s14637_s1 + $0x1670] sm:$0xff]  ;;  %v11790_v8 = vld [vmem:[%s14637_s1 + $0x16e8] sm:$0xff]  ;;  %v11765_v11 = vld [vmem:[%s14637_s1 + $0x1620] sm:$0xff] }
 0x2a3   :  { %7667 = vmatpush.bf16.msrb.mxu1 %v11744_v3  ;;  %7636 = vmatmul.bf16.vlgmr.msra.gmra.mxu2 %v201_v9  ;;  %v11783_v3 = vld [vmem:[%s14637_s1 + $0x16b0] sm:$0xff] }
 0x2a4   :  { %7680 = vmatpush.bf16.msrb.mxu2 %v11752_v5  ;;  %7649 = vmatmul.bf16.vlgmr.msra.gmra.mxu3 %v202_v12  ;;  %v11766_v5 = vld [vmem:[%s14637_s1 + $0x1628] sm:$0xff] }
 0x2a5   :  { %7693 = vmatpush.bf16.msrb.mxu3 %v11760_v10 }
 0x2a6   :  { %7655 = vmatpush.bf16.msrb.mxu0 %v11735_v13  ;;  %v7429_v32 = vpop.f32.mrf.mxu2  ;;  %v7405_v36 = vpop.f32.mrf.mxu0  ;;  %v11773_v13 = vld [vmem:[%s14637_s1 + $0x1660] sm:$0xff] }
 0x2a7   :  { %7668 = vmatpush.bf16.msrb.mxu1 %v11743_v14  ;;  %v7430_v33 = vadd.f32 %v7429_v32, %v7417_v27  ;;  %v7442_v35 = vpop.f32.mrf.mxu3  ;;  %v7418_v39 = vpop.f32.mrf.mxu1  ;;  %v11781_v14 = vld [vmem:[%s14637_s1 + $0x16a0] sm:$0xff]  ;;  %v11770_v32 = vld [vmem:[%s14637_s1 + $0x1648] sm:$0xff] }
 0x2a8   :  { %7681 = vmatpush.bf16.msrb.mxu2 %v11751_v15  ;;  %v11777_v39 = vld [vmem:[%s14637_s1 + $0x1680] sm:$0xff] }
 0x2a9   :  { %7694 = vmatpush.bf16.msrb.mxu3 %v11759_v16  ;;  %v14253_v37 = vadd.f32 %v7442_v35, %v7430_v33  ;;  %v11789_v16 = vld [vmem:[%s14637_s1 + $0x16e0] sm:$0xff]  ;;  %v11778_v33 = vld [vmem:[%s14637_s1 + $0x1688] sm:$0xff] }
 0x2aa   :  { %7656 = vmatpush.bf16.msrb.mxu0 %v11734_v17  ;;  %v11764_v17 = vld [vmem:[%s14637_s1 + $0x1618] sm:$0xff]  ;;  %v11786_v35 = vld [vmem:[%s14637_s1 + $0x16c8] sm:$0xff] }
 0x2ab   :  { %7669 = vmatpush.bf16.msrb.mxu1 %v11742_v18  ;;  %v11772_v18 = vld [vmem:[%s14637_s1 + $0x1658] sm:$0xff] }
 0x2ac   :  { %7682 = vmatpush.bf16.msrb.mxu2 %v11750_v19  ;;  %v11780_v19 = vld [vmem:[%s14637_s1 + $0x1698] sm:$0xff] }
 0x2ad   :  { %7695 = vmatpush.bf16.msrb.mxu3 %v11758_v20 }
 0x2ae   :  { %7657 = vmatpush.bf16.msrb.mxu0 %v11733_v23  ;;  %v7431_v46 = vpop.f32.mrf.mxu2 }
 0x2af   :  { %7670 = vmatpush.bf16.msrb.mxu1 %v11741_v25  ;;  %v7444_v48 = vpop.f32.mrf.mxu3  ;;  %v11785_v46 = vld [vmem:[%s14637_s1 + $0x16c0] sm:$0xff] }
 0x2b0   :  { %7683 = vmatpush.bf16.msrb.mxu2 %v11749_v26  ;;  %v11763_v26 = vld [vmem:[%s14637_s1 + $0x1610] sm:$0xff] }
 0x2b1   :  { %7696 = vmatpush.bf16.msrb.mxu3 %v11757_v28  ;;  %v11771_v28 = vld [vmem:[%s14637_s1 + $0x1650] sm:$0xff] }
 0x2b2   :  { %7658 = vmatpush.bf16.msrb.mxu0 %v11732_v29  ;;  %v11779_v29 = vld [vmem:[%s14637_s1 + $0x1690] sm:$0xff] }
 0x2b3   :  { %7671 = vmatpush.bf16.msrb.mxu1 %v11740_v30  ;;  %v11787_v30 = vld [vmem:[%s14637_s1 + $0x16d0] sm:$0xff] }
 0x2b4   :  { %7684 = vmatpush.bf16.msrb.mxu2 %v11748_v31  ;;  %v11762_v31 = vld [vmem:[%s14637_s1 + $0x1608] sm:$0xff] }
 0x2b5   :  { %7697 = vmatpush.bf16.msrb.mxu3 %v11756_v34 }
 0x2b6   :  { %7659 = vmatpush.bf16.msrb.mxu0 %v11731_v38  ;;  %v11769_v38 = vld [vmem:[%s14637_s1 + $0x1640] sm:$0xff] }
 0x2b7   :  { %7672 = vmatpush.bf16.msrb.mxu1 %v11739_v40  ;;  %v108_v40 = vld [vmem:[%s14638_s0 + $0x2c0] sm:$0xff] }
 0x2b8   :  { %7685 = vmatpush.bf16.msrb.mxu2 %v11747_v41  ;;  %v110_v41 = vld [vmem:[%s14638_s0 + $0x2d0] sm:$0xff]  ;;  %v207_v48 = vpack.c.bf16 %v108_v40, %v108_v40 }
 0x2b9   :  { %7698 = vmatpush.bf16.msrb.mxu3 %v11755_v42  ;;  %v11800_v42 = vld [vmem:[%s14637_s1 + $0x1738] sm:$0xff] }
 0x2ba   :  { %7660 = vmatpush.bf16.msrb.mxu0 %v11730_v43  ;;  %v11808_v43 = vld [vmem:[%s14637_s1 + $0x1778] sm:$0xff] }
 0x2bb   :  { %7673 = vmatpush.bf16.msrb.mxu1 %v11738_v44  ;;  %v109_v44 = vld [vmem:[%s14638_s0 + $0x2c8] sm:$0xff] }
 0x2bc   :  { %7686 = vmatpush.bf16.msrb.mxu2 %v11746_v45  ;;  %v11816_v45 = vld [vmem:[%s14637_s1 + $0x17b8] sm:$0xff] }
 0x2bd   :  { %7699 = vmatpush.bf16.msrb.mxu3 %v11754_v47  ;;  %v111_v47 = vld [vmem:[%s14638_s0 + $0x2d8] sm:$0xff] }
 0x2be   :  { %7661 = vmatpush.bf16.msrb.mxu0 %v11729_v49  ;;  %v7455_v9 = vpop.f32.mrf.mxu0  ;;  %v209_v49 = vpack.c.bf16 %v110_v41, %v110_v41  ;;  %v210_v52 = vpack.c.bf16 %v111_v47, %v111_v47  ;;  %v11838_v47 = vld [vmem:[%s14637_s1 + $0x1868] sm:$0xff] }
 0x2bf   :  { %7674 = vmatpush.bf16.msrb.mxu1 %v11737_v50  ;;  %v7456_v10 = vadd.f32 %v7455_v9, %v14253_v37  ;;  %v7468_v12 = vpop.f32.mrf.mxu1  ;;  %v11761_v37 = vld [vmem:[%s14637_s1 + $0x1600] sm:$0xff]  ;;  %v11824_v50 = vld [vmem:[%s14637_s1 + $0x17f8] sm:$0xff] }
 0x2c0   :  { %7687 = vmatpush.bf16.msrb.mxu2 %v11745_v51  ;;  %v208_v51 = vpack.c.bf16 %v109_v44, %v109_v44  ;;  %v11839_v44 = vld [vmem:[%s14637_s1 + $0x1870] sm:$0xff] }
 0x2c1   :  { %7700 = vmatpush.bf16.msrb.mxu3 %v11753_v58  ;;  %7662 = vmatmul.bf16.vlgmr.msrb.gmra.mxu0 %v203_v60  ;;  %v7469_v15 = vadd.f32 %v7468_v12, %v7456_v10  ;;  %v11806_v58 = vld [vmem:[%s14637_s1 + $0x1768] sm:$0xff]  ;;  %v11820_v10 = vld [vmem:[%s14637_s1 + $0x17d8] sm:$0xff] }
 0x2c2   :  { %7706 = vmatpush.bf16.msra.mxu0 %v11768_v54  ;;  %7675 = vmatmul.bf16.vlgmr.msrb.gmra.mxu1 %v204_v63  ;;  %v11807_v54 = vld [vmem:[%s14637_s1 + $0x1770] sm:$0xff]  ;;  %v11822_v60 = vld [vmem:[%s14637_s1 + $0x17e8] sm:$0xff]  ;;  %v11797_v63 = vld [vmem:[%s14637_s1 + $0x1720] sm:$0xff] }
 0x2c3   :  { %7719 = vmatpush.bf16.msra.mxu1 %v11776_v55  ;;  %7688 = vmatmul.bf16.vlgmr.msrb.gmra.mxu2 %v205_v61  ;;  %v11815_v55 = vld [vmem:[%s14637_s1 + $0x17b0] sm:$0xff] }
 0x2c4   :  { %7732 = vmatpush.bf16.msra.mxu2 %v11784_v57  ;;  %7701 = vmatmul.bf16.vlgmr.msrb.gmra.mxu3 %v206_v0  ;;  %v11798_v57 = vld [vmem:[%s14637_s1 + $0x1728] sm:$0xff] }
 0x2c5   :  { %7745 = vmatpush.bf16.msra.mxu3 %v11792_v62 }
 0x2c6   :  { %7707 = vmatpush.bf16.msra.mxu0 %v11767_v1  ;;  %v7481_v20 = vpop.f32.mrf.mxu2  ;;  %v7457_v24 = vpop.f32.mrf.mxu0  ;;  %v11805_v1 = vld [vmem:[%s14637_s1 + $0x1760] sm:$0xff] }
 0x2c7   :  { %7720 = vmatpush.bf16.msra.mxu1 %v11775_v2  ;;  %v7482_v21 = vadd.f32 %v7481_v20, %v7469_v15  ;;  %v7494_v23 = vpop.f32.mrf.mxu3  ;;  %v7470_v27 = vpop.f32.mrf.mxu1  ;;  %v11813_v2 = vld [vmem:[%s14637_s1 + $0x17a0] sm:$0xff]  ;;  %v11794_v20 = vld [vmem:[%s14637_s1 + $0x1708] sm:$0xff] }
 0x2c8   :  { %7733 = vmatpush.bf16.msra.mxu2 %v11783_v3  ;;  %v11793_v27 = vld [vmem:[%s14637_s1 + $0x1700] sm:$0xff] }
 0x2c9   :  { %7746 = vmatpush.bf16.msra.mxu3 %v11791_v4  ;;  %v14364_v25 = vadd.f32 %v7494_v23, %v7482_v21  ;;  %v11821_v4 = vld [vmem:[%s14637_s1 + $0x17e0] sm:$0xff]  ;;  %v11810_v23 = vld [vmem:[%s14637_s1 + $0x1788] sm:$0xff] }
 0x2ca   :  { %7708 = vmatpush.bf16.msra.mxu0 %v11766_v5  ;;  %v11796_v5 = vld [vmem:[%s14637_s1 + $0x1718] sm:$0xff] }
 0x2cb   :  { %7721 = vmatpush.bf16.msra.mxu1 %v11774_v6  ;;  %v11804_v6 = vld [vmem:[%s14637_s1 + $0x1758] sm:$0xff] }
 0x2cc   :  { %7734 = vmatpush.bf16.msra.mxu2 %v11782_v7  ;;  %v11812_v7 = vld [vmem:[%s14637_s1 + $0x1798] sm:$0xff] }
 0x2cd   :  { %7747 = vmatpush.bf16.msra.mxu3 %v11790_v8 }
 0x2ce   :  { %7709 = vmatpush.bf16.msra.mxu0 %v11765_v11  ;;  %v7483_v34 = vpop.f32.mrf.mxu2 }
 0x2cf   :  { %7722 = vmatpush.bf16.msra.mxu1 %v11773_v13  ;;  %v7496_v36 = vpop.f32.mrf.mxu3  ;;  %v11840_v34 = vld [vmem:[%s14637_s1 + $0x1878] sm:$0xff] }
 0x2d0   :  { %7735 = vmatpush.bf16.msra.mxu2 %v11781_v14  ;;  %v11795_v14 = vld [vmem:[%s14637_s1 + $0x1710] sm:$0xff]  ;;  %v11817_v36 = vld [vmem:[%s14637_s1 + $0x17c0] sm:$0xff] }
 0x2d1   :  { %7748 = vmatpush.bf16.msra.mxu3 %v11789_v16  ;;  %v11803_v16 = vld [vmem:[%s14637_s1 + $0x1750] sm:$0xff] }
 0x2d2   :  { %7710 = vmatpush.bf16.msra.mxu0 %v11764_v17  ;;  %v11811_v17 = vld [vmem:[%s14637_s1 + $0x1790] sm:$0xff] }
 0x2d3   :  { %7723 = vmatpush.bf16.msra.mxu1 %v11772_v18  ;;  %v1800_v18 = vld [vmem:[%s14637_s1 + $0x18b8] sm:$0x3] }
 0x2d4   :  { %7736 = vmatpush.bf16.msra.mxu2 %v11780_v19  ;;  %v11819_v19 = vld [vmem:[%s14637_s1 + $0x17d0] sm:$0xff]  ;;  %v4970_v21 = vunpack.c.l.b16 %v1800_v18 }
 0x2d5   :  { %7749 = vmatpush.bf16.msra.mxu3 %v11788_v22  ;;  %v11802_v22 = vld [vmem:[%s14637_s1 + $0x1748] sm:$0xff] }
 0x2d6   :  { %7711 = vmatpush.bf16.msra.mxu0 %v11763_v26 }
 0x2d7   :  { %7724 = vmatpush.bf16.msra.mxu1 %v11771_v28  ;;  %v11801_v28 = vld [vmem:[%s14637_s1 + $0x1740] sm:$0xff] }
 0x2d8   :  { %7737 = vmatpush.bf16.msra.mxu2 %v11779_v29  ;;  %v5762_v29 = vpack.c.b16 %v4970_v21, %v4970_v21 }
 0x2d9   :  { %7750 = vmatpush.bf16.msra.mxu3 %v11787_v30  ;;  %v11809_v30 = vld [vmem:[%s14637_s1 + $0x1780] sm:$0xff] }
 0x2da   :  { %7712 = vmatpush.bf16.msra.mxu0 %v11762_v31  ;;  %v112_v31 = vld [vmem:[%s14638_s0 + $0x2e0] sm:$0xff] }
 0x2db   :  { %7725 = vmatpush.bf16.msra.mxu1 %v11770_v32  ;;  %v114_v32 = vld [vmem:[%s14638_s0 + $0x2f0] sm:$0xff] }
 0x2dc   :  { %7738 = vmatpush.bf16.msra.mxu2 %v11778_v33  ;;  %v11832_v33 = vld [vmem:[%s14637_s1 + $0x1838] sm:$0xff]  ;;  %v213_v40 = vpack.c.bf16 %v114_v32, %v114_v32 }
 0x2dd   :  { %7751 = vmatpush.bf16.msra.mxu3 %v11786_v35  ;;  %v113_v35 = vld [vmem:[%s14638_s0 + $0x2e8] sm:$0xff] }
 0x2de   :  { %7713 = vmatpush.bf16.msra.mxu0 %v11761_v37  ;;  %v7507_v61 = vpop.f32.mrf.mxu0  ;;  %v115_v37 = vld [vmem:[%s14638_s0 + $0x2f8] sm:$0xff]  ;;  %v212_v41 = vpack.c.bf16 %v113_v35, %v113_v35 }
 0x2df   :  { %7726 = vmatpush.bf16.msra.mxu1 %v11769_v38  ;;  %v7508_v62 = vadd.f32 %v7507_v61, %v14364_v25  ;;  %v7520_v0 = vpop.f32.mrf.mxu1  ;;  %v11818_v25 = vld [vmem:[%s14637_s1 + $0x17c8] sm:$0xff]  ;;  %v6560_v38 = vsel %vm6558_vm0, %v5762_v29, 0 }
 0x2e0   :  { %7739 = vmatpush.bf16.msra.mxu2 %v11777_v39  ;;  %v211_v39 = vpack.c.bf16 %v112_v31, %v112_v31 }
 0x2e1   :  { %7752 = vmatpush.bf16.msra.mxu3 %v11785_v46  ;;  %7714 = vmatmul.bf16.vlgmr.msra.gmra.mxu0 %v207_v48  ;;  %v7521_v3 = vadd.f32 %v7520_v0, %v7508_v62  ;;  %v11830_v46 = vld [vmem:[%s14637_s1 + $0x1828] sm:$0xff]  ;;  %v11827_v0 = vld [vmem:[%s14637_s1 + $0x1810] sm:$0xff] }
 0x2e2   :  { %7758 = vmatpush.bf16.msrb.mxu0 %v11800_v42  ;;  %7727 = vmatmul.bf16.vlgmr.msra.gmra.mxu1 %v208_v51  ;;  %v214_v42 = vpack.c.bf16 %v115_v37, %v115_v37  ;;  %v11846_v48 = vld [vmem:[%s14637_s1 + $0x18a8] sm:$0xff]  ;;  %v11829_v51 = vld [vmem:[%s14637_s1 + $0x1820] sm:$0xff] }
 0x2e3   :  { %7771 = vmatpush.bf16.msrb.mxu1 %v11808_v43  ;;  %7740 = vmatmul.bf16.vlgmr.msra.gmra.mxu2 %v209_v49  ;;  %v11831_v43 = vld [vmem:[%s14637_s1 + $0x1830] sm:$0xff] }
 0x2e4   :  { %7784 = vmatpush.bf16.msrb.mxu2 %v11816_v45  ;;  %7753 = vmatmul.bf16.vlgmr.msra.gmra.mxu3 %v210_v52  ;;  %v11847_v45 = vld [vmem:[%s14637_s1 + $0x18b0] sm:$0xff] }
 0x2e5   :  { %7797 = vmatpush.bf16.msrb.mxu3 %v11824_v50 }
 0x2e6   :  { %7759 = vmatpush.bf16.msrb.mxu0 %v11799_v53  ;;  %v7533_v8 = vpop.f32.mrf.mxu2  ;;  %v7509_v12 = vpop.f32.mrf.mxu0  ;;  %v11837_v53 = vld [vmem:[%s14637_s1 + $0x1860] sm:$0xff] }
 0x2e7   :  { %7772 = vmatpush.bf16.msrb.mxu1 %v11807_v54  ;;  %v7534_v9 = vadd.f32 %v7533_v8, %v7521_v3  ;;  %v7546_v11 = vpop.f32.mrf.mxu3  ;;  %v7522_v15 = vpop.f32.mrf.mxu1  ;;  %v11845_v54 = vld [vmem:[%s14637_s1 + $0x18a0] sm:$0xff]  ;;  %v11843_v3 = vld [vmem:[%s14637_s1 + $0x1890] sm:$0xff] }
 0x2e8   :  { %7785 = vmatpush.bf16.msrb.mxu2 %v11815_v55  ;;  %v11841_v12 = vld [vmem:[%s14637_s1 + $0x1880] sm:$0xff] }
 0x2e9   :  { %7798 = vmatpush.bf16.msrb.mxu3 %v11823_v56  ;;  %v14475_v13 = vadd.f32 %v7546_v11, %v7534_v9  ;;  %v11828_v56 = vld [vmem:[%s14637_s1 + $0x1818] sm:$0xff]  ;;  %v11825_v9 = vld [vmem:[%s14637_s1 + $0x1800] sm:$0xff] }
 0x2ea   :  { %7760 = vmatpush.bf16.msrb.mxu0 %v11798_v57  ;;  %v11836_v57 = vld [vmem:[%s14637_s1 + $0x1858] sm:$0xff]  ;;  %v116_v11 = vld [vmem:[%s14638_s0 + $0x300] sm:$0xff] }
 0x2eb   :  { %7773 = vmatpush.bf16.msrb.mxu1 %v11806_v58  ;;  %v11844_v58 = vld [vmem:[%s14637_s1 + $0x1898] sm:$0xff]  ;;  %v215_v15 = vpack.c.bf16 %v116_v11, %v116_v11 }
 0x2ec   :  { %7786 = vmatpush.bf16.msrb.mxu2 %v11814_v59 }
 0x2ed   :  { %7799 = vmatpush.bf16.msrb.mxu3 %v11822_v60 }
 0x2ee   :  { %7761 = vmatpush.bf16.msrb.mxu0 %v11797_v63  ;;  %v7535_v24 = vpop.f32.mrf.mxu2 }
 0x2ef   :  { %7774 = vmatpush.bf16.msrb.mxu1 %v11805_v1  ;;  %v7548_v26 = vpop.f32.mrf.mxu3 }
 0x2f0   :  { %7787 = vmatpush.bf16.msrb.mxu2 %v11813_v2  ;;  %v11835_v2 = vld [vmem:[%s14637_s1 + $0x1850] sm:$0xff] }
 0x2f1   :  { %7800 = vmatpush.bf16.msrb.mxu3 %v11821_v4  ;;  %v11826_v4 = vld [vmem:[%s14637_s1 + $0x1808] sm:$0xff] }
 0x2f2   :  { %7762 = vmatpush.bf16.msrb.mxu0 %v11796_v5  ;;  %v11834_v5 = vld [vmem:[%s14637_s1 + $0x1848] sm:$0xff] }
 0x2f3   :  { %7775 = vmatpush.bf16.msrb.mxu1 %v11804_v6  ;;  %v11842_v6 = vld [vmem:[%s14637_s1 + $0x1888] sm:$0xff] }
 0x2f4   :  { %7788 = vmatpush.bf16.msrb.mxu2 %v11812_v7 }
 0x2f5   :  { %7801 = vmatpush.bf16.msrb.mxu3 %v11820_v10  ;;  %v11833_v10 = vld [vmem:[%s14637_s1 + $0x1840] sm:$0xff] }
 0x2f6   :  { %7763 = vmatpush.bf16.msrb.mxu0 %v11795_v14  ;;  %v118_v14 = vld [vmem:[%s14638_s0 + $0x310] sm:$0xff] }
 0x2f7   :  { %7776 = vmatpush.bf16.msrb.mxu1 %v11803_v16 }
 0x2f8   :  { %7789 = vmatpush.bf16.msrb.mxu2 %v11811_v17  ;;  %v217_v17 = vpack.c.bf16 %v118_v14, %v118_v14 }
 0x2f9   :  { %7802 = vmatpush.bf16.msrb.mxu3 %v11819_v19 }
 0x2fa   :  { %7764 = vmatpush.bf16.msrb.mxu0 %v11794_v20 }
 0x2fb   :  { %7777 = vmatpush.bf16.msrb.mxu1 %v11802_v22 }
 0x2fc   :  { %7790 = vmatpush.bf16.msrb.mxu2 %v11810_v23 }
 0x2fd   :  { %7803 = vmatpush.bf16.msrb.mxu3 %v11818_v25 }
 0x2fe   :  { %7765 = vmatpush.bf16.msrb.mxu0 %v11793_v27  ;;  %v7559_v49 = vpop.f32.mrf.mxu0 }
 0x2ff   :  { %7778 = vmatpush.bf16.msrb.mxu1 %v11801_v28  ;;  %v7560_v50 = vadd.f32 %v7559_v49, %v14475_v13  ;;  %v7572_v52 = vpop.f32.mrf.mxu1  ;;  %v117_v13 = vld [vmem:[%s14638_s0 + $0x308] sm:$0xff]  ;;  %v7856_v49 = vld [vmem:[%s14641_s3 + $0x30] sm:$0xff] }
 0x300   :  { %7791 = vmatpush.bf16.msrb.mxu2 %v11809_v30  ;;  %v216_v16 = vpack.c.bf16 %v117_v13, %v117_v13 }
 0x301   :  { %7804 = vmatpush.bf16.msrb.mxu3 %v11817_v36  ;;  %7766 = vmatmul.bf16.vlgmr.msrb.gmra.mxu0 %v211_v39  ;;  %v7573_v55 = vadd.f32 %v7572_v52, %v7560_v50 }
 0x302   :  { %7810 = vmatpush.bf16.msra.mxu0 %v11832_v33  ;;  %7779 = vmatmul.bf16.vlgmr.msrb.gmra.mxu1 %v212_v41 }
 0x303   :  { %7823 = vmatpush.bf16.msra.mxu1 %v11840_v34  ;;  %7792 = vmatmul.bf16.vlgmr.msrb.gmra.mxu2 %v213_v40 }
 0x304   :  { %7836 = vmatpush.bf16.msra.mxu2 %v6560_v38  ;;  %7805 = vmatmul.bf16.vlgmr.msrb.gmra.mxu3 %v214_v42 }
 0x306   :  { %7811 = vmatpush.bf16.msra.mxu0 %v11831_v43  ;;  %v7585_v59 = vpop.f32.mrf.mxu2  ;;  %v7561_v62 = vpop.f32.mrf.mxu0 }
 0x307   :  { %7824 = vmatpush.bf16.msra.mxu1 %v11839_v44  ;;  %v7586_v60 = vadd.f32 %v7585_v59, %v7573_v55  ;;  %v7598_v61 = vpop.f32.mrf.mxu3  ;;  %v7574_v1 = vpop.f32.mrf.mxu1  ;;  %v7853_v55 = vld [vmem:[%s14641_s3 + $0x18] sm:$0xff] }
 0x308   :  { %7837 = vmatpush.bf16.msra.mxu2 %v11847_v45 }
 0x309   :  { %v7599_v63 = vadd.f32 %v7598_v61, %v7586_v60  ;;  %v7850_v61 = vld [vmem:[%s14641_s3] sm:$0xff] }
 0x30a   :  { %7812 = vmatpush.bf16.msra.mxu0 %v11830_v46 }
 0x30b   :  { %7825 = vmatpush.bf16.msra.mxu1 %v11838_v47 }
 0x30c   :  { %7838 = vmatpush.bf16.msra.mxu2 %v11846_v48  ;;  %v7857_v48 = vld [vmem:[%s14641_s3 + $0x38] sm:$0xff] }
 0x30d   :  { %7874 = vmatpush.msra.mxu3 %v7857_v48 }
 0x30e   :  { %7813 = vmatpush.bf16.msra.mxu0 %v11829_v51  ;;  %v7587_v7 = vpop.f32.mrf.mxu2  ;;  %v7855_v51 = vld [vmem:[%s14641_s3 + $0x28] sm:$0xff] }
 0x30f   :  { %7826 = vmatpush.bf16.msra.mxu1 %v11837_v53  ;;  %v7600_v8 = vpop.f32.mrf.mxu3  ;;  %7875 = vmatpush.msra.mxu3 %v7856_v49  ;;  %v7854_v53 = vld [vmem:[%s14641_s3 + $0x20] sm:$0xff] }
 0x310   :  { %7839 = vmatpush.bf16.msra.mxu2 %v11845_v54 }
 0x311   :  { %7876 = vmatpush.msra.mxu3 %v7855_v51 }
 0x312   :  { %7814 = vmatpush.bf16.msra.mxu0 %v11828_v56 }
 0x313   :  { %7827 = vmatpush.bf16.msra.mxu1 %v11836_v57  ;;  %7877 = vmatpush.msra.mxu3 %v7854_v53  ;;  %v7852_v57 = vld [vmem:[%s14641_s3 + $0x10] sm:$0xff] }
 0x314   :  { %7840 = vmatpush.bf16.msra.mxu2 %v11844_v58  ;;  %v7851_v58 = vld [vmem:[%s14641_s3 + $0x8] sm:$0xff] }
 0x315   :  { %7878 = vmatpush.msra.mxu3 %v7853_v55 }
 0x316   :  { %7815 = vmatpush.bf16.msra.mxu0 %v11827_v0 }
 0x317   :  { %7828 = vmatpush.bf16.msra.mxu1 %v11835_v2  ;;  %7879 = vmatpush.msra.mxu3 %v7852_v57 }
 0x318   :  { %7841 = vmatpush.bf16.msra.mxu2 %v11843_v3 }
 0x319   :  { %7880 = vmatpush.msra.mxu3 %v7851_v58 }
 0x31a   :  { %7816 = vmatpush.bf16.msra.mxu0 %v11826_v4 }
 0x31b   :  { %7829 = vmatpush.bf16.msra.mxu1 %v11834_v5  ;;  %7881 = vmatpush.msra.mxu3 %v7850_v61 }
 0x31c   :  { %7842 = vmatpush.bf16.msra.mxu2 %v11842_v6 }
 0x31e   :  { %7817 = vmatpush.bf16.msra.mxu0 %v11825_v9  ;;  %v7611_v18 = vpop.f32.mrf.mxu0 }
 0x31f   :  { %7830 = vmatpush.bf16.msra.mxu1 %v11833_v10  ;;  %v7612_v19 = vadd.f32 %v7611_v18, %v7599_v63  ;;  %v7624_v20 = vpop.f32.mrf.mxu1 }
 0x320   :  { %7843 = vmatpush.bf16.msra.mxu2 %v11841_v12 }
 0x321   :  { %7818 = vmatmul.bf16.vlgmr.msra.gmra.mxu0 %v215_v15  ;;  %v7625_v21 = vadd.f32 %v7624_v20, %v7612_v19  ;;  %v11849_v20 = vld [vmem:[%s14640_s4] ss:$0 sm:$0xff] }
 0x322   :  { %7831 = vmatmul.bf16.vlgmr.msra.gmra.mxu1 %v216_v16 }
 0x323   :  { %11055 = vmatmul.msk.bf16.vlgmr.msra.gmra.mxu2 %vm6554_vm1, %v217_v17 }
 0x326   :  { %v7637_v22 = vpop.f32.mrf.mxu2  ;;  %v7613_v25 = vpop.f32.mrf.mxu0 }
 0x327   :  { %v7638_v23 = vadd.f32 %v7637_v22, %v7625_v21  ;;  %v7650_v24 = vpop.f32.mrf.mxu3  ;;  %v7626_v27 = vpop.f32.mrf.mxu1 }
 0x329   :  { %v7651_v26 = vadd.f32 %v7650_v24, %v7638_v23 }
 0x32e   :  { %v7639_v28 = vpop.f32.mrf.mxu2 }
 0x32f   :  { %v7652_v29 = vpop.f32.mrf.mxu3 }
 0x33e   :  { %v7663_v30 = vpop.f32.mrf.mxu0 }
 0x33f   :  { %v7664_v31 = vadd.f32 %v7663_v30, %v7651_v26  ;;  %v7676_v32 = vpop.f32.mrf.mxu1 }
 0x341   :  { %v7677_v33 = vadd.f32 %v7676_v32, %v7664_v31 }
 0x346   :  { %v7689_v34 = vpop.f32.mrf.mxu2  ;;  %v7665_v37 = vpop.f32.mrf.mxu0 }
 0x347   :  { %v7690_v35 = vadd.f32 %v7689_v34, %v7677_v33  ;;  %v7702_v36 = vpop.f32.mrf.mxu3  ;;  %v7678_v39 = vpop.f32.mrf.mxu1 }
 0x349   :  { %v7703_v38 = vadd.f32 %v7702_v36, %v7690_v35 }
 0x34e   :  { %v7691_v40 = vpop.f32.mrf.mxu2 }
 0x34f   :  { %v7704_v41 = vpop.f32.mrf.mxu3 }
 0x35e   :  { %v7715_v42 = vpop.f32.mrf.mxu0 }
 0x35f   :  { %v7728_v43 = vpop.f32.mrf.mxu1  ;;  %v7716_v60 = vadd.f32 %v7715_v42, %v7703_v38 }
 0x361   :  { %v7729_v1 = vadd.f32 %v7728_v43, %v7716_v60 }
 0x366   :  { %v7741_v44 = vpop.f32.mrf.mxu2  ;;  %v7717_v46 = vpop.f32.mrf.mxu0 }
 0x367   :  { %v7754_v45 = vpop.f32.mrf.mxu3  ;;  %v7730_v47 = vpop.f32.mrf.mxu1  ;;  %v7742_v2 = vadd.f32 %v7741_v44, %v7729_v1 }
 0x369   :  { %v7755_v5 = vadd.f32 %v7754_v45, %v7742_v2 }
 0x36e   :  { %v7743_v50 = vpop.f32.mrf.mxu2 }
 0x36f   :  { %v7756_v52 = vpop.f32.mrf.mxu3 }
 0x37e   :  { %v7767_v54 = vpop.f32.mrf.mxu0 }
 0x37f   :  { %v7780_v56 = vpop.f32.mrf.mxu1  ;;  %v7768_v6 = vadd.f32 %v7767_v54, %v7755_v5 }
 0x381   :  { %v7781_v7 = vadd.f32 %v7780_v56, %v7768_v6 }
 0x386   :  { %v7793_v59 = vpop.f32.mrf.mxu2  ;;  %v7769_v63 = vpop.f32.mrf.mxu0 }
 0x387   :  { %v7806_v62 = vpop.f32.mrf.mxu3  ;;  %v7782_v0 = vpop.f32.mrf.mxu1  ;;  %v7794_v8 = vadd.f32 %v7793_v59, %v7781_v7 }
 0x389   :  { %v7807_v9 = vadd.f32 %v7806_v62, %v7794_v8 }
 0x38e   :  { %v7795_v3 = vpop.f32.mrf.mxu2 }
 0x38f   :  { %v7808_v4 = vpop.f32.mrf.mxu3 }
 0x39e   :  { %v7819_v10 = vpop.f32.mrf.mxu0 }
 0x39f   :  { %v7832_v11 = vpop.f32.mrf.mxu1  ;;  %v7820_v12 = vadd.f32 %v7819_v10, %v7807_v9 }
 0x3a1   :  { %v7833_v13 = vadd.f32 %v7832_v11, %v7820_v12 }
 0x3a6   :  { %v7845_v14 = vpop.f32.mrf.mxu2  ;;  %v7821_v16 = vpop.f32.mrf.mxu0 }
 0x3a7   :  { %v7846_v15 = vadd.f32 %v7845_v14, %v7833_v13  ;;  %v7834_v17 = vpop.f32.mrf.mxu1 }
 0x3a9   :  { %v7849_v18 = vmax.f32 %v7846_v15, 0.0 }
 0x3ab   :  { %11056 = vmatmul.msk.f32.vlgmr.msra.gmra.mxu3 %vm7862_vm2, %v7849_v18 }
 0x3ae   :  { %v7847_v19 = vpop.f32.mrf.mxu2 }
 0x42e   :  { %v7883_v21 = vpop.f32.mrf.mxu3 }
 0x42f   :  { %v7884_v22 = vadd.f32 %v11849_v20, %v7883_v21 }
 0x431   :  { %7886 = vst [vmem:[%s14642_s5] sm:$0xff] %v7884_v22 }

</bundles_post_ra>
